<compile_context>
chip_gen: v7x
topology: tpu7x:2x2x1
jax: 0.10.0
libtpu: 0.0.40
codegen_flags: <defaults>
</compile_context>

<pallas_src>
import functools
import math

import jax
import jax.numpy as jnp
from jax.experimental import pallas as pl
from jax.experimental.pallas import tpu as pltpu


def _round_up(v, m):
    return (v + m - 1) // m * m


def _upsample_kernel(x_ref, w_ref, b_ref, s_ref, o_ref, *, c_in, c_out, oc_tile):
    """One (n, row-block, oc-block) grid step.

    x_ref : (1, C_in, TR, L_in)   VMEM  folded input rows (L_in = g*W), native layout
    w_ref : (C_in*C_out*4,)       SMEM  ConvTranspose3d weights, flat (ic, oc, kh, kw)
    b_ref : (C_out,)              SMEM  bias
    s_ref : (L_out, L_out)        VMEM  0/1 interleave: col (t,r,w) -> r*4W + kh*2W + 2w + kw
    o_ref : (1, OC_T, TR, L_out)  VMEM  output rows, already in final memory layout
    """
    oc0 = pl.program_id(2) * oc_tile
    for j in range(oc_tile):
        oc = oc0 + j

        # ---- channel contraction: VPU scalar-broadcast FMAs (C_in is small) ----
        taps = [None] * 4
        for ic in range(c_in):
            xi = x_ref[0, ic]                                   # (TR, L_in)
            for t in range(4):
                term = w_ref[(ic * c_out + oc) * 4 + t] * xi    # f32 accumulation
                taps[t] = term if ic == 0 else taps[t] + term

        # ---- 2x2 interleave: one MXU matmul with a 0/1 permutation matrix ----
        pcat = jnp.concatenate(taps, axis=-1)                   # (TR, L_out), tap-major
        res = jnp.dot(pcat, s_ref[...],
                      precision=jax.lax.Precision.HIGHEST,      # keep the permutation exact
                      preferred_element_type=jnp.float32)
        o_ref[0, j] = (res + b_ref[oc]).astype(o_ref.dtype)


def _vmem_limit_bytes():
    """Generation-aware VMEM limit: ~48 MiB on v5e/v6e (128 MiB), ~32 MiB on v7x (64 MiB)."""
    cap = 64 * 1024 * 1024                                      # conservative fallback
    try:
        cap = int(pltpu.get_tpu_info().vmem_capacity_bytes)
    except Exception:
        pass
    return min(cap // 2, 48 * 1024 * 1024)


def _largest_row_tile(dh_g, cap):
    """Largest t <= cap with t % 8 == 0 and dh_g % t == 0 (None if there is none)."""
    t = (min(dh_g, cap) // 8) * 8
    while t >= 8:
        if dh_g % t == 0:
            return t
        t -= 8
    return None


def _choose_tiles(n, dh_g, c_in, c_out, l_in, l_out, itemsize, vmem_limit):
    """Pick (row_tile, oc_tile): double-buffered tiles + scatter + temporaries fit the budget."""
    # Fuse as much of C_out as practical into one grid step (bounded loop unroll).
    oc_tile = max(dvr for dvr in range(1, min(c_out, 8) + 1) if c_out % dvr == 0)

    l_in_p, l_out_p = _round_up(l_in, 128), _round_up(l_out, 128)
    scatter_bytes = 2 * _round_up(l_out, 8) * l_out_p * 4             # double-buffered operand
    per_row = (2 * c_in * l_in_p * itemsize                           # x tile, double-buffered
               + 2 * oc_tile * l_out_p * itemsize                     # out tile, double-buffered
               + (4 * l_in_p + 2 * l_out_p) * 4)                      # taps + pcat + matmul result
    budget = int(vmem_limit * 0.7) - scatter_bytes
    max_rows = max(8, budget // per_row)

    # v7x megacore: if N == 1 and a single oc-block, keep >= 2 row tiles on a parallel axis.
    prefer_multi = (n == 1) and (c_out // oc_tile) < 2
    tr = None
    if prefer_multi and dh_g >= 16:
        tr = _largest_row_tile(dh_g, min(max_rows, dh_g // 2))
    if tr is None:
        tr = dh_g if dh_g <= max_rows else (_largest_row_tile(dh_g, max_rows) or dh_g)
    return tr, oc_tile


def upsample3d_transpose(x, weight, bias):
    """ConvTranspose3d with kernel_size == stride == (1, 2, 2).

    x:      (N, C_in, D, H, W)      float32 (or bfloat16; accumulation stays f32)
    weight: (C_in, C_out, 1, 2, 2)  PyTorch ConvTranspose3d weight layout
    bias:   (C_out,)
    returns (N, C_out, D, 2H, 2W)   dtype of x
    """
    n, c_in, d, h, w_len = x.shape
    c_out = weight.shape[1]
    dh = d * h

    # ---- lane folding: fold g rows so the output row width g*4W is a multiple of 128 ----
    g = math.gcd(dh, 128 // math.gcd(4 * w_len, 128))
    while g > 1 and 4 * w_len * g > 1024:        # keep the O((g*4W)^2) interleave operand modest
        g //= 2
    dh_g, l_in, l_out = dh // g, g * w_len, 4 * g * w_len

    # Free (bitcast-level) views -- no extra HBM layout passes.
    x_view = x.reshape(n, c_in, dh_g, l_in)
    w_flat = weight[:, :, 0].astype(jnp.float32).reshape(-1)          # (C_in*C_out*4,)
    b_vec = bias.astype(jnp.float32)

    # 0/1 interleave matrix: pcat column (t, r, w) -> output column r*4W + kh*2W + 2w + kw.
    idx = jnp.arange(l_out)
    t_i, rw = idx // l_in, idx % l_in
    r_i, w_i = rw // w_len, rw % w_len
    cols = r_i * (4 * w_len) + (t_i // 2) * (2 * w_len) + 2 * w_i + (t_i % 2)
    scatter = jax.nn.one_hot(cols, l_out, dtype=jnp.float32)          # (L_out, L_out)

    vmem_limit = _vmem_limit_bytes()
    tr, oc_tile = _choose_tiles(n, dh_g, c_in, c_out, l_in, l_out,
                                x.dtype.itemsize, vmem_limit)
    grid = (n, dh_g // tr, c_out // oc_tile)

    kernel = functools.partial(_upsample_kernel, c_in=c_in, c_out=c_out, oc_tile=oc_tile)

    in_bytes = x.size * x.dtype.itemsize
    out_bytes = n * c_out * dh * 4 * w_len * x.dtype.itemsize
    cost = pl.CostEstimate(
        flops=(2 * n * dh * w_len * c_in * 4 * c_out            # channel contraction
               + 2 * n * dh_g * c_out * l_out * l_out),         # MXU interleave
        transcendentals=0,
        bytes_accessed=in_bytes + out_bytes
        + (scatter.size + w_flat.size + b_vec.size) * 4,
    )

    y = pl.pallas_call(
        kernel,
        out_shape=jax.ShapeDtypeStruct((n, c_out, dh_g, l_out), x.dtype),
        grid=grid,
        in_specs=[
            # x tile is resident across the oc-block axis (index_map ignores oi).
            pl.BlockSpec((1, c_in, tr, l_in), lambda ni, ri, oi: (ni, 0, ri, 0)),
            pl.BlockSpec(memory_space=pltpu.MemorySpace.SMEM),        # weights (scalars)
            pl.BlockSpec(memory_space=pltpu.MemorySpace.SMEM),        # bias (scalars)
            pl.BlockSpec((l_out, l_out), lambda ni, ri, oi: (0, 0)),  # interleave matrix
        ],
        out_specs=pl.BlockSpec((1, oc_tile, tr, l_out),
                               lambda ni, ri, oi: (ni, oi, ri, 0)),
        compiler_params=pltpu.CompilerParams(
            dimension_semantics=("parallel", "parallel", "parallel"),
            vmem_limit_bytes=vmem_limit,
        ),
        cost_estimate=cost,
    )(x_view, w_flat, b_vec, scatter)

    # Free reshape: (N, C_out, DH/g, g*4W) is bit-identical to (N, C_out, D, 2H, 2W).
    return y.reshape(n, c_out, d, 2 * h, 2 * w_len)


def _reference(x, weight, bias):
    # Pure elementwise/sum reference (no matmuls -> no TPU matmul-precision ambiguity).
    n, c_in, d, h, w_len = x.shape
    c_out = weight.shape[1]
    wk = weight[:, :, 0]                                        # (C_in, C_out, 2, 2)
    prod = x[:, :, None, :, :, :, None, None] * wk[None, :, :, None, None, None, :, :]
    y = jnp.sum(prod, axis=1)                                   # (N, C_out, D, H, W, 2, 2)
    y = jnp.transpose(y, (0, 1, 2, 3, 5, 4, 6))                 # (N, C_out, D, H, kh, W, kw)
    y = y.reshape(n, c_out, d, 2 * h, 2 * w_len)
    return y + bias[None, :, None, None, None]


if __name__ == "__main__":
    key = jax.random.PRNGKey(0)
    k1, k2, k3 = jax.random.split(key, 3)

    # Small shapes consistent with the module: (N, C_in, D, H, W)
    n, c_in, c_out, d, h, w = 2, 4, 8, 4, 8, 8
    x = jax.random.normal(k1, (n, c_in, d, h, w), dtype=jnp.float32)

    # Deterministic parameter init (ConvTranspose3d weight shape: (in_c, out_c, 1, 2, 2))
    fan = c_in * 1 * 2 * 2
    bound = 1.0 / (fan ** 0.5)
    weight = jax.random.uniform(k2, (c_in, c_out, 1, 2, 2), jnp.float32, -bound, bound)
    bias = jax.random.uniform(k3, (c_out,), jnp.float32, -bound, bound)

    out = upsample3d_transpose(x, weight, bias)
    out = jax.block_until_ready(out)

    ref = _reference(x, weight, bias)
    assert out.shape == (n, c_out, d, 2 * h, 2 * w), out.shape
    max_err = float(jnp.max(jnp.abs(out - ref)))
    assert jnp.allclose(out, ref, atol=1e-5, rtol=1e-5), max_err

    # TODO(synk): mode='trilinear' (nn.Upsample trilinear + 1x1x1 Conv3d) and scales other
    # than (1,2,2) are not implemented; the module default mode='transpose', scale=(1,2,2)
    # is what is reproduced here.
    print("KERNEL_OK")
</pallas_src>

<mosaic_0001>
module attributes {stable_mosaic.version = 11 : i64} {
  func.func @_upsample_kernel(%arg0: i32, %arg1: i32, %arg2: i32, %arg3: memref<1x4x8x32xf32, #tpu.memory_space<vmem>>, %arg4: memref<128xf32, #tpu.memory_space<smem>>, %arg5: memref<8xf32, #tpu.memory_space<smem>>, %arg6: memref<128x128xf32, #tpu.memory_space<vmem>>, %arg7: memref<1x8x8x128xf32, #tpu.memory_space<vmem>>) attributes {dimension_semantics = [#tpu.dimension_semantics<parallel>, #tpu.dimension_semantics<parallel>, #tpu.dimension_semantics<parallel>], iteration_bounds = array<i64: 2, 1, 1>, scalar_prefetch = 0 : i64, scratch_operands = 0 : i64, tpu.core_type = #tpu.core_type<tc>, window_params = [{transform_indices = @transform_0, window_bounds = array<i64: 1, 4, 8, 32>}, {transform_indices = @transform_1, window_bounds = array<i64: 128>}, {transform_indices = @transform_2, window_bounds = array<i64: 8>}, {pipeline_mode = #tpu.pipeline_mode<synchronous>, transform_indices = @transform_3, window_bounds = array<i64: 128, 128>}, {transform_indices = @transform_4, window_bounds = array<i64: 1, 8, 8, 128>}]} {
    %c8_i32 = arith.constant 8 : i32
    %0 = arith.muli %arg2, %c8_i32 : i32
    %c0_i32 = arith.constant 0 : i32
    %1 = arith.addi %0, %c0_i32 : i32
    %c0 = arith.constant 0 : index
    %c0_0 = arith.constant 0 : index
    %c0_1 = arith.constant 0 : index
    %c0_2 = arith.constant 0 : index
    %2 = vector.load %arg3[%c0, %c0_0, %c0_1, %c0_2] : memref<1x4x8x32xf32, #tpu.memory_space<vmem>>, vector<1x1x8x32xf32>
    %3 = vector.shape_cast %2 : vector<1x1x8x32xf32> to vector<8x32xf32>
    %c0_i32_3 = arith.constant 0 : i32
    %4 = arith.addi %c0_i32_3, %1 : i32
    %c4_i32 = arith.constant 4 : i32
    %5 = arith.muli %4, %c4_i32 : i32
    %c0_i32_4 = arith.constant 0 : i32
    %6 = arith.addi %5, %c0_i32_4 : i32
    %7 = arith.index_cast %6 : i32 to index
    %8 = memref.load %arg4[%7] : memref<128xf32, #tpu.memory_space<smem>>
    %9 = vector.broadcast %8 : f32 to vector<8x32xf32>
    %10 = arith.mulf %9, %3 : vector<8x32xf32>
    %c0_i32_5 = arith.constant 0 : i32
    %11 = arith.addi %c0_i32_5, %1 : i32
    %c4_i32_6 = arith.constant 4 : i32
    %12 = arith.muli %11, %c4_i32_6 : i32
    %c1_i32 = arith.constant 1 : i32
    %13 = arith.addi %12, %c1_i32 : i32
    %14 = arith.index_cast %13 : i32 to index
    %15 = memref.load %arg4[%14] : memref<128xf32, #tpu.memory_space<smem>>
    %16 = vector.broadcast %15 : f32 to vector<8x32xf32>
    %17 = arith.mulf %16, %3 : vector<8x32xf32>
    %c0_i32_7 = arith.constant 0 : i32
    %18 = arith.addi %c0_i32_7, %1 : i32
    %c4_i32_8 = arith.constant 4 : i32
    %19 = arith.muli %18, %c4_i32_8 : i32
    %c2_i32 = arith.constant 2 : i32
    %20 = arith.addi %19, %c2_i32 : i32
    %21 = arith.index_cast %20 : i32 to index
    %22 = memref.load %arg4[%21] : memref<128xf32, #tpu.memory_space<smem>>
    %23 = vector.broadcast %22 : f32 to vector<8x32xf32>
    %24 = arith.mulf %23, %3 : vector<8x32xf32>
    %c0_i32_9 = arith.constant 0 : i32
    %25 = arith.addi %c0_i32_9, %1 : i32
    %c4_i32_10 = arith.constant 4 : i32
    %26 = arith.muli %25, %c4_i32_10 : i32
    %c3_i32 = arith.constant 3 : i32
    %27 = arith.addi %26, %c3_i32 : i32
    %28 = arith.index_cast %27 : i32 to index
    %29 = memref.load %arg4[%28] : memref<128xf32, #tpu.memory_space<smem>>
    %30 = vector.broadcast %29 : f32 to vector<8x32xf32>
    %31 = arith.mulf %30, %3 : vector<8x32xf32>
    %c0_11 = arith.constant 0 : index
    %c1 = arith.constant 1 : index
    %c0_12 = arith.constant 0 : index
    %c0_13 = arith.constant 0 : index
    %32 = vector.load %arg3[%c0_11, %c1, %c0_12, %c0_13] : memref<1x4x8x32xf32, #tpu.memory_space<vmem>>, vector<1x1x8x32xf32>
    %33 = vector.shape_cast %32 : vector<1x1x8x32xf32> to vector<8x32xf32>
    %c8_i32_14 = arith.constant 8 : i32
    %34 = arith.addi %c8_i32_14, %1 : i32
    %c4_i32_15 = arith.constant 4 : i32
    %35 = arith.muli %34, %c4_i32_15 : i32
    %c0_i32_16 = arith.constant 0 : i32
    %36 = arith.addi %35, %c0_i32_16 : i32
    %37 = arith.index_cast %36 : i32 to index
    %38 = memref.load %arg4[%37] : memref<128xf32, #tpu.memory_space<smem>>
    %39 = vector.broadcast %38 : f32 to vector<8x32xf32>
    %40 = arith.mulf %39, %33 : vector<8x32xf32>
    %41 = arith.addf %10, %40 : vector<8x32xf32>
    %c8_i32_17 = arith.constant 8 : i32
    %42 = arith.addi %c8_i32_17, %1 : i32
    %c4_i32_18 = arith.constant 4 : i32
    %43 = arith.muli %42, %c4_i32_18 : i32
    %c1_i32_19 = arith.constant 1 : i32
    %44 = arith.addi %43, %c1_i32_19 : i32
    %45 = arith.index_cast %44 : i32 to index
    %46 = memref.load %arg4[%45] : memref<128xf32, #tpu.memory_space<smem>>
    %47 = vector.broadcast %46 : f32 to vector<8x32xf32>
    %48 = arith.mulf %47, %33 : vector<8x32xf32>
    %49 = arith.addf %17, %48 : vector<8x32xf32>
    %c8_i32_20 = arith.constant 8 : i32
    %50 = arith.addi %c8_i32_20, %1 : i32
    %c4_i32_21 = arith.constant 4 : i32
    %51 = arith.muli %50, %c4_i32_21 : i32
    %c2_i32_22 = arith.constant 2 : i32
    %52 = arith.addi %51, %c2_i32_22 : i32
    %53 = arith.index_cast %52 : i32 to index
    %54 = memref.load %arg4[%53] : memref<128xf32, #tpu.memory_space<smem>>
    %55 = vector.broadcast %54 : f32 to vector<8x32xf32>
    %56 = arith.mulf %55, %33 : vector<8x32xf32>
    %57 = arith.addf %24, %56 : vector<8x32xf32>
    %c8_i32_23 = arith.constant 8 : i32
    %58 = arith.addi %c8_i32_23, %1 : i32
    %c4_i32_24 = arith.constant 4 : i32
    %59 = arith.muli %58, %c4_i32_24 : i32
    %c3_i32_25 = arith.constant 3 : i32
    %60 = arith.addi %59, %c3_i32_25 : i32
    %61 = arith.index_cast %60 : i32 to index
    %62 = memref.load %arg4[%61] : memref<128xf32, #tpu.memory_space<smem>>
    %63 = vector.broadcast %62 : f32 to vector<8x32xf32>
    %64 = arith.mulf %63, %33 : vector<8x32xf32>
    %65 = arith.addf %31, %64 : vector<8x32xf32>
    %c0_26 = arith.constant 0 : index
    %c2 = arith.constant 2 : index
    %c0_27 = arith.constant 0 : index
    %c0_28 = arith.constant 0 : index
    %66 = vector.load %arg3[%c0_26, %c2, %c0_27, %c0_28] : memref<1x4x8x32xf32, #tpu.memory_space<vmem>>, vector<1x1x8x32xf32>
    %67 = vector.shape_cast %66 : vector<1x1x8x32xf32> to vector<8x32xf32>
    %c16_i32 = arith.constant 16 : i32
    %68 = arith.addi %c16_i32, %1 : i32
    %c4_i32_29 = arith.constant 4 : i32
    %69 = arith.muli %68, %c4_i32_29 : i32
    %c0_i32_30 = arith.constant 0 : i32
    %70 = arith.addi %69, %c0_i32_30 : i32
    %71 = arith.index_cast %70 : i32 to index
    %72 = memref.load %arg4[%71] : memref<128xf32, #tpu.memory_space<smem>>
    %73 = vector.broadcast %72 : f32 to vector<8x32xf32>
    %74 = arith.mulf %73, %67 : vector<8x32xf32>
    %75 = arith.addf %41, %74 : vector<8x32xf32>
    %c16_i32_31 = arith.constant 16 : i32
    %76 = arith.addi %c16_i32_31, %1 : i32
    %c4_i32_32 = arith.constant 4 : i32
    %77 = arith.muli %76, %c4_i32_32 : i32
    %c1_i32_33 = arith.constant 1 : i32
    %78 = arith.addi %77, %c1_i32_33 : i32
    %79 = arith.index_cast %78 : i32 to index
    %80 = memref.load %arg4[%79] : memref<128xf32, #tpu.memory_space<smem>>
    %81 = vector.broadcast %80 : f32 to vector<8x32xf32>
    %82 = arith.mulf %81, %67 : vector<8x32xf32>
    %83 = arith.addf %49, %82 : vector<8x32xf32>
    %c16_i32_34 = arith.constant 16 : i32
    %84 = arith.addi %c16_i32_34, %1 : i32
    %c4_i32_35 = arith.constant 4 : i32
    %85 = arith.muli %84, %c4_i32_35 : i32
    %c2_i32_36 = arith.constant 2 : i32
    %86 = arith.addi %85, %c2_i32_36 : i32
    %87 = arith.index_cast %86 : i32 to index
    %88 = memref.load %arg4[%87] : memref<128xf32, #tpu.memory_space<smem>>
    %89 = vector.broadcast %88 : f32 to vector<8x32xf32>
    %90 = arith.mulf %89, %67 : vector<8x32xf32>
    %91 = arith.addf %57, %90 : vector<8x32xf32>
    %c16_i32_37 = arith.constant 16 : i32
    %92 = arith.addi %c16_i32_37, %1 : i32
    %c4_i32_38 = arith.constant 4 : i32
    %93 = arith.muli %92, %c4_i32_38 : i32
    %c3_i32_39 = arith.constant 3 : i32
    %94 = arith.addi %93, %c3_i32_39 : i32
    %95 = arith.index_cast %94 : i32 to index
    %96 = memref.load %arg4[%95] : memref<128xf32, #tpu.memory_space<smem>>
    %97 = vector.broadcast %96 : f32 to vector<8x32xf32>
    %98 = arith.mulf %97, %67 : vector<8x32xf32>
    %99 = arith.addf %65, %98 : vector<8x32xf32>
    %c0_40 = arith.constant 0 : index
    %c3 = arith.constant 3 : index
    %c0_41 = arith.constant 0 : index
    %c0_42 = arith.constant 0 : index
    %100 = vector.load %arg3[%c0_40, %c3, %c0_41, %c0_42] : memref<1x4x8x32xf32, #tpu.memory_space<vmem>>, vector<1x1x8x32xf32>
    %101 = vector.shape_cast %100 : vector<1x1x8x32xf32> to vector<8x32xf32>
    %c24_i32 = arith.constant 24 : i32
    %102 = arith.addi %c24_i32, %1 : i32
    %c4_i32_43 = arith.constant 4 : i32
    %103 = arith.muli %102, %c4_i32_43 : i32
    %c0_i32_44 = arith.constant 0 : i32
    %104 = arith.addi %103, %c0_i32_44 : i32
    %105 = arith.index_cast %104 : i32 to index
    %106 = memref.load %arg4[%105] : memref<128xf32, #tpu.memory_space<smem>>
    %107 = vector.broadcast %106 : f32 to vector<8x32xf32>
    %108 = arith.mulf %107, %101 : vector<8x32xf32>
    %109 = arith.addf %75, %108 : vector<8x32xf32>
    %c24_i32_45 = arith.constant 24 : i32
    %110 = arith.addi %c24_i32_45, %1 : i32
    %c4_i32_46 = arith.constant 4 : i32
    %111 = arith.muli %110, %c4_i32_46 : i32
    %c1_i32_47 = arith.constant 1 : i32
    %112 = arith.addi %111, %c1_i32_47 : i32
    %113 = arith.index_cast %112 : i32 to index
    %114 = memref.load %arg4[%113] : memref<128xf32, #tpu.memory_space<smem>>
    %115 = vector.broadcast %114 : f32 to vector<8x32xf32>
    %116 = arith.mulf %115, %101 : vector<8x32xf32>
    %117 = arith.addf %83, %116 : vector<8x32xf32>
    %c24_i32_48 = arith.constant 24 : i32
    %118 = arith.addi %c24_i32_48, %1 : i32
    %c4_i32_49 = arith.constant 4 : i32
    %119 = arith.muli %118, %c4_i32_49 : i32
    %c2_i32_50 = arith.constant 2 : i32
    %120 = arith.addi %119, %c2_i32_50 : i32
    %121 = arith.index_cast %120 : i32 to index
    %122 = memref.load %arg4[%121] : memref<128xf32, #tpu.memory_space<smem>>
    %123 = vector.broadcast %122 : f32 to vector<8x32xf32>
    %124 = arith.mulf %123, %101 : vector<8x32xf32>
    %125 = arith.addf %91, %124 : vector<8x32xf32>
    %c24_i32_51 = arith.constant 24 : i32
    %126 = arith.addi %c24_i32_51, %1 : i32
    %c4_i32_52 = arith.constant 4 : i32
    %127 = arith.muli %126, %c4_i32_52 : i32
    %c3_i32_53 = arith.constant 3 : i32
    %128 = arith.addi %127, %c3_i32_53 : i32
    %129 = arith.index_cast %128 : i32 to index
    %130 = memref.load %arg4[%129] : memref<128xf32, #tpu.memory_space<smem>>
    %131 = vector.broadcast %130 : f32 to vector<8x32xf32>
    %132 = arith.mulf %131, %101 : vector<8x32xf32>
    %133 = arith.addf %99, %132 : vector<8x32xf32>
    %134 = tpu.concatenate %109, %117, %125, %133 in 1 : vector<8x32xf32>, vector<8x32xf32>, vector<8x32xf32>, vector<8x32xf32> -> vector<8x128xf32>
    %c0_54 = arith.constant 0 : index
    %c0_55 = arith.constant 0 : index
    %135 = vector.load %arg6[%c0_54, %c0_55] : memref<128x128xf32, #tpu.memory_space<vmem>>, vector<128x128xf32>
    %cst = arith.constant dense<0.000000e+00> : vector<8x128xf32>
    %136 = tpu.matmul %134, %135, %cst {dimension_numbers = #tpu.dot_dimension_numbers<[1], [0], [0], [1], [0, 0, 1, 1], [], []>, precision = #tpu.contract_precision<fp32>} : vector<8x128xf32>, vector<128x128xf32>, vector<8x128xf32> -> vector<8x128xf32>
    %137 = arith.index_cast %1 : i32 to index
    %138 = memref.load %arg5[%137] : memref<8xf32, #tpu.memory_space<smem>>
    %139 = vector.broadcast %138 : f32 to vector<8x128xf32>
    %140 = arith.addf %136, %139 : vector<8x128xf32>
    %c0_56 = arith.constant 0 : index
    %c0_57 = arith.constant 0 : index
    %c0_58 = arith.constant 0 : index
    %c0_59 = arith.constant 0 : index
    %141 = vector.load %arg7[%c0_56, %c0_57, %c0_58, %c0_59] : memref<1x8x8x128xf32, #tpu.memory_space<vmem>>, vector<1x1x8x128xf32>
    %142 = vector.shape_cast %141 : vector<1x1x8x128xf32> to vector<8x128xf32>
    %143 = vector.shape_cast %140 : vector<8x128xf32> to vector<1x1x8x128xf32>
    tpu.vector_store %arg7[%c0_56, %c0_57, %c0_58, %c0_59], %143 {strides = array<i32>} : memref<1x8x8x128xf32, #tpu.memory_space<vmem>>, vector<1x1x8x128xf32>,
    %c1_i32_60 = arith.constant 1 : i32
    %144 = arith.addi %0, %c1_i32_60 : i32
    %c0_61 = arith.constant 0 : index
    %c0_62 = arith.constant 0 : index
    %c0_63 = arith.constant 0 : index
    %c0_64 = arith.constant 0 : index
    %145 = vector.load %arg3[%c0_61, %c0_62, %c0_63, %c0_64] : memref<1x4x8x32xf32, #tpu.memory_space<vmem>>, vector<1x1x8x32xf32>
    %146 = vector.shape_cast %145 : vector<1x1x8x32xf32> to vector<8x32xf32>
    %c0_i32_65 = arith.constant 0 : i32
    %147 = arith.addi %c0_i32_65, %144 : i32
    %c4_i32_66 = arith.constant 4 : i32
    %148 = arith.muli %147, %c4_i32_66 : i32
    %c0_i32_67 = arith.constant 0 : i32
    %149 = arith.addi %148, %c0_i32_67 : i32
    %150 = arith.index_cast %149 : i32 to index
    %151 = memref.load %arg4[%150] : memref<128xf32, #tpu.memory_space<smem>>
    %152 = vector.broadcast %151 : f32 to vector<8x32xf32>
    %153 = arith.mulf %152, %146 : vector<8x32xf32>
    %c0_i32_68 = arith.constant 0 : i32
    %154 = arith.addi %c0_i32_68, %144 : i32
    %c4_i32_69 = arith.constant 4 : i32
    %155 = arith.muli %154, %c4_i32_69 : i32
    %c1_i32_70 = arith.constant 1 : i32
    %156 = arith.addi %155, %c1_i32_70 : i32
    %157 = arith.index_cast %156 : i32 to index
    %158 = memref.load %arg4[%157] : memref<128xf32, #tpu.memory_space<smem>>
    %159 = vector.broadcast %158 : f32 to vector<8x32xf32>
    %160 = arith.mulf %159, %146 : vector<8x32xf32>
    %c0_i32_71 = arith.constant 0 : i32
    %161 = arith.addi %c0_i32_71, %144 : i32
    %c4_i32_72 = arith.constant 4 : i32
    %162 = arith.muli %161, %c4_i32_72 : i32
    %c2_i32_73 = arith.constant 2 : i32
    %163 = arith.addi %162, %c2_i32_73 : i32
    %164 = arith.index_cast %163 : i32 to index
    %165 = memref.load %arg4[%164] : memref<128xf32, #tpu.memory_space<smem>>
    %166 = vector.broadcast %165 : f32 to vector<8x32xf32>
    %167 = arith.mulf %166, %146 : vector<8x32xf32>
    %c0_i32_74 = arith.constant 0 : i32
    %168 = arith.addi %c0_i32_74, %144 : i32
    %c4_i32_75 = arith.constant 4 : i32
    %169 = arith.muli %168, %c4_i32_75 : i32
    %c3_i32_76 = arith.constant 3 : i32
    %170 = arith.addi %169, %c3_i32_76 : i32
    %171 = arith.index_cast %170 : i32 to index
    %172 = memref.load %arg4[%171] : memref<128xf32, #tpu.memory_space<smem>>
    %173 = vector.broadcast %172 : f32 to vector<8x32xf32>
    %174 = arith.mulf %173, %146 : vector<8x32xf32>
    %c0_77 = arith.constant 0 : index
    %c1_78 = arith.constant 1 : index
    %c0_79 = arith.constant 0 : index
    %c0_80 = arith.constant 0 : index
    %175 = vector.load %arg3[%c0_77, %c1_78, %c0_79, %c0_80] : memref<1x4x8x32xf32, #tpu.memory_space<vmem>>, vector<1x1x8x32xf32>
    %176 = vector.shape_cast %175 : vector<1x1x8x32xf32> to vector<8x32xf32>
    %c8_i32_81 = arith.constant 8 : i32
    %177 = arith.addi %c8_i32_81, %144 : i32
    %c4_i32_82 = arith.constant 4 : i32
    %178 = arith.muli %177, %c4_i32_82 : i32
    %c0_i32_83 = arith.constant 0 : i32
    %179 = arith.addi %178, %c0_i32_83 : i32
    %180 = arith.index_cast %179 : i32 to index
    %181 = memref.load %arg4[%180] : memref<128xf32, #tpu.memory_space<smem>>
    %182 = vector.broadcast %181 : f32 to vector<8x32xf32>
    %183 = arith.mulf %182, %176 : vector<8x32xf32>
    %184 = arith.addf %153, %183 : vector<8x32xf32>
    %c8_i32_84 = arith.constant 8 : i32
    %185 = arith.addi %c8_i32_84, %144 : i32
    %c4_i32_85 = arith.constant 4 : i32
    %186 = arith.muli %185, %c4_i32_85 : i32
    %c1_i32_86 = arith.constant 1 : i32
    %187 = arith.addi %186, %c1_i32_86 : i32
    %188 = arith.index_cast %187 : i32 to index
    %189 = memref.load %arg4[%188] : memref<128xf32, #tpu.memory_space<smem>>
    %190 = vector.broadcast %189 : f32 to vector<8x32xf32>
    %191 = arith.mulf %190, %176 : vector<8x32xf32>
    %192 = arith.addf %160, %191 : vector<8x32xf32>
    %c8_i32_87 = arith.constant 8 : i32
    %193 = arith.addi %c8_i32_87, %144 : i32
    %c4_i32_88 = arith.constant 4 : i32
    %194 = arith.muli %193, %c4_i32_88 : i32
    %c2_i32_89 = arith.constant 2 : i32
    %195 = arith.addi %194, %c2_i32_89 : i32
    %196 = arith.index_cast %195 : i32 to index
    %197 = memref.load %arg4[%196] : memref<128xf32, #tpu.memory_space<smem>>
    %198 = vector.broadcast %197 : f32 to vector<8x32xf32>
    %199 = arith.mulf %198, %176 : vector<8x32xf32>
    %200 = arith.addf %167, %199 : vector<8x32xf32>
    %c8_i32_90 = arith.constant 8 : i32
    %201 = arith.addi %c8_i32_90, %144 : i32
    %c4_i32_91 = arith.constant 4 : i32
    %202 = arith.muli %201, %c4_i32_91 : i32
    %c3_i32_92 = arith.constant 3 : i32
    %203 = arith.addi %202, %c3_i32_92 : i32
    %204 = arith.index_cast %203 : i32 to index
    %205 = memref.load %arg4[%204] : memref<128xf32, #tpu.memory_space<smem>>
    %206 = vector.broadcast %205 : f32 to vector<8x32xf32>
    %207 = arith.mulf %206, %176 : vector<8x32xf32>
    %208 = arith.addf %174, %207 : vector<8x32xf32>
    %c0_93 = arith.constant 0 : index
    %c2_94 = arith.constant 2 : index
    %c0_95 = arith.constant 0 : index
    %c0_96 = arith.constant 0 : index
    %209 = vector.load %arg3[%c0_93, %c2_94, %c0_95, %c0_96] : memref<1x4x8x32xf32, #tpu.memory_space<vmem>>, vector<1x1x8x32xf32>
    %210 = vector.shape_cast %209 : vector<1x1x8x32xf32> to vector<8x32xf32>
    %c16_i32_97 = arith.constant 16 : i32
    %211 = arith.addi %c16_i32_97, %144 : i32
    %c4_i32_98 = arith.constant 4 : i32
    %212 = arith.muli %211, %c4_i32_98 : i32
    %c0_i32_99 = arith.constant 0 : i32
    %213 = arith.addi %212, %c0_i32_99 : i32
    %214 = arith.index_cast %213 : i32 to index
    %215 = memref.load %arg4[%214] : memref<128xf32, #tpu.memory_space<smem>>
    %216 = vector.broadcast %215 : f32 to vector<8x32xf32>
    %217 = arith.mulf %216, %210 : vector<8x32xf32>
    %218 = arith.addf %184, %217 : vector<8x32xf32>
    %c16_i32_100 = arith.constant 16 : i32
    %219 = arith.addi %c16_i32_100, %144 : i32
    %c4_i32_101 = arith.constant 4 : i32
    %220 = arith.muli %219, %c4_i32_101 : i32
    %c1_i32_102 = arith.constant 1 : i32
    %221 = arith.addi %220, %c1_i32_102 : i32
    %222 = arith.index_cast %221 : i32 to index
    %223 = memref.load %arg4[%222] : memref<128xf32, #tpu.memory_space<smem>>
    %224 = vector.broadcast %223 : f32 to vector<8x32xf32>
    %225 = arith.mulf %224, %210 : vector<8x32xf32>
    %226 = arith.addf %192, %225 : vector<8x32xf32>
    %c16_i32_103 = arith.constant 16 : i32
    %227 = arith.addi %c16_i32_103, %144 : i32
    %c4_i32_104 = arith.constant 4 : i32
    %228 = arith.muli %227, %c4_i32_104 : i32
    %c2_i32_105 = arith.constant 2 : i32
    %229 = arith.addi %228, %c2_i32_105 : i32
    %230 = arith.index_cast %229 : i32 to index
    %231 = memref.load %arg4[%230] : memref<128xf32, #tpu.memory_space<smem>>
    %232 = vector.broadcast %231 : f32 to vector<8x32xf32>
    %233 = arith.mulf %232, %210 : vector<8x32xf32>
    %234 = arith.addf %200, %233 : vector<8x32xf32>
    %c16_i32_106 = arith.constant 16 : i32
    %235 = arith.addi %c16_i32_106, %144 : i32
    %c4_i32_107 = arith.constant 4 : i32
    %236 = arith.muli %235, %c4_i32_107 : i32
    %c3_i32_108 = arith.constant 3 : i32
    %237 = arith.addi %236, %c3_i32_108 : i32
    %238 = arith.index_cast %237 : i32 to index
    %239 = memref.load %arg4[%238] : memref<128xf32, #tpu.memory_space<smem>>
    %240 = vector.broadcast %239 : f32 to vector<8x32xf32>
    %241 = arith.mulf %240, %210 : vector<8x32xf32>
    %242 = arith.addf %208, %241 : vector<8x32xf32>
    %c0_109 = arith.constant 0 : index
    %c3_110 = arith.constant 3 : index
    %c0_111 = arith.constant 0 : index
    %c0_112 = arith.constant 0 : index
    %243 = vector.load %arg3[%c0_109, %c3_110, %c0_111, %c0_112] : memref<1x4x8x32xf32, #tpu.memory_space<vmem>>, vector<1x1x8x32xf32>
    %244 = vector.shape_cast %243 : vector<1x1x8x32xf32> to vector<8x32xf32>
    %c24_i32_113 = arith.constant 24 : i32
    %245 = arith.addi %c24_i32_113, %144 : i32
    %c4_i32_114 = arith.constant 4 : i32
    %246 = arith.muli %245, %c4_i32_114 : i32
    %c0_i32_115 = arith.constant 0 : i32
    %247 = arith.addi %246, %c0_i32_115 : i32
    %248 = arith.index_cast %247 : i32 to index
    %249 = memref.load %arg4[%248] : memref<128xf32, #tpu.memory_space<smem>>
    %250 = vector.broadcast %249 : f32 to vector<8x32xf32>
    %251 = arith.mulf %250, %244 : vector<8x32xf32>
    %252 = arith.addf %218, %251 : vector<8x32xf32>
    %c24_i32_116 = arith.constant 24 : i32
    %253 = arith.addi %c24_i32_116, %144 : i32
    %c4_i32_117 = arith.constant 4 : i32
    %254 = arith.muli %253, %c4_i32_117 : i32
    %c1_i32_118 = arith.constant 1 : i32
    %255 = arith.addi %254, %c1_i32_118 : i32
    %256 = arith.index_cast %255 : i32 to index
    %257 = memref.load %arg4[%256] : memref<128xf32, #tpu.memory_space<smem>>
    %258 = vector.broadcast %257 : f32 to vector<8x32xf32>
    %259 = arith.mulf %258, %244 : vector<8x32xf32>
    %260 = arith.addf %226, %259 : vector<8x32xf32>
    %c24_i32_119 = arith.constant 24 : i32
    %261 = arith.addi %c24_i32_119, %144 : i32
    %c4_i32_120 = arith.constant 4 : i32
    %262 = arith.muli %261, %c4_i32_120 : i32
    %c2_i32_121 = arith.constant 2 : i32
    %263 = arith.addi %262, %c2_i32_121 : i32
    %264 = arith.index_cast %263 : i32 to index
    %265 = memref.load %arg4[%264] : memref<128xf32, #tpu.memory_space<smem>>
    %266 = vector.broadcast %265 : f32 to vector<8x32xf32>
    %267 = arith.mulf %266, %244 : vector<8x32xf32>
    %268 = arith.addf %234, %267 : vector<8x32xf32>
    %c24_i32_122 = arith.constant 24 : i32
    %269 = arith.addi %c24_i32_122, %144 : i32
    %c4_i32_123 = arith.constant 4 : i32
    %270 = arith.muli %269, %c4_i32_123 : i32
    %c3_i32_124 = arith.constant 3 : i32
    %271 = arith.addi %270, %c3_i32_124 : i32
    %272 = arith.index_cast %271 : i32 to index
    %273 = memref.load %arg4[%272] : memref<128xf32, #tpu.memory_space<smem>>
    %274 = vector.broadcast %273 : f32 to vector<8x32xf32>
    %275 = arith.mulf %274, %244 : vector<8x32xf32>
    %276 = arith.addf %242, %275 : vector<8x32xf32>
    %277 = tpu.concatenate %252, %260, %268, %276 in 1 : vector<8x32xf32>, vector<8x32xf32>, vector<8x32xf32>, vector<8x32xf32> -> vector<8x128xf32>
    %c0_125 = arith.constant 0 : index
    %c0_126 = arith.constant 0 : index
    %278 = vector.load %arg6[%c0_125, %c0_126] : memref<128x128xf32, #tpu.memory_space<vmem>>, vector<128x128xf32>
    %cst_127 = arith.constant dense<0.000000e+00> : vector<8x128xf32>
    %279 = tpu.matmul %277, %278, %cst_127 {dimension_numbers = #tpu.dot_dimension_numbers<[1], [0], [0], [1], [0, 0, 1, 1], [], []>, precision = #tpu.contract_precision<fp32>} : vector<8x128xf32>, vector<128x128xf32>, vector<8x128xf32> -> vector<8x128xf32>
    %280 = arith.index_cast %144 : i32 to index
    %281 = memref.load %arg5[%280] : memref<8xf32, #tpu.memory_space<smem>>
    %282 = vector.broadcast %281 : f32 to vector<8x128xf32>
    %283 = arith.addf %279, %282 : vector<8x128xf32>
    %c0_128 = arith.constant 0 : index
    %c1_129 = arith.constant 1 : index
    %c0_130 = arith.constant 0 : index
    %c0_131 = arith.constant 0 : index
    %284 = vector.load %arg7[%c0_128, %c1_129, %c0_130, %c0_131] : memref<1x8x8x128xf32, #tpu.memory_space<vmem>>, vector<1x1x8x128xf32>
    %285 = vector.shape_cast %284 : vector<1x1x8x128xf32> to vector<8x128xf32>
    %286 = vector.shape_cast %283 : vector<8x128xf32> to vector<1x1x8x128xf32>
    tpu.vector_store %arg7[%c0_128, %c1_129, %c0_130, %c0_131], %286 {strides = array<i32>} : memref<1x8x8x128xf32, #tpu.memory_space<vmem>>, vector<1x1x8x128xf32>,
    %c2_i32_132 = arith.constant 2 : i32
    %287 = arith.addi %0, %c2_i32_132 : i32
    %c0_133 = arith.constant 0 : index
    %c0_134 = arith.constant 0 : index
    %c0_135 = arith.constant 0 : index
    %c0_136 = arith.constant 0 : index
    %288 = vector.load %arg3[%c0_133, %c0_134, %c0_135, %c0_136] : memref<1x4x8x32xf32, #tpu.memory_space<vmem>>, vector<1x1x8x32xf32>
    %289 = vector.shape_cast %288 : vector<1x1x8x32xf32> to vector<8x32xf32>
    %c0_i32_137 = arith.constant 0 : i32
    %290 = arith.addi %c0_i32_137, %287 : i32
    %c4_i32_138 = arith.constant 4 : i32
    %291 = arith.muli %290, %c4_i32_138 : i32
    %c0_i32_139 = arith.constant 0 : i32
    %292 = arith.addi %291, %c0_i32_139 : i32
    %293 = arith.index_cast %292 : i32 to index
    %294 = memref.load %arg4[%293] : memref<128xf32, #tpu.memory_space<smem>>
    %295 = vector.broadcast %294 : f32 to vector<8x32xf32>
    %296 = arith.mulf %295, %289 : vector<8x32xf32>
    %c0_i32_140 = arith.constant 0 : i32
    %297 = arith.addi %c0_i32_140, %287 : i32
    %c4_i32_141 = arith.constant 4 : i32
    %298 = arith.muli %297, %c4_i32_141 : i32
    %c1_i32_142 = arith.constant 1 : i32
    %299 = arith.addi %298, %c1_i32_142 : i32
    %300 = arith.index_cast %299 : i32 to index
    %301 = memref.load %arg4[%300] : memref<128xf32, #tpu.memory_space<smem>>
    %302 = vector.broadcast %301 : f32 to vector<8x32xf32>
    %303 = arith.mulf %302, %289 : vector<8x32xf32>
    %c0_i32_143 = arith.constant 0 : i32
    %304 = arith.addi %c0_i32_143, %287 : i32
    %c4_i32_144 = arith.constant 4 : i32
    %305 = arith.muli %304, %c4_i32_144 : i32
    %c2_i32_145 = arith.constant 2 : i32
    %306 = arith.addi %305, %c2_i32_145 : i32
    %307 = arith.index_cast %306 : i32 to index
    %308 = memref.load %arg4[%307] : memref<128xf32, #tpu.memory_space<smem>>
    %309 = vector.broadcast %308 : f32 to vector<8x32xf32>
    %310 = arith.mulf %309, %289 : vector<8x32xf32>
    %c0_i32_146 = arith.constant 0 : i32
    %311 = arith.addi %c0_i32_146, %287 : i32
    %c4_i32_147 = arith.constant 4 : i32
    %312 = arith.muli %311, %c4_i32_147 : i32
    %c3_i32_148 = arith.constant 3 : i32
    %313 = arith.addi %312, %c3_i32_148 : i32
    %314 = arith.index_cast %313 : i32 to index
    %315 = memref.load %arg4[%314] : memref<128xf32, #tpu.memory_space<smem>>
    %316 = vector.broadcast %315 : f32 to vector<8x32xf32>
    %317 = arith.mulf %316, %289 : vector<8x32xf32>
    %c0_149 = arith.constant 0 : index
    %c1_150 = arith.constant 1 : index
    %c0_151 = arith.constant 0 : index
    %c0_152 = arith.constant 0 : index
    %318 = vector.load %arg3[%c0_149, %c1_150, %c0_151, %c0_152] : memref<1x4x8x32xf32, #tpu.memory_space<vmem>>, vector<1x1x8x32xf32>
    %319 = vector.shape_cast %318 : vector<1x1x8x32xf32> to vector<8x32xf32>
    %c8_i32_153 = arith.constant 8 : i32
    %320 = arith.addi %c8_i32_153, %287 : i32
    %c4_i32_154 = arith.constant 4 : i32
    %321 = arith.muli %320, %c4_i32_154 : i32
    %c0_i32_155 = arith.constant 0 : i32
    %322 = arith.addi %321, %c0_i32_155 : i32
    %323 = arith.index_cast %322 : i32 to index
    %324 = memref.load %arg4[%323] : memref<128xf32, #tpu.memory_space<smem>>
    %325 = vector.broadcast %324 : f32 to vector<8x32xf32>
    %326 = arith.mulf %325, %319 : vector<8x32xf32>
    %327 = arith.addf %296, %326 : vector<8x32xf32>
    %c8_i32_156 = arith.constant 8 : i32
    %328 = arith.addi %c8_i32_156, %287 : i32
    %c4_i32_157 = arith.constant 4 : i32
    %329 = arith.muli %328, %c4_i32_157 : i32
    %c1_i32_158 = arith.constant 1 : i32
    %330 = arith.addi %329, %c1_i32_158 : i32
    %331 = arith.index_cast %330 : i32 to index
    %332 = memref.load %arg4[%331] : memref<128xf32, #tpu.memory_space<smem>>
    %333 = vector.broadcast %332 : f32 to vector<8x32xf32>
    %334 = arith.mulf %333, %319 : vector<8x32xf32>
    %335 = arith.addf %303, %334 : vector<8x32xf32>
    %c8_i32_159 = arith.constant 8 : i32
    %336 = arith.addi %c8_i32_159, %287 : i32
    %c4_i32_160 = arith.constant 4 : i32
    %337 = arith.muli %336, %c4_i32_160 : i32
    %c2_i32_161 = arith.constant 2 : i32
    %338 = arith.addi %337, %c2_i32_161 : i32
    %339 = arith.index_cast %338 : i32 to index
    %340 = memref.load %arg4[%339] : memref<128xf32, #tpu.memory_space<smem>>
    %341 = vector.broadcast %340 : f32 to vector<8x32xf32>
    %342 = arith.mulf %341, %319 : vector<8x32xf32>
    %343 = arith.addf %310, %342 : vector<8x32xf32>
    %c8_i32_162 = arith.constant 8 : i32
    %344 = arith.addi %c8_i32_162, %287 : i32
    %c4_i32_163 = arith.constant 4 : i32
    %345 = arith.muli %344, %c4_i32_163 : i32
    %c3_i32_164 = arith.constant 3 : i32
    %346 = arith.addi %345, %c3_i32_164 : i32
    %347 = arith.index_cast %346 : i32 to index
    %348 = memref.load %arg4[%347] : memref<128xf32, #tpu.memory_space<smem>>
    %349 = vector.broadcast %348 : f32 to vector<8x32xf32>
    %350 = arith.mulf %349, %319 : vector<8x32xf32>
    %351 = arith.addf %317, %350 : vector<8x32xf32>
    %c0_165 = arith.constant 0 : index
    %c2_166 = arith.constant 2 : index
    %c0_167 = arith.constant 0 : index
    %c0_168 = arith.constant 0 : index
    %352 = vector.load %arg3[%c0_165, %c2_166, %c0_167, %c0_168] : memref<1x4x8x32xf32, #tpu.memory_space<vmem>>, vector<1x1x8x32xf32>
    %353 = vector.shape_cast %352 : vector<1x1x8x32xf32> to vector<8x32xf32>
    %c16_i32_169 = arith.constant 16 : i32
    %354 = arith.addi %c16_i32_169, %287 : i32
    %c4_i32_170 = arith.constant 4 : i32
    %355 = arith.muli %354, %c4_i32_170 : i32
    %c0_i32_171 = arith.constant 0 : i32
    %356 = arith.addi %355, %c0_i32_171 : i32
    %357 = arith.index_cast %356 : i32 to index
    %358 = memref.load %arg4[%357] : memref<128xf32, #tpu.memory_space<smem>>
    %359 = vector.broadcast %358 : f32 to vector<8x32xf32>
    %360 = arith.mulf %359, %353 : vector<8x32xf32>
    %361 = arith.addf %327, %360 : vector<8x32xf32>
    %c16_i32_172 = arith.constant 16 : i32
    %362 = arith.addi %c16_i32_172, %287 : i32
    %c4_i32_173 = arith.constant 4 : i32
    %363 = arith.muli %362, %c4_i32_173 : i32
    %c1_i32_174 = arith.constant 1 : i32
    %364 = arith.addi %363, %c1_i32_174 : i32
    %365 = arith.index_cast %364 : i32 to index
    %366 = memref.load %arg4[%365] : memref<128xf32, #tpu.memory_space<smem>>
    %367 = vector.broadcast %366 : f32 to vector<8x32xf32>
    %368 = arith.mulf %367, %353 : vector<8x32xf32>
    %369 = arith.addf %335, %368 : vector<8x32xf32>
    %c16_i32_175 = arith.constant 16 : i32
    %370 = arith.addi %c16_i32_175, %287 : i32
    %c4_i32_176 = arith.constant 4 : i32
    %371 = arith.muli %370, %c4_i32_176 : i32
    %c2_i32_177 = arith.constant 2 : i32
    %372 = arith.addi %371, %c2_i32_177 : i32
    %373 = arith.index_cast %372 : i32 to index
    %374 = memref.load %arg4[%373] : memref<128xf32, #tpu.memory_space<smem>>
    %375 = vector.broadcast %374 : f32 to vector<8x32xf32>
    %376 = arith.mulf %375, %353 : vector<8x32xf32>
    %377 = arith.addf %343, %376 : vector<8x32xf32>
    %c16_i32_178 = arith.constant 16 : i32
    %378 = arith.addi %c16_i32_178, %287 : i32
    %c4_i32_179 = arith.constant 4 : i32
    %379 = arith.muli %378, %c4_i32_179 : i32
    %c3_i32_180 = arith.constant 3 : i32
    %380 = arith.addi %379, %c3_i32_180 : i32
    %381 = arith.index_cast %380 : i32 to index
    %382 = memref.load %arg4[%381] : memref<128xf32, #tpu.memory_space<smem>>
    %383 = vector.broadcast %382 : f32 to vector<8x32xf32>
    %384 = arith.mulf %383, %353 : vector<8x32xf32>
    %385 = arith.addf %351, %384 : vector<8x32xf32>
    %c0_181 = arith.constant 0 : index
    %c3_182 = arith.constant 3 : index
    %c0_183 = arith.constant 0 : index
    %c0_184 = arith.constant 0 : index
    %386 = vector.load %arg3[%c0_181, %c3_182, %c0_183, %c0_184] : memref<1x4x8x32xf32, #tpu.memory_space<vmem>>, vector<1x1x8x32xf32>
    %387 = vector.shape_cast %386 : vector<1x1x8x32xf32> to vector<8x32xf32>
    %c24_i32_185 = arith.constant 24 : i32
    %388 = arith.addi %c24_i32_185, %287 : i32
    %c4_i32_186 = arith.constant 4 : i32
    %389 = arith.muli %388, %c4_i32_186 : i32
    %c0_i32_187 = arith.constant 0 : i32
    %390 = arith.addi %389, %c0_i32_187 : i32
    %391 = arith.index_cast %390 : i32 to index
    %392 = memref.load %arg4[%391] : memref<128xf32, #tpu.memory_space<smem>>
    %393 = vector.broadcast %392 : f32 to vector<8x32xf32>
    %394 = arith.mulf %393, %387 : vector<8x32xf32>
    %395 = arith.addf %361, %394 : vector<8x32xf32>
    %c24_i32_188 = arith.constant 24 : i32
    %396 = arith.addi %c24_i32_188, %287 : i32
    %c4_i32_189 = arith.constant 4 : i32
    %397 = arith.muli %396, %c4_i32_189 : i32
    %c1_i32_190 = arith.constant 1 : i32
    %398 = arith.addi %397, %c1_i32_190 : i32
    %399 = arith.index_cast %398 : i32 to index
    %400 = memref.load %arg4[%399] : memref<128xf32, #tpu.memory_space<smem>>
    %401 = vector.broadcast %400 : f32 to vector<8x32xf32>
    %402 = arith.mulf %401, %387 : vector<8x32xf32>
    %403 = arith.addf %369, %402 : vector<8x32xf32>
    %c24_i32_191 = arith.constant 24 : i32
    %404 = arith.addi %c24_i32_191, %287 : i32
    %c4_i32_192 = arith.constant 4 : i32
    %405 = arith.muli %404, %c4_i32_192 : i32
    %c2_i32_193 = arith.constant 2 : i32
    %406 = arith.addi %405, %c2_i32_193 : i32
    %407 = arith.index_cast %406 : i32 to index
    %408 = memref.load %arg4[%407] : memref<128xf32, #tpu.memory_space<smem>>
    %409 = vector.broadcast %408 : f32 to vector<8x32xf32>
    %410 = arith.mulf %409, %387 : vector<8x32xf32>
    %411 = arith.addf %377, %410 : vector<8x32xf32>
    %c24_i32_194 = arith.constant 24 : i32
    %412 = arith.addi %c24_i32_194, %287 : i32
    %c4_i32_195 = arith.constant 4 : i32
    %413 = arith.muli %412, %c4_i32_195 : i32
    %c3_i32_196 = arith.constant 3 : i32
    %414 = arith.addi %413, %c3_i32_196 : i32
    %415 = arith.index_cast %414 : i32 to index
    %416 = memref.load %arg4[%415] : memref<128xf32, #tpu.memory_space<smem>>
    %417 = vector.broadcast %416 : f32 to vector<8x32xf32>
    %418 = arith.mulf %417, %387 : vector<8x32xf32>
    %419 = arith.addf %385, %418 : vector<8x32xf32>
    %420 = tpu.concatenate %395, %403, %411, %419 in 1 : vector<8x32xf32>, vector<8x32xf32>, vector<8x32xf32>, vector<8x32xf32> -> vector<8x128xf32>
    %c0_197 = arith.constant 0 : index
    %c0_198 = arith.constant 0 : index
    %421 = vector.load %arg6[%c0_197, %c0_198] : memref<128x128xf32, #tpu.memory_space<vmem>>, vector<128x128xf32>
    %cst_199 = arith.constant dense<0.000000e+00> : vector<8x128xf32>
    %422 = tpu.matmul %420, %421, %cst_199 {dimension_numbers = #tpu.dot_dimension_numbers<[1], [0], [0], [1], [0, 0, 1, 1], [], []>, precision = #tpu.contract_precision<fp32>} : vector<8x128xf32>, vector<128x128xf32>, vector<8x128xf32> -> vector<8x128xf32>
    %423 = arith.index_cast %287 : i32 to index
    %424 = memref.load %arg5[%423] : memref<8xf32, #tpu.memory_space<smem>>
    %425 = vector.broadcast %424 : f32 to vector<8x128xf32>
    %426 = arith.addf %422, %425 : vector<8x128xf32>
    %c0_200 = arith.constant 0 : index
    %c2_201 = arith.constant 2 : index
    %c0_202 = arith.constant 0 : index
    %c0_203 = arith.constant 0 : index
    %427 = vector.load %arg7[%c0_200, %c2_201, %c0_202, %c0_203] : memref<1x8x8x128xf32, #tpu.memory_space<vmem>>, vector<1x1x8x128xf32>
    %428 = vector.shape_cast %427 : vector<1x1x8x128xf32> to vector<8x128xf32>
    %429 = vector.shape_cast %426 : vector<8x128xf32> to vector<1x1x8x128xf32>
    tpu.vector_store %arg7[%c0_200, %c2_201, %c0_202, %c0_203], %429 {strides = array<i32>} : memref<1x8x8x128xf32, #tpu.memory_space<vmem>>, vector<1x1x8x128xf32>,
    %c3_i32_204 = arith.constant 3 : i32
    %430 = arith.addi %0, %c3_i32_204 : i32
    %c0_205 = arith.constant 0 : index
    %c0_206 = arith.constant 0 : index
    %c0_207 = arith.constant 0 : index
    %c0_208 = arith.constant 0 : index
    %431 = vector.load %arg3[%c0_205, %c0_206, %c0_207, %c0_208] : memref<1x4x8x32xf32, #tpu.memory_space<vmem>>, vector<1x1x8x32xf32>
    %432 = vector.shape_cast %431 : vector<1x1x8x32xf32> to vector<8x32xf32>
    %c0_i32_209 = arith.constant 0 : i32
    %433 = arith.addi %c0_i32_209, %430 : i32
    %c4_i32_210 = arith.constant 4 : i32
    %434 = arith.muli %433, %c4_i32_210 : i32
    %c0_i32_211 = arith.constant 0 : i32
    %435 = arith.addi %434, %c0_i32_211 : i32
    %436 = arith.index_cast %435 : i32 to index
    %437 = memref.load %arg4[%436] : memref<128xf32, #tpu.memory_space<smem>>
    %438 = vector.broadcast %437 : f32 to vector<8x32xf32>
    %439 = arith.mulf %438, %432 : vector<8x32xf32>
    %c0_i32_212 = arith.constant 0 : i32
    %440 = arith.addi %c0_i32_212, %430 : i32
    %c4_i32_213 = arith.constant 4 : i32
    %441 = arith.muli %440, %c4_i32_213 : i32
    %c1_i32_214 = arith.constant 1 : i32
    %442 = arith.addi %441, %c1_i32_214 : i32
    %443 = arith.index_cast %442 : i32 to index
    %444 = memref.load %arg4[%443] : memref<128xf32, #tpu.memory_space<smem>>
    %445 = vector.broadcast %444 : f32 to vector<8x32xf32>
    %446 = arith.mulf %445, %432 : vector<8x32xf32>
    %c0_i32_215 = arith.constant 0 : i32
    %447 = arith.addi %c0_i32_215, %430 : i32
    %c4_i32_216 = arith.constant 4 : i32
    %448 = arith.muli %447, %c4_i32_216 : i32
    %c2_i32_217 = arith.constant 2 : i32
    %449 = arith.addi %448, %c2_i32_217 : i32
    %450 = arith.index_cast %449 : i32 to index
    %451 = memref.load %arg4[%450] : memref<128xf32, #tpu.memory_space<smem>>
    %452 = vector.broadcast %451 : f32 to vector<8x32xf32>
    %453 = arith.mulf %452, %432 : vector<8x32xf32>
    %c0_i32_218 = arith.constant 0 : i32
    %454 = arith.addi %c0_i32_218, %430 : i32
    %c4_i32_219 = arith.constant 4 : i32
    %455 = arith.muli %454, %c4_i32_219 : i32
    %c3_i32_220 = arith.constant 3 : i32
    %456 = arith.addi %455, %c3_i32_220 : i32
    %457 = arith.index_cast %456 : i32 to index
    %458 = memref.load %arg4[%457] : memref<128xf32, #tpu.memory_space<smem>>
    %459 = vector.broadcast %458 : f32 to vector<8x32xf32>
    %460 = arith.mulf %459, %432 : vector<8x32xf32>
    %c0_221 = arith.constant 0 : index
    %c1_222 = arith.constant 1 : index
    %c0_223 = arith.constant 0 : index
    %c0_224 = arith.constant 0 : index
    %461 = vector.load %arg3[%c0_221, %c1_222, %c0_223, %c0_224] : memref<1x4x8x32xf32, #tpu.memory_space<vmem>>, vector<1x1x8x32xf32>
    %462 = vector.shape_cast %461 : vector<1x1x8x32xf32> to vector<8x32xf32>
    %c8_i32_225 = arith.constant 8 : i32
    %463 = arith.addi %c8_i32_225, %430 : i32
    %c4_i32_226 = arith.constant 4 : i32
    %464 = arith.muli %463, %c4_i32_226 : i32
    %c0_i32_227 = arith.constant 0 : i32
    %465 = arith.addi %464, %c0_i32_227 : i32
    %466 = arith.index_cast %465 : i32 to index
    %467 = memref.load %arg4[%466] : memref<128xf32, #tpu.memory_space<smem>>
    %468 = vector.broadcast %467 : f32 to vector<8x32xf32>
    %469 = arith.mulf %468, %462 : vector<8x32xf32>
    %470 = arith.addf %439, %469 : vector<8x32xf32>
    %c8_i32_228 = arith.constant 8 : i32
    %471 = arith.addi %c8_i32_228, %430 : i32
    %c4_i32_229 = arith.constant 4 : i32
    %472 = arith.muli %471, %c4_i32_229 : i32
    %c1_i32_230 = arith.constant 1 : i32
    %473 = arith.addi %472, %c1_i32_230 : i32
    %474 = arith.index_cast %473 : i32 to index
    %475 = memref.load %arg4[%474] : memref<128xf32, #tpu.memory_space<smem>>
    %476 = vector.broadcast %475 : f32 to vector<8x32xf32>
    %477 = arith.mulf %476, %462 : vector<8x32xf32>
    %478 = arith.addf %446, %477 : vector<8x32xf32>
    %c8_i32_231 = arith.constant 8 : i32
    %479 = arith.addi %c8_i32_231, %430 : i32
    %c4_i32_232 = arith.constant 4 : i32
    %480 = arith.muli %479, %c4_i32_232 : i32
    %c2_i32_233 = arith.constant 2 : i32
    %481 = arith.addi %480, %c2_i32_233 : i32
    %482 = arith.index_cast %481 : i32 to index
    %483 = memref.load %arg4[%482] : memref<128xf32, #tpu.memory_space<smem>>
    %484 = vector.broadcast %483 : f32 to vector<8x32xf32>
    %485 = arith.mulf %484, %462 : vector<8x32xf32>
    %486 = arith.addf %453, %485 : vector<8x32xf32>
    %c8_i32_234 = arith.constant 8 : i32
    %487 = arith.addi %c8_i32_234, %430 : i32
    %c4_i32_235 = arith.constant 4 : i32
    %488 = arith.muli %487, %c4_i32_235 : i32
    %c3_i32_236 = arith.constant 3 : i32
    %489 = arith.addi %488, %c3_i32_236 : i32
    %490 = arith.index_cast %489 : i32 to index
    %491 = memref.load %arg4[%490] : memref<128xf32, #tpu.memory_space<smem>>
    %492 = vector.broadcast %491 : f32 to vector<8x32xf32>
    %493 = arith.mulf %492, %462 : vector<8x32xf32>
    %494 = arith.addf %460, %493 : vector<8x32xf32>
    %c0_237 = arith.constant 0 : index
    %c2_238 = arith.constant 2 : index
    %c0_239 = arith.constant 0 : index
    %c0_240 = arith.constant 0 : index
    %495 = vector.load %arg3[%c0_237, %c2_238, %c0_239, %c0_240] : memref<1x4x8x32xf32, #tpu.memory_space<vmem>>, vector<1x1x8x32xf32>
    %496 = vector.shape_cast %495 : vector<1x1x8x32xf32> to vector<8x32xf32>
    %c16_i32_241 = arith.constant 16 : i32
    %497 = arith.addi %c16_i32_241, %430 : i32
    %c4_i32_242 = arith.constant 4 : i32
    %498 = arith.muli %497, %c4_i32_242 : i32
    %c0_i32_243 = arith.constant 0 : i32
    %499 = arith.addi %498, %c0_i32_243 : i32
    %500 = arith.index_cast %499 : i32 to index
    %501 = memref.load %arg4[%500] : memref<128xf32, #tpu.memory_space<smem>>
    %502 = vector.broadcast %501 : f32 to vector<8x32xf32>
    %503 = arith.mulf %502, %496 : vector<8x32xf32>
    %504 = arith.addf %470, %503 : vector<8x32xf32>
    %c16_i32_244 = arith.constant 16 : i32
    %505 = arith.addi %c16_i32_244, %430 : i32
    %c4_i32_245 = arith.constant 4 : i32
    %506 = arith.muli %505, %c4_i32_245 : i32
    %c1_i32_246 = arith.constant 1 : i32
    %507 = arith.addi %506, %c1_i32_246 : i32
    %508 = arith.index_cast %507 : i32 to index
    %509 = memref.load %arg4[%508] : memref<128xf32, #tpu.memory_space<smem>>
    %510 = vector.broadcast %509 : f32 to vector<8x32xf32>
    %511 = arith.mulf %510, %496 : vector<8x32xf32>
    %512 = arith.addf %478, %511 : vector<8x32xf32>
    %c16_i32_247 = arith.constant 16 : i32
    %513 = arith.addi %c16_i32_247, %430 : i32
    %c4_i32_248 = arith.constant 4 : i32
    %514 = arith.muli %513, %c4_i32_248 : i32
    %c2_i32_249 = arith.constant 2 : i32
    %515 = arith.addi %514, %c2_i32_249 : i32
    %516 = arith.index_cast %515 : i32 to index
    %517 = memref.load %arg4[%516] : memref<128xf32, #tpu.memory_space<smem>>
    %518 = vector.broadcast %517 : f32 to vector<8x32xf32>
    %519 = arith.mulf %518, %496 : vector<8x32xf32>
    %520 = arith.addf %486, %519 : vector<8x32xf32>
    %c16_i32_250 = arith.constant 16 : i32
    %521 = arith.addi %c16_i32_250, %430 : i32
    %c4_i32_251 = arith.constant 4 : i32
    %522 = arith.muli %521, %c4_i32_251 : i32
    %c3_i32_252 = arith.constant 3 : i32
    %523 = arith.addi %522, %c3_i32_252 : i32
    %524 = arith.index_cast %523 : i32 to index
    %525 = memref.load %arg4[%524] : memref<128xf32, #tpu.memory_space<smem>>
    %526 = vector.broadcast %525 : f32 to vector<8x32xf32>
    %527 = arith.mulf %526, %496 : vector<8x32xf32>
    %528 = arith.addf %494, %527 : vector<8x32xf32>
    %c0_253 = arith.constant 0 : index
    %c3_254 = arith.constant 3 : index
    %c0_255 = arith.constant 0 : index
    %c0_256 = arith.constant 0 : index
    %529 = vector.load %arg3[%c0_253, %c3_254, %c0_255, %c0_256] : memref<1x4x8x32xf32, #tpu.memory_space<vmem>>, vector<1x1x8x32xf32>
    %530 = vector.shape_cast %529 : vector<1x1x8x32xf32> to vector<8x32xf32>
    %c24_i32_257 = arith.constant 24 : i32
    %531 = arith.addi %c24_i32_257, %430 : i32
    %c4_i32_258 = arith.constant 4 : i32
    %532 = arith.muli %531, %c4_i32_258 : i32
    %c0_i32_259 = arith.constant 0 : i32
    %533 = arith.addi %532, %c0_i32_259 : i32
    %534 = arith.index_cast %533 : i32 to index
    %535 = memref.load %arg4[%534] : memref<128xf32, #tpu.memory_space<smem>>
    %536 = vector.broadcast %535 : f32 to vector<8x32xf32>
    %537 = arith.mulf %536, %530 : vector<8x32xf32>
    %538 = arith.addf %504, %537 : vector<8x32xf32>
    %c24_i32_260 = arith.constant 24 : i32
    %539 = arith.addi %c24_i32_260, %430 : i32
    %c4_i32_261 = arith.constant 4 : i32
    %540 = arith.muli %539, %c4_i32_261 : i32
    %c1_i32_262 = arith.constant 1 : i32
    %541 = arith.addi %540, %c1_i32_262 : i32
    %542 = arith.index_cast %541 : i32 to index
    %543 = memref.load %arg4[%542] : memref<128xf32, #tpu.memory_space<smem>>
    %544 = vector.broadcast %543 : f32 to vector<8x32xf32>
    %545 = arith.mulf %544, %530 : vector<8x32xf32>
    %546 = arith.addf %512, %545 : vector<8x32xf32>
    %c24_i32_263 = arith.constant 24 : i32
    %547 = arith.addi %c24_i32_263, %430 : i32
    %c4_i32_264 = arith.constant 4 : i32
    %548 = arith.muli %547, %c4_i32_264 : i32
    %c2_i32_265 = arith.constant 2 : i32
    %549 = arith.addi %548, %c2_i32_265 : i32
    %550 = arith.index_cast %549 : i32 to index
    %551 = memref.load %arg4[%550] : memref<128xf32, #tpu.memory_space<smem>>
    %552 = vector.broadcast %551 : f32 to vector<8x32xf32>
    %553 = arith.mulf %552, %530 : vector<8x32xf32>
    %554 = arith.addf %520, %553 : vector<8x32xf32>
    %c24_i32_266 = arith.constant 24 : i32
    %555 = arith.addi %c24_i32_266, %430 : i32
    %c4_i32_267 = arith.constant 4 : i32
    %556 = arith.muli %555, %c4_i32_267 : i32
    %c3_i32_268 = arith.constant 3 : i32
    %557 = arith.addi %556, %c3_i32_268 : i32
    %558 = arith.index_cast %557 : i32 to index
    %559 = memref.load %arg4[%558] : memref<128xf32, #tpu.memory_space<smem>>
    %560 = vector.broadcast %559 : f32 to vector<8x32xf32>
    %561 = arith.mulf %560, %530 : vector<8x32xf32>
    %562 = arith.addf %528, %561 : vector<8x32xf32>
    %563 = tpu.concatenate %538, %546, %554, %562 in 1 : vector<8x32xf32>, vector<8x32xf32>, vector<8x32xf32>, vector<8x32xf32> -> vector<8x128xf32>
    %c0_269 = arith.constant 0 : index
    %c0_270 = arith.constant 0 : index
    %564 = vector.load %arg6[%c0_269, %c0_270] : memref<128x128xf32, #tpu.memory_space<vmem>>, vector<128x128xf32>
    %cst_271 = arith.constant dense<0.000000e+00> : vector<8x128xf32>
    %565 = tpu.matmul %563, %564, %cst_271 {dimension_numbers = #tpu.dot_dimension_numbers<[1], [0], [0], [1], [0, 0, 1, 1], [], []>, precision = #tpu.contract_precision<fp32>} : vector<8x128xf32>, vector<128x128xf32>, vector<8x128xf32> -> vector<8x128xf32>
    %566 = arith.index_cast %430 : i32 to index
    %567 = memref.load %arg5[%566] : memref<8xf32, #tpu.memory_space<smem>>
    %568 = vector.broadcast %567 : f32 to vector<8x128xf32>
    %569 = arith.addf %565, %568 : vector<8x128xf32>
    %c0_272 = arith.constant 0 : index
    %c3_273 = arith.constant 3 : index
    %c0_274 = arith.constant 0 : index
    %c0_275 = arith.constant 0 : index
    %570 = vector.load %arg7[%c0_272, %c3_273, %c0_274, %c0_275] : memref<1x8x8x128xf32, #tpu.memory_space<vmem>>, vector<1x1x8x128xf32>
    %571 = vector.shape_cast %570 : vector<1x1x8x128xf32> to vector<8x128xf32>
    %572 = vector.shape_cast %569 : vector<8x128xf32> to vector<1x1x8x128xf32>
    tpu.vector_store %arg7[%c0_272, %c3_273, %c0_274, %c0_275], %572 {strides = array<i32>} : memref<1x8x8x128xf32, #tpu.memory_space<vmem>>, vector<1x1x8x128xf32>,
    %c4_i32_276 = arith.constant 4 : i32
    %573 = arith.addi %0, %c4_i32_276 : i32
    %c0_277 = arith.constant 0 : index
    %c0_278 = arith.constant 0 : index
    %c0_279 = arith.constant 0 : index
    %c0_280 = arith.constant 0 : index
    %574 = vector.load %arg3[%c0_277, %c0_278, %c0_279, %c0_280] : memref<1x4x8x32xf32, #tpu.memory_space<vmem>>, vector<1x1x8x32xf32>
    %575 = vector.shape_cast %574 : vector<1x1x8x32xf32> to vector<8x32xf32>
    %c0_i32_281 = arith.constant 0 : i32
    %576 = arith.addi %c0_i32_281, %573 : i32
    %c4_i32_282 = arith.constant 4 : i32
    %577 = arith.muli %576, %c4_i32_282 : i32
    %c0_i32_283 = arith.constant 0 : i32
    %578 = arith.addi %577, %c0_i32_283 : i32
    %579 = arith.index_cast %578 : i32 to index
    %580 = memref.load %arg4[%579] : memref<128xf32, #tpu.memory_space<smem>>
    %581 = vector.broadcast %580 : f32 to vector<8x32xf32>
    %582 = arith.mulf %581, %575 : vector<8x32xf32>
    %c0_i32_284 = arith.constant 0 : i32
    %583 = arith.addi %c0_i32_284, %573 : i32
    %c4_i32_285 = arith.constant 4 : i32
    %584 = arith.muli %583, %c4_i32_285 : i32
    %c1_i32_286 = arith.constant 1 : i32
    %585 = arith.addi %584, %c1_i32_286 : i32
    %586 = arith.index_cast %585 : i32 to index
    %587 = memref.load %arg4[%586] : memref<128xf32, #tpu.memory_space<smem>>
    %588 = vector.broadcast %587 : f32 to vector<8x32xf32>
    %589 = arith.mulf %588, %575 : vector<8x32xf32>
    %c0_i32_287 = arith.constant 0 : i32
    %590 = arith.addi %c0_i32_287, %573 : i32
    %c4_i32_288 = arith.constant 4 : i32
    %591 = arith.muli %590, %c4_i32_288 : i32
    %c2_i32_289 = arith.constant 2 : i32
    %592 = arith.addi %591, %c2_i32_289 : i32
    %593 = arith.index_cast %592 : i32 to index
    %594 = memref.load %arg4[%593] : memref<128xf32, #tpu.memory_space<smem>>
    %595 = vector.broadcast %594 : f32 to vector<8x32xf32>
    %596 = arith.mulf %595, %575 : vector<8x32xf32>
    %c0_i32_290 = arith.constant 0 : i32
    %597 = arith.addi %c0_i32_290, %573 : i32
    %c4_i32_291 = arith.constant 4 : i32
    %598 = arith.muli %597, %c4_i32_291 : i32
    %c3_i32_292 = arith.constant 3 : i32
    %599 = arith.addi %598, %c3_i32_292 : i32
    %600 = arith.index_cast %599 : i32 to index
    %601 = memref.load %arg4[%600] : memref<128xf32, #tpu.memory_space<smem>>
    %602 = vector.broadcast %601 : f32 to vector<8x32xf32>
    %603 = arith.mulf %602, %575 : vector<8x32xf32>
    %c0_293 = arith.constant 0 : index
    %c1_294 = arith.constant 1 : index
    %c0_295 = arith.constant 0 : index
    %c0_296 = arith.constant 0 : index
    %604 = vector.load %arg3[%c0_293, %c1_294, %c0_295, %c0_296] : memref<1x4x8x32xf32, #tpu.memory_space<vmem>>, vector<1x1x8x32xf32>
    %605 = vector.shape_cast %604 : vector<1x1x8x32xf32> to vector<8x32xf32>
    %c8_i32_297 = arith.constant 8 : i32
    %606 = arith.addi %c8_i32_297, %573 : i32
    %c4_i32_298 = arith.constant 4 : i32
    %607 = arith.muli %606, %c4_i32_298 : i32
    %c0_i32_299 = arith.constant 0 : i32
    %608 = arith.addi %607, %c0_i32_299 : i32
    %609 = arith.index_cast %608 : i32 to index
    %610 = memref.load %arg4[%609] : memref<128xf32, #tpu.memory_space<smem>>
    %611 = vector.broadcast %610 : f32 to vector<8x32xf32>
    %612 = arith.mulf %611, %605 : vector<8x32xf32>
    %613 = arith.addf %582, %612 : vector<8x32xf32>
    %c8_i32_300 = arith.constant 8 : i32
    %614 = arith.addi %c8_i32_300, %573 : i32
    %c4_i32_301 = arith.constant 4 : i32
    %615 = arith.muli %614, %c4_i32_301 : i32
    %c1_i32_302 = arith.constant 1 : i32
    %616 = arith.addi %615, %c1_i32_302 : i32
    %617 = arith.index_cast %616 : i32 to index
    %618 = memref.load %arg4[%617] : memref<128xf32, #tpu.memory_space<smem>>
    %619 = vector.broadcast %618 : f32 to vector<8x32xf32>
    %620 = arith.mulf %619, %605 : vector<8x32xf32>
    %621 = arith.addf %589, %620 : vector<8x32xf32>
    %c8_i32_303 = arith.constant 8 : i32
    %622 = arith.addi %c8_i32_303, %573 : i32
    %c4_i32_304 = arith.constant 4 : i32
    %623 = arith.muli %622, %c4_i32_304 : i32
    %c2_i32_305 = arith.constant 2 : i32
    %624 = arith.addi %623, %c2_i32_305 : i32
    %625 = arith.index_cast %624 : i32 to index
    %626 = memref.load %arg4[%625] : memref<128xf32, #tpu.memory_space<smem>>
    %627 = vector.broadcast %626 : f32 to vector<8x32xf32>
    %628 = arith.mulf %627, %605 : vector<8x32xf32>
    %629 = arith.addf %596, %628 : vector<8x32xf32>
    %c8_i32_306 = arith.constant 8 : i32
    %630 = arith.addi %c8_i32_306, %573 : i32
    %c4_i32_307 = arith.constant 4 : i32
    %631 = arith.muli %630, %c4_i32_307 : i32
    %c3_i32_308 = arith.constant 3 : i32
    %632 = arith.addi %631, %c3_i32_308 : i32
    %633 = arith.index_cast %632 : i32 to index
    %634 = memref.load %arg4[%633] : memref<128xf32, #tpu.memory_space<smem>>
    %635 = vector.broadcast %634 : f32 to vector<8x32xf32>
    %636 = arith.mulf %635, %605 : vector<8x32xf32>
    %637 = arith.addf %603, %636 : vector<8x32xf32>
    %c0_309 = arith.constant 0 : index
    %c2_310 = arith.constant 2 : index
    %c0_311 = arith.constant 0 : index
    %c0_312 = arith.constant 0 : index
    %638 = vector.load %arg3[%c0_309, %c2_310, %c0_311, %c0_312] : memref<1x4x8x32xf32, #tpu.memory_space<vmem>>, vector<1x1x8x32xf32>
    %639 = vector.shape_cast %638 : vector<1x1x8x32xf32> to vector<8x32xf32>
    %c16_i32_313 = arith.constant 16 : i32
    %640 = arith.addi %c16_i32_313, %573 : i32
    %c4_i32_314 = arith.constant 4 : i32
    %641 = arith.muli %640, %c4_i32_314 : i32
    %c0_i32_315 = arith.constant 0 : i32
    %642 = arith.addi %641, %c0_i32_315 : i32
    %643 = arith.index_cast %642 : i32 to index
    %644 = memref.load %arg4[%643] : memref<128xf32, #tpu.memory_space<smem>>
    %645 = vector.broadcast %644 : f32 to vector<8x32xf32>
    %646 = arith.mulf %645, %639 : vector<8x32xf32>
    %647 = arith.addf %613, %646 : vector<8x32xf32>
    %c16_i32_316 = arith.constant 16 : i32
    %648 = arith.addi %c16_i32_316, %573 : i32
    %c4_i32_317 = arith.constant 4 : i32
    %649 = arith.muli %648, %c4_i32_317 : i32
    %c1_i32_318 = arith.constant 1 : i32
    %650 = arith.addi %649, %c1_i32_318 : i32
    %651 = arith.index_cast %650 : i32 to index
    %652 = memref.load %arg4[%651] : memref<128xf32, #tpu.memory_space<smem>>
    %653 = vector.broadcast %652 : f32 to vector<8x32xf32>
    %654 = arith.mulf %653, %639 : vector<8x32xf32>
    %655 = arith.addf %621, %654 : vector<8x32xf32>
    %c16_i32_319 = arith.constant 16 : i32
    %656 = arith.addi %c16_i32_319, %573 : i32
    %c4_i32_320 = arith.constant 4 : i32
    %657 = arith.muli %656, %c4_i32_320 : i32
    %c2_i32_321 = arith.constant 2 : i32
    %658 = arith.addi %657, %c2_i32_321 : i32
    %659 = arith.index_cast %658 : i32 to index
    %660 = memref.load %arg4[%659] : memref<128xf32, #tpu.memory_space<smem>>
    %661 = vector.broadcast %660 : f32 to vector<8x32xf32>
    %662 = arith.mulf %661, %639 : vector<8x32xf32>
    %663 = arith.addf %629, %662 : vector<8x32xf32>
    %c16_i32_322 = arith.constant 16 : i32
    %664 = arith.addi %c16_i32_322, %573 : i32
    %c4_i32_323 = arith.constant 4 : i32
    %665 = arith.muli %664, %c4_i32_323 : i32
    %c3_i32_324 = arith.constant 3 : i32
    %666 = arith.addi %665, %c3_i32_324 : i32
    %667 = arith.index_cast %666 : i32 to index
    %668 = memref.load %arg4[%667] : memref<128xf32, #tpu.memory_space<smem>>
    %669 = vector.broadcast %668 : f32 to vector<8x32xf32>
    %670 = arith.mulf %669, %639 : vector<8x32xf32>
    %671 = arith.addf %637, %670 : vector<8x32xf32>
    %c0_325 = arith.constant 0 : index
    %c3_326 = arith.constant 3 : index
    %c0_327 = arith.constant 0 : index
    %c0_328 = arith.constant 0 : index
    %672 = vector.load %arg3[%c0_325, %c3_326, %c0_327, %c0_328] : memref<1x4x8x32xf32, #tpu.memory_space<vmem>>, vector<1x1x8x32xf32>
    %673 = vector.shape_cast %672 : vector<1x1x8x32xf32> to vector<8x32xf32>
    %c24_i32_329 = arith.constant 24 : i32
    %674 = arith.addi %c24_i32_329, %573 : i32
    %c4_i32_330 = arith.constant 4 : i32
    %675 = arith.muli %674, %c4_i32_330 : i32
    %c0_i32_331 = arith.constant 0 : i32
    %676 = arith.addi %675, %c0_i32_331 : i32
    %677 = arith.index_cast %676 : i32 to index
    %678 = memref.load %arg4[%677] : memref<128xf32, #tpu.memory_space<smem>>
    %679 = vector.broadcast %678 : f32 to vector<8x32xf32>
    %680 = arith.mulf %679, %673 : vector<8x32xf32>
    %681 = arith.addf %647, %680 : vector<8x32xf32>
    %c24_i32_332 = arith.constant 24 : i32
    %682 = arith.addi %c24_i32_332, %573 : i32
    %c4_i32_333 = arith.constant 4 : i32
    %683 = arith.muli %682, %c4_i32_333 : i32
    %c1_i32_334 = arith.constant 1 : i32
    %684 = arith.addi %683, %c1_i32_334 : i32
    %685 = arith.index_cast %684 : i32 to index
    %686 = memref.load %arg4[%685] : memref<128xf32, #tpu.memory_space<smem>>
    %687 = vector.broadcast %686 : f32 to vector<8x32xf32>
    %688 = arith.mulf %687, %673 : vector<8x32xf32>
    %689 = arith.addf %655, %688 : vector<8x32xf32>
    %c24_i32_335 = arith.constant 24 : i32
    %690 = arith.addi %c24_i32_335, %573 : i32
    %c4_i32_336 = arith.constant 4 : i32
    %691 = arith.muli %690, %c4_i32_336 : i32
    %c2_i32_337 = arith.constant 2 : i32
    %692 = arith.addi %691, %c2_i32_337 : i32
    %693 = arith.index_cast %692 : i32 to index
    %694 = memref.load %arg4[%693] : memref<128xf32, #tpu.memory_space<smem>>
    %695 = vector.broadcast %694 : f32 to vector<8x32xf32>
    %696 = arith.mulf %695, %673 : vector<8x32xf32>
    %697 = arith.addf %663, %696 : vector<8x32xf32>
    %c24_i32_338 = arith.constant 24 : i32
    %698 = arith.addi %c24_i32_338, %573 : i32
    %c4_i32_339 = arith.constant 4 : i32
    %699 = arith.muli %698, %c4_i32_339 : i32
    %c3_i32_340 = arith.constant 3 : i32
    %700 = arith.addi %699, %c3_i32_340 : i32
    %701 = arith.index_cast %700 : i32 to index
    %702 = memref.load %arg4[%701] : memref<128xf32, #tpu.memory_space<smem>>
    %703 = vector.broadcast %702 : f32 to vector<8x32xf32>
    %704 = arith.mulf %703, %673 : vector<8x32xf32>
    %705 = arith.addf %671, %704 : vector<8x32xf32>
    %706 = tpu.concatenate %681, %689, %697, %705 in 1 : vector<8x32xf32>, vector<8x32xf32>, vector<8x32xf32>, vector<8x32xf32> -> vector<8x128xf32>
    %c0_341 = arith.constant 0 : index
    %c0_342 = arith.constant 0 : index
    %707 = vector.load %arg6[%c0_341, %c0_342] : memref<128x128xf32, #tpu.memory_space<vmem>>, vector<128x128xf32>
    %cst_343 = arith.constant dense<0.000000e+00> : vector<8x128xf32>
    %708 = tpu.matmul %706, %707, %cst_343 {dimension_numbers = #tpu.dot_dimension_numbers<[1], [0], [0], [1], [0, 0, 1, 1], [], []>, precision = #tpu.contract_precision<fp32>} : vector<8x128xf32>, vector<128x128xf32>, vector<8x128xf32> -> vector<8x128xf32>
    %709 = arith.index_cast %573 : i32 to index
    %710 = memref.load %arg5[%709] : memref<8xf32, #tpu.memory_space<smem>>
    %711 = vector.broadcast %710 : f32 to vector<8x128xf32>
    %712 = arith.addf %708, %711 : vector<8x128xf32>
    %c0_344 = arith.constant 0 : index
    %c4 = arith.constant 4 : index
    %c0_345 = arith.constant 0 : index
    %c0_346 = arith.constant 0 : index
    %713 = vector.load %arg7[%c0_344, %c4, %c0_345, %c0_346] : memref<1x8x8x128xf32, #tpu.memory_space<vmem>>, vector<1x1x8x128xf32>
    %714 = vector.shape_cast %713 : vector<1x1x8x128xf32> to vector<8x128xf32>
    %715 = vector.shape_cast %712 : vector<8x128xf32> to vector<1x1x8x128xf32>
    tpu.vector_store %arg7[%c0_344, %c4, %c0_345, %c0_346], %715 {strides = array<i32>} : memref<1x8x8x128xf32, #tpu.memory_space<vmem>>, vector<1x1x8x128xf32>,
    %c5_i32 = arith.constant 5 : i32
    %716 = arith.addi %0, %c5_i32 : i32
    %c0_347 = arith.constant 0 : index
    %c0_348 = arith.constant 0 : index
    %c0_349 = arith.constant 0 : index
    %c0_350 = arith.constant 0 : index
    %717 = vector.load %arg3[%c0_347, %c0_348, %c0_349, %c0_350] : memref<1x4x8x32xf32, #tpu.memory_space<vmem>>, vector<1x1x8x32xf32>
    %718 = vector.shape_cast %717 : vector<1x1x8x32xf32> to vector<8x32xf32>
    %c0_i32_351 = arith.constant 0 : i32
    %719 = arith.addi %c0_i32_351, %716 : i32
    %c4_i32_352 = arith.constant 4 : i32
    %720 = arith.muli %719, %c4_i32_352 : i32
    %c0_i32_353 = arith.constant 0 : i32
    %721 = arith.addi %720, %c0_i32_353 : i32
    %722 = arith.index_cast %721 : i32 to index
    %723 = memref.load %arg4[%722] : memref<128xf32, #tpu.memory_space<smem>>
    %724 = vector.broadcast %723 : f32 to vector<8x32xf32>
    %725 = arith.mulf %724, %718 : vector<8x32xf32>
    %c0_i32_354 = arith.constant 0 : i32
    %726 = arith.addi %c0_i32_354, %716 : i32
    %c4_i32_355 = arith.constant 4 : i32
    %727 = arith.muli %726, %c4_i32_355 : i32
    %c1_i32_356 = arith.constant 1 : i32
    %728 = arith.addi %727, %c1_i32_356 : i32
    %729 = arith.index_cast %728 : i32 to index
    %730 = memref.load %arg4[%729] : memref<128xf32, #tpu.memory_space<smem>>
    %731 = vector.broadcast %730 : f32 to vector<8x32xf32>
    %732 = arith.mulf %731, %718 : vector<8x32xf32>
    %c0_i32_357 = arith.constant 0 : i32
    %733 = arith.addi %c0_i32_357, %716 : i32
    %c4_i32_358 = arith.constant 4 : i32
    %734 = arith.muli %733, %c4_i32_358 : i32
    %c2_i32_359 = arith.constant 2 : i32
    %735 = arith.addi %734, %c2_i32_359 : i32
    %736 = arith.index_cast %735 : i32 to index
    %737 = memref.load %arg4[%736] : memref<128xf32, #tpu.memory_space<smem>>
    %738 = vector.broadcast %737 : f32 to vector<8x32xf32>
    %739 = arith.mulf %738, %718 : vector<8x32xf32>
    %c0_i32_360 = arith.constant 0 : i32
    %740 = arith.addi %c0_i32_360, %716 : i32
    %c4_i32_361 = arith.constant 4 : i32
    %741 = arith.muli %740, %c4_i32_361 : i32
    %c3_i32_362 = arith.constant 3 : i32
    %742 = arith.addi %741, %c3_i32_362 : i32
    %743 = arith.index_cast %742 : i32 to index
    %744 = memref.load %arg4[%743] : memref<128xf32, #tpu.memory_space<smem>>
    %745 = vector.broadcast %744 : f32 to vector<8x32xf32>
    %746 = arith.mulf %745, %718 : vector<8x32xf32>
    %c0_363 = arith.constant 0 : index
    %c1_364 = arith.constant 1 : index
    %c0_365 = arith.constant 0 : index
    %c0_366 = arith.constant 0 : index
    %747 = vector.load %arg3[%c0_363, %c1_364, %c0_365, %c0_366] : memref<1x4x8x32xf32, #tpu.memory_space<vmem>>, vector<1x1x8x32xf32>
    %748 = vector.shape_cast %747 : vector<1x1x8x32xf32> to vector<8x32xf32>
    %c8_i32_367 = arith.constant 8 : i32
    %749 = arith.addi %c8_i32_367, %716 : i32
    %c4_i32_368 = arith.constant 4 : i32
    %750 = arith.muli %749, %c4_i32_368 : i32
    %c0_i32_369 = arith.constant 0 : i32
    %751 = arith.addi %750, %c0_i32_369 : i32
    %752 = arith.index_cast %751 : i32 to index
    %753 = memref.load %arg4[%752] : memref<128xf32, #tpu.memory_space<smem>>
    %754 = vector.broadcast %753 : f32 to vector<8x32xf32>
    %755 = arith.mulf %754, %748 : vector<8x32xf32>
    %756 = arith.addf %725, %755 : vector<8x32xf32>
    %c8_i32_370 = arith.constant 8 : i32
    %757 = arith.addi %c8_i32_370, %716 : i32
    %c4_i32_371 = arith.constant 4 : i32
    %758 = arith.muli %757, %c4_i32_371 : i32
    %c1_i32_372 = arith.constant 1 : i32
    %759 = arith.addi %758, %c1_i32_372 : i32
    %760 = arith.index_cast %759 : i32 to index
    %761 = memref.load %arg4[%760] : memref<128xf32, #tpu.memory_space<smem>>
    %762 = vector.broadcast %761 : f32 to vector<8x32xf32>
    %763 = arith.mulf %762, %748 : vector<8x32xf32>
    %764 = arith.addf %732, %763 : vector<8x32xf32>
    %c8_i32_373 = arith.constant 8 : i32
    %765 = arith.addi %c8_i32_373, %716 : i32
    %c4_i32_374 = arith.constant 4 : i32
    %766 = arith.muli %765, %c4_i32_374 : i32
    %c2_i32_375 = arith.constant 2 : i32
    %767 = arith.addi %766, %c2_i32_375 : i32
    %768 = arith.index_cast %767 : i32 to index
    %769 = memref.load %arg4[%768] : memref<128xf32, #tpu.memory_space<smem>>
    %770 = vector.broadcast %769 : f32 to vector<8x32xf32>
    %771 = arith.mulf %770, %748 : vector<8x32xf32>
    %772 = arith.addf %739, %771 : vector<8x32xf32>
    %c8_i32_376 = arith.constant 8 : i32
    %773 = arith.addi %c8_i32_376, %716 : i32
    %c4_i32_377 = arith.constant 4 : i32
    %774 = arith.muli %773, %c4_i32_377 : i32
    %c3_i32_378 = arith.constant 3 : i32
    %775 = arith.addi %774, %c3_i32_378 : i32
    %776 = arith.index_cast %775 : i32 to index
    %777 = memref.load %arg4[%776] : memref<128xf32, #tpu.memory_space<smem>>
    %778 = vector.broadcast %777 : f32 to vector<8x32xf32>
    %779 = arith.mulf %778, %748 : vector<8x32xf32>
    %780 = arith.addf %746, %779 : vector<8x32xf32>
    %c0_379 = arith.constant 0 : index
    %c2_380 = arith.constant 2 : index
    %c0_381 = arith.constant 0 : index
    %c0_382 = arith.constant 0 : index
    %781 = vector.load %arg3[%c0_379, %c2_380, %c0_381, %c0_382] : memref<1x4x8x32xf32, #tpu.memory_space<vmem>>, vector<1x1x8x32xf32>
    %782 = vector.shape_cast %781 : vector<1x1x8x32xf32> to vector<8x32xf32>
    %c16_i32_383 = arith.constant 16 : i32
    %783 = arith.addi %c16_i32_383, %716 : i32
    %c4_i32_384 = arith.constant 4 : i32
    %784 = arith.muli %783, %c4_i32_384 : i32
    %c0_i32_385 = arith.constant 0 : i32
    %785 = arith.addi %784, %c0_i32_385 : i32
    %786 = arith.index_cast %785 : i32 to index
    %787 = memref.load %arg4[%786] : memref<128xf32, #tpu.memory_space<smem>>
    %788 = vector.broadcast %787 : f32 to vector<8x32xf32>
    %789 = arith.mulf %788, %782 : vector<8x32xf32>
    %790 = arith.addf %756, %789 : vector<8x32xf32>
    %c16_i32_386 = arith.constant 16 : i32
    %791 = arith.addi %c16_i32_386, %716 : i32
    %c4_i32_387 = arith.constant 4 : i32
    %792 = arith.muli %791, %c4_i32_387 : i32
    %c1_i32_388 = arith.constant 1 : i32
    %793 = arith.addi %792, %c1_i32_388 : i32
    %794 = arith.index_cast %793 : i32 to index
    %795 = memref.load %arg4[%794] : memref<128xf32, #tpu.memory_space<smem>>
    %796 = vector.broadcast %795 : f32 to vector<8x32xf32>
    %797 = arith.mulf %796, %782 : vector<8x32xf32>
    %798 = arith.addf %764, %797 : vector<8x32xf32>
    %c16_i32_389 = arith.constant 16 : i32
    %799 = arith.addi %c16_i32_389, %716 : i32
    %c4_i32_390 = arith.constant 4 : i32
    %800 = arith.muli %799, %c4_i32_390 : i32
    %c2_i32_391 = arith.constant 2 : i32
    %801 = arith.addi %800, %c2_i32_391 : i32
    %802 = arith.index_cast %801 : i32 to index
    %803 = memref.load %arg4[%802] : memref<128xf32, #tpu.memory_space<smem>>
    %804 = vector.broadcast %803 : f32 to vector<8x32xf32>
    %805 = arith.mulf %804, %782 : vector<8x32xf32>
    %806 = arith.addf %772, %805 : vector<8x32xf32>
    %c16_i32_392 = arith.constant 16 : i32
    %807 = arith.addi %c16_i32_392, %716 : i32
    %c4_i32_393 = arith.constant 4 : i32
    %808 = arith.muli %807, %c4_i32_393 : i32
    %c3_i32_394 = arith.constant 3 : i32
    %809 = arith.addi %808, %c3_i32_394 : i32
    %810 = arith.index_cast %809 : i32 to index
    %811 = memref.load %arg4[%810] : memref<128xf32, #tpu.memory_space<smem>>
    %812 = vector.broadcast %811 : f32 to vector<8x32xf32>
    %813 = arith.mulf %812, %782 : vector<8x32xf32>
    %814 = arith.addf %780, %813 : vector<8x32xf32>
    %c0_395 = arith.constant 0 : index
    %c3_396 = arith.constant 3 : index
    %c0_397 = arith.constant 0 : index
    %c0_398 = arith.constant 0 : index
    %815 = vector.load %arg3[%c0_395, %c3_396, %c0_397, %c0_398] : memref<1x4x8x32xf32, #tpu.memory_space<vmem>>, vector<1x1x8x32xf32>
    %816 = vector.shape_cast %815 : vector<1x1x8x32xf32> to vector<8x32xf32>
    %c24_i32_399 = arith.constant 24 : i32
    %817 = arith.addi %c24_i32_399, %716 : i32
    %c4_i32_400 = arith.constant 4 : i32
    %818 = arith.muli %817, %c4_i32_400 : i32
    %c0_i32_401 = arith.constant 0 : i32
    %819 = arith.addi %818, %c0_i32_401 : i32
    %820 = arith.index_cast %819 : i32 to index
    %821 = memref.load %arg4[%820] : memref<128xf32, #tpu.memory_space<smem>>
    %822 = vector.broadcast %821 : f32 to vector<8x32xf32>
    %823 = arith.mulf %822, %816 : vector<8x32xf32>
    %824 = arith.addf %790, %823 : vector<8x32xf32>
    %c24_i32_402 = arith.constant 24 : i32
    %825 = arith.addi %c24_i32_402, %716 : i32
    %c4_i32_403 = arith.constant 4 : i32
    %826 = arith.muli %825, %c4_i32_403 : i32
    %c1_i32_404 = arith.constant 1 : i32
    %827 = arith.addi %826, %c1_i32_404 : i32
    %828 = arith.index_cast %827 : i32 to index
    %829 = memref.load %arg4[%828] : memref<128xf32, #tpu.memory_space<smem>>
    %830 = vector.broadcast %829 : f32 to vector<8x32xf32>
    %831 = arith.mulf %830, %816 : vector<8x32xf32>
    %832 = arith.addf %798, %831 : vector<8x32xf32>
    %c24_i32_405 = arith.constant 24 : i32
    %833 = arith.addi %c24_i32_405, %716 : i32
    %c4_i32_406 = arith.constant 4 : i32
    %834 = arith.muli %833, %c4_i32_406 : i32
    %c2_i32_407 = arith.constant 2 : i32
    %835 = arith.addi %834, %c2_i32_407 : i32
    %836 = arith.index_cast %835 : i32 to index
    %837 = memref.load %arg4[%836] : memref<128xf32, #tpu.memory_space<smem>>
    %838 = vector.broadcast %837 : f32 to vector<8x32xf32>
    %839 = arith.mulf %838, %816 : vector<8x32xf32>
    %840 = arith.addf %806, %839 : vector<8x32xf32>
    %c24_i32_408 = arith.constant 24 : i32
    %841 = arith.addi %c24_i32_408, %716 : i32
    %c4_i32_409 = arith.constant 4 : i32
    %842 = arith.muli %841, %c4_i32_409 : i32
    %c3_i32_410 = arith.constant 3 : i32
    %843 = arith.addi %842, %c3_i32_410 : i32
    %844 = arith.index_cast %843 : i32 to index
    %845 = memref.load %arg4[%844] : memref<128xf32, #tpu.memory_space<smem>>
    %846 = vector.broadcast %845 : f32 to vector<8x32xf32>
    %847 = arith.mulf %846, %816 : vector<8x32xf32>
    %848 = arith.addf %814, %847 : vector<8x32xf32>
    %849 = tpu.concatenate %824, %832, %840, %848 in 1 : vector<8x32xf32>, vector<8x32xf32>, vector<8x32xf32>, vector<8x32xf32> -> vector<8x128xf32>
    %c0_411 = arith.constant 0 : index
    %c0_412 = arith.constant 0 : index
    %850 = vector.load %arg6[%c0_411, %c0_412] : memref<128x128xf32, #tpu.memory_space<vmem>>, vector<128x128xf32>
    %cst_413 = arith.constant dense<0.000000e+00> : vector<8x128xf32>
    %851 = tpu.matmul %849, %850, %cst_413 {dimension_numbers = #tpu.dot_dimension_numbers<[1], [0], [0], [1], [0, 0, 1, 1], [], []>, precision = #tpu.contract_precision<fp32>} : vector<8x128xf32>, vector<128x128xf32>, vector<8x128xf32> -> vector<8x128xf32>
    %852 = arith.index_cast %716 : i32 to index
    %853 = memref.load %arg5[%852] : memref<8xf32, #tpu.memory_space<smem>>
    %854 = vector.broadcast %853 : f32 to vector<8x128xf32>
    %855 = arith.addf %851, %854 : vector<8x128xf32>
    %c0_414 = arith.constant 0 : index
    %c5 = arith.constant 5 : index
    %c0_415 = arith.constant 0 : index
    %c0_416 = arith.constant 0 : index
    %856 = vector.load %arg7[%c0_414, %c5, %c0_415, %c0_416] : memref<1x8x8x128xf32, #tpu.memory_space<vmem>>, vector<1x1x8x128xf32>
    %857 = vector.shape_cast %856 : vector<1x1x8x128xf32> to vector<8x128xf32>
    %858 = vector.shape_cast %855 : vector<8x128xf32> to vector<1x1x8x128xf32>
    tpu.vector_store %arg7[%c0_414, %c5, %c0_415, %c0_416], %858 {strides = array<i32>} : memref<1x8x8x128xf32, #tpu.memory_space<vmem>>, vector<1x1x8x128xf32>,
    %c6_i32 = arith.constant 6 : i32
    %859 = arith.addi %0, %c6_i32 : i32
    %c0_417 = arith.constant 0 : index
    %c0_418 = arith.constant 0 : index
    %c0_419 = arith.constant 0 : index
    %c0_420 = arith.constant 0 : index
    %860 = vector.load %arg3[%c0_417, %c0_418, %c0_419, %c0_420] : memref<1x4x8x32xf32, #tpu.memory_space<vmem>>, vector<1x1x8x32xf32>
    %861 = vector.shape_cast %860 : vector<1x1x8x32xf32> to vector<8x32xf32>
    %c0_i32_421 = arith.constant 0 : i32
    %862 = arith.addi %c0_i32_421, %859 : i32
    %c4_i32_422 = arith.constant 4 : i32
    %863 = arith.muli %862, %c4_i32_422 : i32
    %c0_i32_423 = arith.constant 0 : i32
    %864 = arith.addi %863, %c0_i32_423 : i32
    %865 = arith.index_cast %864 : i32 to index
    %866 = memref.load %arg4[%865] : memref<128xf32, #tpu.memory_space<smem>>
    %867 = vector.broadcast %866 : f32 to vector<8x32xf32>
    %868 = arith.mulf %867, %861 : vector<8x32xf32>
    %c0_i32_424 = arith.constant 0 : i32
    %869 = arith.addi %c0_i32_424, %859 : i32
    %c4_i32_425 = arith.constant 4 : i32
    %870 = arith.muli %869, %c4_i32_425 : i32
    %c1_i32_426 = arith.constant 1 : i32
    %871 = arith.addi %870, %c1_i32_426 : i32
    %872 = arith.index_cast %871 : i32 to index
    %873 = memref.load %arg4[%872] : memref<128xf32, #tpu.memory_space<smem>>
    %874 = vector.broadcast %873 : f32 to vector<8x32xf32>
    %875 = arith.mulf %874, %861 : vector<8x32xf32>
    %c0_i32_427 = arith.constant 0 : i32
    %876 = arith.addi %c0_i32_427, %859 : i32
    %c4_i32_428 = arith.constant 4 : i32
    %877 = arith.muli %876, %c4_i32_428 : i32
    %c2_i32_429 = arith.constant 2 : i32
    %878 = arith.addi %877, %c2_i32_429 : i32
    %879 = arith.index_cast %878 : i32 to index
    %880 = memref.load %arg4[%879] : memref<128xf32, #tpu.memory_space<smem>>
    %881 = vector.broadcast %880 : f32 to vector<8x32xf32>
    %882 = arith.mulf %881, %861 : vector<8x32xf32>
    %c0_i32_430 = arith.constant 0 : i32
    %883 = arith.addi %c0_i32_430, %859 : i32
    %c4_i32_431 = arith.constant 4 : i32
    %884 = arith.muli %883, %c4_i32_431 : i32
    %c3_i32_432 = arith.constant 3 : i32
    %885 = arith.addi %884, %c3_i32_432 : i32
    %886 = arith.index_cast %885 : i32 to index
    %887 = memref.load %arg4[%886] : memref<128xf32, #tpu.memory_space<smem>>
    %888 = vector.broadcast %887 : f32 to vector<8x32xf32>
    %889 = arith.mulf %888, %861 : vector<8x32xf32>
    %c0_433 = arith.constant 0 : index
    %c1_434 = arith.constant 1 : index
    %c0_435 = arith.constant 0 : index
    %c0_436 = arith.constant 0 : index
    %890 = vector.load %arg3[%c0_433, %c1_434, %c0_435, %c0_436] : memref<1x4x8x32xf32, #tpu.memory_space<vmem>>, vector<1x1x8x32xf32>
    %891 = vector.shape_cast %890 : vector<1x1x8x32xf32> to vector<8x32xf32>
    %c8_i32_437 = arith.constant 8 : i32
    %892 = arith.addi %c8_i32_437, %859 : i32
    %c4_i32_438 = arith.constant 4 : i32
    %893 = arith.muli %892, %c4_i32_438 : i32
    %c0_i32_439 = arith.constant 0 : i32
    %894 = arith.addi %893, %c0_i32_439 : i32
    %895 = arith.index_cast %894 : i32 to index
    %896 = memref.load %arg4[%895] : memref<128xf32, #tpu.memory_space<smem>>
    %897 = vector.broadcast %896 : f32 to vector<8x32xf32>
    %898 = arith.mulf %897, %891 : vector<8x32xf32>
    %899 = arith.addf %868, %898 : vector<8x32xf32>
    %c8_i32_440 = arith.constant 8 : i32
    %900 = arith.addi %c8_i32_440, %859 : i32
    %c4_i32_441 = arith.constant 4 : i32
    %901 = arith.muli %900, %c4_i32_441 : i32
    %c1_i32_442 = arith.constant 1 : i32
    %902 = arith.addi %901, %c1_i32_442 : i32
    %903 = arith.index_cast %902 : i32 to index
    %904 = memref.load %arg4[%903] : memref<128xf32, #tpu.memory_space<smem>>
    %905 = vector.broadcast %904 : f32 to vector<8x32xf32>
    %906 = arith.mulf %905, %891 : vector<8x32xf32>
    %907 = arith.addf %875, %906 : vector<8x32xf32>
    %c8_i32_443 = arith.constant 8 : i32
    %908 = arith.addi %c8_i32_443, %859 : i32
    %c4_i32_444 = arith.constant 4 : i32
    %909 = arith.muli %908, %c4_i32_444 : i32
    %c2_i32_445 = arith.constant 2 : i32
    %910 = arith.addi %909, %c2_i32_445 : i32
    %911 = arith.index_cast %910 : i32 to index
    %912 = memref.load %arg4[%911] : memref<128xf32, #tpu.memory_space<smem>>
    %913 = vector.broadcast %912 : f32 to vector<8x32xf32>
    %914 = arith.mulf %913, %891 : vector<8x32xf32>
    %915 = arith.addf %882, %914 : vector<8x32xf32>
    %c8_i32_446 = arith.constant 8 : i32
    %916 = arith.addi %c8_i32_446, %859 : i32
    %c4_i32_447 = arith.constant 4 : i32
    %917 = arith.muli %916, %c4_i32_447 : i32
    %c3_i32_448 = arith.constant 3 : i32
    %918 = arith.addi %917, %c3_i32_448 : i32
    %919 = arith.index_cast %918 : i32 to index
    %920 = memref.load %arg4[%919] : memref<128xf32, #tpu.memory_space<smem>>
    %921 = vector.broadcast %920 : f32 to vector<8x32xf32>
    %922 = arith.mulf %921, %891 : vector<8x32xf32>
    %923 = arith.addf %889, %922 : vector<8x32xf32>
    %c0_449 = arith.constant 0 : index
    %c2_450 = arith.constant 2 : index
    %c0_451 = arith.constant 0 : index
    %c0_452 = arith.constant 0 : index
    %924 = vector.load %arg3[%c0_449, %c2_450, %c0_451, %c0_452] : memref<1x4x8x32xf32, #tpu.memory_space<vmem>>, vector<1x1x8x32xf32>
    %925 = vector.shape_cast %924 : vector<1x1x8x32xf32> to vector<8x32xf32>
    %c16_i32_453 = arith.constant 16 : i32
    %926 = arith.addi %c16_i32_453, %859 : i32
    %c4_i32_454 = arith.constant 4 : i32
    %927 = arith.muli %926, %c4_i32_454 : i32
    %c0_i32_455 = arith.constant 0 : i32
    %928 = arith.addi %927, %c0_i32_455 : i32
    %929 = arith.index_cast %928 : i32 to index
    %930 = memref.load %arg4[%929] : memref<128xf32, #tpu.memory_space<smem>>
    %931 = vector.broadcast %930 : f32 to vector<8x32xf32>
    %932 = arith.mulf %931, %925 : vector<8x32xf32>
    %933 = arith.addf %899, %932 : vector<8x32xf32>
    %c16_i32_456 = arith.constant 16 : i32
    %934 = arith.addi %c16_i32_456, %859 : i32
    %c4_i32_457 = arith.constant 4 : i32
    %935 = arith.muli %934, %c4_i32_457 : i32
    %c1_i32_458 = arith.constant 1 : i32
    %936 = arith.addi %935, %c1_i32_458 : i32
    %937 = arith.index_cast %936 : i32 to index
    %938 = memref.load %arg4[%937] : memref<128xf32, #tpu.memory_space<smem>>
    %939 = vector.broadcast %938 : f32 to vector<8x32xf32>
    %940 = arith.mulf %939, %925 : vector<8x32xf32>
    %941 = arith.addf %907, %940 : vector<8x32xf32>
    %c16_i32_459 = arith.constant 16 : i32
    %942 = arith.addi %c16_i32_459, %859 : i32
    %c4_i32_460 = arith.constant 4 : i32
    %943 = arith.muli %942, %c4_i32_460 : i32
    %c2_i32_461 = arith.constant 2 : i32
    %944 = arith.addi %943, %c2_i32_461 : i32
    %945 = arith.index_cast %944 : i32 to index
    %946 = memref.load %arg4[%945] : memref<128xf32, #tpu.memory_space<smem>>
    %947 = vector.broadcast %946 : f32 to vector<8x32xf32>
    %948 = arith.mulf %947, %925 : vector<8x32xf32>
    %949 = arith.addf %915, %948 : vector<8x32xf32>
    %c16_i32_462 = arith.constant 16 : i32
    %950 = arith.addi %c16_i32_462, %859 : i32
    %c4_i32_463 = arith.constant 4 : i32
    %951 = arith.muli %950, %c4_i32_463 : i32
    %c3_i32_464 = arith.constant 3 : i32
    %952 = arith.addi %951, %c3_i32_464 : i32
    %953 = arith.index_cast %952 : i32 to index
    %954 = memref.load %arg4[%953] : memref<128xf32, #tpu.memory_space<smem>>
    %955 = vector.broadcast %954 : f32 to vector<8x32xf32>
    %956 = arith.mulf %955, %925 : vector<8x32xf32>
    %957 = arith.addf %923, %956 : vector<8x32xf32>
    %c0_465 = arith.constant 0 : index
    %c3_466 = arith.constant 3 : index
    %c0_467 = arith.constant 0 : index
    %c0_468 = arith.constant 0 : index
    %958 = vector.load %arg3[%c0_465, %c3_466, %c0_467, %c0_468] : memref<1x4x8x32xf32, #tpu.memory_space<vmem>>, vector<1x1x8x32xf32>
    %959 = vector.shape_cast %958 : vector<1x1x8x32xf32> to vector<8x32xf32>
    %c24_i32_469 = arith.constant 24 : i32
    %960 = arith.addi %c24_i32_469, %859 : i32
    %c4_i32_470 = arith.constant 4 : i32
    %961 = arith.muli %960, %c4_i32_470 : i32
    %c0_i32_471 = arith.constant 0 : i32
    %962 = arith.addi %961, %c0_i32_471 : i32
    %963 = arith.index_cast %962 : i32 to index
    %964 = memref.load %arg4[%963] : memref<128xf32, #tpu.memory_space<smem>>
    %965 = vector.broadcast %964 : f32 to vector<8x32xf32>
    %966 = arith.mulf %965, %959 : vector<8x32xf32>
    %967 = arith.addf %933, %966 : vector<8x32xf32>
    %c24_i32_472 = arith.constant 24 : i32
    %968 = arith.addi %c24_i32_472, %859 : i32
    %c4_i32_473 = arith.constant 4 : i32
    %969 = arith.muli %968, %c4_i32_473 : i32
    %c1_i32_474 = arith.constant 1 : i32
    %970 = arith.addi %969, %c1_i32_474 : i32
    %971 = arith.index_cast %970 : i32 to index
    %972 = memref.load %arg4[%971] : memref<128xf32, #tpu.memory_space<smem>>
    %973 = vector.broadcast %972 : f32 to vector<8x32xf32>
    %974 = arith.mulf %973, %959 : vector<8x32xf32>
    %975 = arith.addf %941, %974 : vector<8x32xf32>
    %c24_i32_475 = arith.constant 24 : i32
    %976 = arith.addi %c24_i32_475, %859 : i32
    %c4_i32_476 = arith.constant 4 : i32
    %977 = arith.muli %976, %c4_i32_476 : i32
    %c2_i32_477 = arith.constant 2 : i32
    %978 = arith.addi %977, %c2_i32_477 : i32
    %979 = arith.index_cast %978 : i32 to index
    %980 = memref.load %arg4[%979] : memref<128xf32, #tpu.memory_space<smem>>
    %981 = vector.broadcast %980 : f32 to vector<8x32xf32>
    %982 = arith.mulf %981, %959 : vector<8x32xf32>
    %983 = arith.addf %949, %982 : vector<8x32xf32>
    %c24_i32_478 = arith.constant 24 : i32
    %984 = arith.addi %c24_i32_478, %859 : i32
    %c4_i32_479 = arith.constant 4 : i32
    %985 = arith.muli %984, %c4_i32_479 : i32
    %c3_i32_480 = arith.constant 3 : i32
    %986 = arith.addi %985, %c3_i32_480 : i32
    %987 = arith.index_cast %986 : i32 to index
    %988 = memref.load %arg4[%987] : memref<128xf32, #tpu.memory_space<smem>>
    %989 = vector.broadcast %988 : f32 to vector<8x32xf32>
    %990 = arith.mulf %989, %959 : vector<8x32xf32>
    %991 = arith.addf %957, %990 : vector<8x32xf32>
    %992 = tpu.concatenate %967, %975, %983, %991 in 1 : vector<8x32xf32>, vector<8x32xf32>, vector<8x32xf32>, vector<8x32xf32> -> vector<8x128xf32>
    %c0_481 = arith.constant 0 : index
    %c0_482 = arith.constant 0 : index
    %993 = vector.load %arg6[%c0_481, %c0_482] : memref<128x128xf32, #tpu.memory_space<vmem>>, vector<128x128xf32>
    %cst_483 = arith.constant dense<0.000000e+00> : vector<8x128xf32>
    %994 = tpu.matmul %992, %993, %cst_483 {dimension_numbers = #tpu.dot_dimension_numbers<[1], [0], [0], [1], [0, 0, 1, 1], [], []>, precision = #tpu.contract_precision<fp32>} : vector<8x128xf32>, vector<128x128xf32>, vector<8x128xf32> -> vector<8x128xf32>
    %995 = arith.index_cast %859 : i32 to index
    %996 = memref.load %arg5[%995] : memref<8xf32, #tpu.memory_space<smem>>
    %997 = vector.broadcast %996 : f32 to vector<8x128xf32>
    %998 = arith.addf %994, %997 : vector<8x128xf32>
    %c0_484 = arith.constant 0 : index
    %c6 = arith.constant 6 : index
    %c0_485 = arith.constant 0 : index
    %c0_486 = arith.constant 0 : index
    %999 = vector.load %arg7[%c0_484, %c6, %c0_485, %c0_486] : memref<1x8x8x128xf32, #tpu.memory_space<vmem>>, vector<1x1x8x128xf32>
    %1000 = vector.shape_cast %999 : vector<1x1x8x128xf32> to vector<8x128xf32>
    %1001 = vector.shape_cast %998 : vector<8x128xf32> to vector<1x1x8x128xf32>
    tpu.vector_store %arg7[%c0_484, %c6, %c0_485, %c0_486], %1001 {strides = array<i32>} : memref<1x8x8x128xf32, #tpu.memory_space<vmem>>, vector<1x1x8x128xf32>,
    %c7_i32 = arith.constant 7 : i32
    %1002 = arith.addi %0, %c7_i32 : i32
    %c0_487 = arith.constant 0 : index
    %c0_488 = arith.constant 0 : index
    %c0_489 = arith.constant 0 : index
    %c0_490 = arith.constant 0 : index
    %1003 = vector.load %arg3[%c0_487, %c0_488, %c0_489, %c0_490] : memref<1x4x8x32xf32, #tpu.memory_space<vmem>>, vector<1x1x8x32xf32>
    %1004 = vector.shape_cast %1003 : vector<1x1x8x32xf32> to vector<8x32xf32>
    %c0_i32_491 = arith.constant 0 : i32
    %1005 = arith.addi %c0_i32_491, %1002 : i32
    %c4_i32_492 = arith.constant 4 : i32
    %1006 = arith.muli %1005, %c4_i32_492 : i32
    %c0_i32_493 = arith.constant 0 : i32
    %1007 = arith.addi %1006, %c0_i32_493 : i32
    %1008 = arith.index_cast %1007 : i32 to index
    %1009 = memref.load %arg4[%1008] : memref<128xf32, #tpu.memory_space<smem>>
    %1010 = vector.broadcast %1009 : f32 to vector<8x32xf32>
    %1011 = arith.mulf %1010, %1004 : vector<8x32xf32>
    %c0_i32_494 = arith.constant 0 : i32
    %1012 = arith.addi %c0_i32_494, %1002 : i32
    %c4_i32_495 = arith.constant 4 : i32
    %1013 = arith.muli %1012, %c4_i32_495 : i32
    %c1_i32_496 = arith.constant 1 : i32
    %1014 = arith.addi %1013, %c1_i32_496 : i32
    %1015 = arith.index_cast %1014 : i32 to index
    %1016 = memref.load %arg4[%1015] : memref<128xf32, #tpu.memory_space<smem>>
    %1017 = vector.broadcast %1016 : f32 to vector<8x32xf32>
    %1018 = arith.mulf %1017, %1004 : vector<8x32xf32>
    %c0_i32_497 = arith.constant 0 : i32
    %1019 = arith.addi %c0_i32_497, %1002 : i32
    %c4_i32_498 = arith.constant 4 : i32
    %1020 = arith.muli %1019, %c4_i32_498 : i32
    %c2_i32_499 = arith.constant 2 : i32
    %1021 = arith.addi %1020, %c2_i32_499 : i32
    %1022 = arith.index_cast %1021 : i32 to index
    %1023 = memref.load %arg4[%1022] : memref<128xf32, #tpu.memory_space<smem>>
    %1024 = vector.broadcast %1023 : f32 to vector<8x32xf32>
    %1025 = arith.mulf %1024, %1004 : vector<8x32xf32>
    %c0_i32_500 = arith.constant 0 : i32
    %1026 = arith.addi %c0_i32_500, %1002 : i32
    %c4_i32_501 = arith.constant 4 : i32
    %1027 = arith.muli %1026, %c4_i32_501 : i32
    %c3_i32_502 = arith.constant 3 : i32
    %1028 = arith.addi %1027, %c3_i32_502 : i32
    %1029 = arith.index_cast %1028 : i32 to index
    %1030 = memref.load %arg4[%1029] : memref<128xf32, #tpu.memory_space<smem>>
    %1031 = vector.broadcast %1030 : f32 to vector<8x32xf32>
    %1032 = arith.mulf %1031, %1004 : vector<8x32xf32>
    %c0_503 = arith.constant 0 : index
    %c1_504 = arith.constant 1 : index
    %c0_505 = arith.constant 0 : index
    %c0_506 = arith.constant 0 : index
    %1033 = vector.load %arg3[%c0_503, %c1_504, %c0_505, %c0_506] : memref<1x4x8x32xf32, #tpu.memory_space<vmem>>, vector<1x1x8x32xf32>
    %1034 = vector.shape_cast %1033 : vector<1x1x8x32xf32> to vector<8x32xf32>
    %c8_i32_507 = arith.constant 8 : i32
    %1035 = arith.addi %c8_i32_507, %1002 : i32
    %c4_i32_508 = arith.constant 4 : i32
    %1036 = arith.muli %1035, %c4_i32_508 : i32
    %c0_i32_509 = arith.constant 0 : i32
    %1037 = arith.addi %1036, %c0_i32_509 : i32
    %1038 = arith.index_cast %1037 : i32 to index
    %1039 = memref.load %arg4[%1038] : memref<128xf32, #tpu.memory_space<smem>>
    %1040 = vector.broadcast %1039 : f32 to vector<8x32xf32>
    %1041 = arith.mulf %1040, %1034 : vector<8x32xf32>
    %1042 = arith.addf %1011, %1041 : vector<8x32xf32>
    %c8_i32_510 = arith.constant 8 : i32
    %1043 = arith.addi %c8_i32_510, %1002 : i32
    %c4_i32_511 = arith.constant 4 : i32
    %1044 = arith.muli %1043, %c4_i32_511 : i32
    %c1_i32_512 = arith.constant 1 : i32
    %1045 = arith.addi %1044, %c1_i32_512 : i32
    %1046 = arith.index_cast %1045 : i32 to index
    %1047 = memref.load %arg4[%1046] : memref<128xf32, #tpu.memory_space<smem>>
    %1048 = vector.broadcast %1047 : f32 to vector<8x32xf32>
    %1049 = arith.mulf %1048, %1034 : vector<8x32xf32>
    %1050 = arith.addf %1018, %1049 : vector<8x32xf32>
    %c8_i32_513 = arith.constant 8 : i32
    %1051 = arith.addi %c8_i32_513, %1002 : i32
    %c4_i32_514 = arith.constant 4 : i32
    %1052 = arith.muli %1051, %c4_i32_514 : i32
    %c2_i32_515 = arith.constant 2 : i32
    %1053 = arith.addi %1052, %c2_i32_515 : i32
    %1054 = arith.index_cast %1053 : i32 to index
    %1055 = memref.load %arg4[%1054] : memref<128xf32, #tpu.memory_space<smem>>
    %1056 = vector.broadcast %1055 : f32 to vector<8x32xf32>
    %1057 = arith.mulf %1056, %1034 : vector<8x32xf32>
    %1058 = arith.addf %1025, %1057 : vector<8x32xf32>
    %c8_i32_516 = arith.constant 8 : i32
    %1059 = arith.addi %c8_i32_516, %1002 : i32
    %c4_i32_517 = arith.constant 4 : i32
    %1060 = arith.muli %1059, %c4_i32_517 : i32
    %c3_i32_518 = arith.constant 3 : i32
    %1061 = arith.addi %1060, %c3_i32_518 : i32
    %1062 = arith.index_cast %1061 : i32 to index
    %1063 = memref.load %arg4[%1062] : memref<128xf32, #tpu.memory_space<smem>>
    %1064 = vector.broadcast %1063 : f32 to vector<8x32xf32>
    %1065 = arith.mulf %1064, %1034 : vector<8x32xf32>
    %1066 = arith.addf %1032, %1065 : vector<8x32xf32>
    %c0_519 = arith.constant 0 : index
    %c2_520 = arith.constant 2 : index
    %c0_521 = arith.constant 0 : index
    %c0_522 = arith.constant 0 : index
    %1067 = vector.load %arg3[%c0_519, %c2_520, %c0_521, %c0_522] : memref<1x4x8x32xf32, #tpu.memory_space<vmem>>, vector<1x1x8x32xf32>
    %1068 = vector.shape_cast %1067 : vector<1x1x8x32xf32> to vector<8x32xf32>
    %c16_i32_523 = arith.constant 16 : i32
    %1069 = arith.addi %c16_i32_523, %1002 : i32
    %c4_i32_524 = arith.constant 4 : i32
    %1070 = arith.muli %1069, %c4_i32_524 : i32
    %c0_i32_525 = arith.constant 0 : i32
    %1071 = arith.addi %1070, %c0_i32_525 : i32
    %1072 = arith.index_cast %1071 : i32 to index
    %1073 = memref.load %arg4[%1072] : memref<128xf32, #tpu.memory_space<smem>>
    %1074 = vector.broadcast %1073 : f32 to vector<8x32xf32>
    %1075 = arith.mulf %1074, %1068 : vector<8x32xf32>
    %1076 = arith.addf %1042, %1075 : vector<8x32xf32>
    %c16_i32_526 = arith.constant 16 : i32
    %1077 = arith.addi %c16_i32_526, %1002 : i32
    %c4_i32_527 = arith.constant 4 : i32
    %1078 = arith.muli %1077, %c4_i32_527 : i32
    %c1_i32_528 = arith.constant 1 : i32
    %1079 = arith.addi %1078, %c1_i32_528 : i32
    %1080 = arith.index_cast %1079 : i32 to index
    %1081 = memref.load %arg4[%1080] : memref<128xf32, #tpu.memory_space<smem>>
    %1082 = vector.broadcast %1081 : f32 to vector<8x32xf32>
    %1083 = arith.mulf %1082, %1068 : vector<8x32xf32>
    %1084 = arith.addf %1050, %1083 : vector<8x32xf32>
    %c16_i32_529 = arith.constant 16 : i32
    %1085 = arith.addi %c16_i32_529, %1002 : i32
    %c4_i32_530 = arith.constant 4 : i32
    %1086 = arith.muli %1085, %c4_i32_530 : i32
    %c2_i32_531 = arith.constant 2 : i32
    %1087 = arith.addi %1086, %c2_i32_531 : i32
    %1088 = arith.index_cast %1087 : i32 to index
    %1089 = memref.load %arg4[%1088] : memref<128xf32, #tpu.memory_space<smem>>
    %1090 = vector.broadcast %1089 : f32 to vector<8x32xf32>
    %1091 = arith.mulf %1090, %1068 : vector<8x32xf32>
    %1092 = arith.addf %1058, %1091 : vector<8x32xf32>
    %c16_i32_532 = arith.constant 16 : i32
    %1093 = arith.addi %c16_i32_532, %1002 : i32
    %c4_i32_533 = arith.constant 4 : i32
    %1094 = arith.muli %1093, %c4_i32_533 : i32
    %c3_i32_534 = arith.constant 3 : i32
    %1095 = arith.addi %1094, %c3_i32_534 : i32
    %1096 = arith.index_cast %1095 : i32 to index
    %1097 = memref.load %arg4[%1096] : memref<128xf32, #tpu.memory_space<smem>>
    %1098 = vector.broadcast %1097 : f32 to vector<8x32xf32>
    %1099 = arith.mulf %1098, %1068 : vector<8x32xf32>
    %1100 = arith.addf %1066, %1099 : vector<8x32xf32>
    %c0_535 = arith.constant 0 : index
    %c3_536 = arith.constant 3 : index
    %c0_537 = arith.constant 0 : index
    %c0_538 = arith.constant 0 : index
    %1101 = vector.load %arg3[%c0_535, %c3_536, %c0_537, %c0_538] : memref<1x4x8x32xf32, #tpu.memory_space<vmem>>, vector<1x1x8x32xf32>
    %1102 = vector.shape_cast %1101 : vector<1x1x8x32xf32> to vector<8x32xf32>
    %c24_i32_539 = arith.constant 24 : i32
    %1103 = arith.addi %c24_i32_539, %1002 : i32
    %c4_i32_540 = arith.constant 4 : i32
    %1104 = arith.muli %1103, %c4_i32_540 : i32
    %c0_i32_541 = arith.constant 0 : i32
    %1105 = arith.addi %1104, %c0_i32_541 : i32
    %1106 = arith.index_cast %1105 : i32 to index
    %1107 = memref.load %arg4[%1106] : memref<128xf32, #tpu.memory_space<smem>>
    %1108 = vector.broadcast %1107 : f32 to vector<8x32xf32>
    %1109 = arith.mulf %1108, %1102 : vector<8x32xf32>
    %1110 = arith.addf %1076, %1109 : vector<8x32xf32>
    %c24_i32_542 = arith.constant 24 : i32
    %1111 = arith.addi %c24_i32_542, %1002 : i32
    %c4_i32_543 = arith.constant 4 : i32
    %1112 = arith.muli %1111, %c4_i32_543 : i32
    %c1_i32_544 = arith.constant 1 : i32
    %1113 = arith.addi %1112, %c1_i32_544 : i32
    %1114 = arith.index_cast %1113 : i32 to index
    %1115 = memref.load %arg4[%1114] : memref<128xf32, #tpu.memory_space<smem>>
    %1116 = vector.broadcast %1115 : f32 to vector<8x32xf32>
    %1117 = arith.mulf %1116, %1102 : vector<8x32xf32>
    %1118 = arith.addf %1084, %1117 : vector<8x32xf32>
    %c24_i32_545 = arith.constant 24 : i32
    %1119 = arith.addi %c24_i32_545, %1002 : i32
    %c4_i32_546 = arith.constant 4 : i32
    %1120 = arith.muli %1119, %c4_i32_546 : i32
    %c2_i32_547 = arith.constant 2 : i32
    %1121 = arith.addi %1120, %c2_i32_547 : i32
    %1122 = arith.index_cast %1121 : i32 to index
    %1123 = memref.load %arg4[%1122] : memref<128xf32, #tpu.memory_space<smem>>
    %1124 = vector.broadcast %1123 : f32 to vector<8x32xf32>
    %1125 = arith.mulf %1124, %1102 : vector<8x32xf32>
    %1126 = arith.addf %1092, %1125 : vector<8x32xf32>
    %c24_i32_548 = arith.constant 24 : i32
    %1127 = arith.addi %c24_i32_548, %1002 : i32
    %c4_i32_549 = arith.constant 4 : i32
    %1128 = arith.muli %1127, %c4_i32_549 : i32
    %c3_i32_550 = arith.constant 3 : i32
    %1129 = arith.addi %1128, %c3_i32_550 : i32
    %1130 = arith.index_cast %1129 : i32 to index
    %1131 = memref.load %arg4[%1130] : memref<128xf32, #tpu.memory_space<smem>>
    %1132 = vector.broadcast %1131 : f32 to vector<8x32xf32>
    %1133 = arith.mulf %1132, %1102 : vector<8x32xf32>
    %1134 = arith.addf %1100, %1133 : vector<8x32xf32>
    %1135 = tpu.concatenate %1110, %1118, %1126, %1134 in 1 : vector<8x32xf32>, vector<8x32xf32>, vector<8x32xf32>, vector<8x32xf32> -> vector<8x128xf32>
    %c0_551 = arith.constant 0 : index
    %c0_552 = arith.constant 0 : index
    %1136 = vector.load %arg6[%c0_551, %c0_552] : memref<128x128xf32, #tpu.memory_space<vmem>>, vector<128x128xf32>
    %cst_553 = arith.constant dense<0.000000e+00> : vector<8x128xf32>
    %1137 = tpu.matmul %1135, %1136, %cst_553 {dimension_numbers = #tpu.dot_dimension_numbers<[1], [0], [0], [1], [0, 0, 1, 1], [], []>, precision = #tpu.contract_precision<fp32>} : vector<8x128xf32>, vector<128x128xf32>, vector<8x128xf32> -> vector<8x128xf32>
    %1138 = arith.index_cast %1002 : i32 to index
    %1139 = memref.load %arg5[%1138] : memref<8xf32, #tpu.memory_space<smem>>
    %1140 = vector.broadcast %1139 : f32 to vector<8x128xf32>
    %1141 = arith.addf %1137, %1140 : vector<8x128xf32>
    %c0_554 = arith.constant 0 : index
    %c7 = arith.constant 7 : index
    %c0_555 = arith.constant 0 : index
    %c0_556 = arith.constant 0 : index
    %1142 = vector.load %arg7[%c0_554, %c7, %c0_555, %c0_556] : memref<1x8x8x128xf32, #tpu.memory_space<vmem>>, vector<1x1x8x128xf32>
    %1143 = vector.shape_cast %1142 : vector<1x1x8x128xf32> to vector<8x128xf32>
    %1144 = vector.shape_cast %1141 : vector<8x128xf32> to vector<1x1x8x128xf32>
    tpu.vector_store %arg7[%c0_554, %c7, %c0_555, %c0_556], %1144 {strides = array<i32>} : memref<1x8x8x128xf32, #tpu.memory_space<vmem>>, vector<1x1x8x128xf32>,
    return
  }
  func.func @transform_0(%arg0: i32, %arg1: i32, %arg2: i32) -> (i32, i32, i32, i32) {
    %c0_i32 = arith.constant 0 : i32
    %c0_i32_0 = arith.constant 0 : i32
    %c0_i32_1 = arith.constant 0 : i32
    return %arg0, %c0_i32, %arg1, %c0_i32_0 : i32, i32, i32, i32
  }
  func.func @transform_1(%arg0: i32, %arg1: i32, %arg2: i32) -> i32 {
    %c0_i32 = arith.constant 0 : i32
    %c0_i32_0 = arith.constant 0 : i32
    return %c0_i32 : i32
  }
  func.func @transform_2(%arg0: i32, %arg1: i32, %arg2: i32) -> i32 {
    %c0_i32 = arith.constant 0 : i32
    %c0_i32_0 = arith.constant 0 : i32
    return %c0_i32 : i32
  }
  func.func @transform_3(%arg0: i32, %arg1: i32, %arg2: i32) -> (i32, i32) {
    %c0_i32 = arith.constant 0 : i32
    %c0_i32_0 = arith.constant 0 : i32
    %c0_i32_1 = arith.constant 0 : i32
    return %c0_i32, %c0_i32_0 : i32, i32
  }
  func.func @transform_4(%arg0: i32, %arg1: i32, %arg2: i32) -> (i32, i32, i32, i32) {
    %c0_i32 = arith.constant 0 : i32
    %c0_i32_0 = arith.constant 0 : i32
    return %arg0, %arg2, %arg1, %c0_i32 : i32, i32, i32, i32
  }
}

</mosaic_0001>

<bundles_post_ra>
// kernel: tpu_custom_call.1
= control target key start
LH: loop header
LB: loop body
LE: loop exit
PB: predicated region body
PF: predicated region fallthrough
CT: control target
= control target key end

     0   :  { %s13444_s0 = inlined_call_operand.hbm [shape: f32[2,4,8,32], index: 0, kind: input, shape index: {}]   ;;  %s13445_s1 = inlined_call_operand.vmem [shape: f32[128], index: 1, kind: input, shape index: {}]   ;;  %s13446_s2 = inlined_call_operand.vmem [shape: f32[8], index: 2, kind: input, shape index: {}]   ;;  %s13447_s3 = inlined_call_operand.hbm [shape: f32[128,128], index: 3, kind: input, shape index: {}]   ;;  %s13448_s4 = inlined_call_operand.hbm [shape: f32[2,8,8,128], index: 4, kind: output, shape index: {}]  }
   0x1   :  { %13477 = sst [smem:[#allocation17_spill]] %s13444_s0 }
   0x2   :  { %13478 = sst [smem:[#allocation18_spill]] %s13445_s1 }
   0x3   :  { %13479 = sst [smem:[#allocation19_spill]] %s13446_s2 }
   0x4   :  { %13480 = sst [smem:[#allocation20_spill]] %s13447_s3 }
   0x5   :  { %9 = vsyncpa [#allocation3], 0 }
   0x6   :  { %11 = vsyncpa [#allocation3 + $0x1], 0 }
   0x7   :  { %12 = vsyncpa [#allocation5], 0 }
   0x8   :  { %13 = vsyncpa [#allocation8], 0 }
   0x9   :  { %14 = vsyncpa [#allocation10], 0 }
   0xa   :  { %15 = vsyncpa [#allocation4], 0 }
   0xb   :  { %17 = vsyncpa [#allocation4 + $0x1], 0  ;;  %s10772_s15 = smov 0   ;;  %s10774_s16 = smov 0  }
   0xc   :  { %s10776_s17 = smov 0   ;;  %s10778_s18 = smov 0  }
   0xd   :  { %s10780_s19 = smov 0   ;;  %s10782_s20 = smov 0  }
   0xe LB: > { %s6509_s21 = sadd.s32 4294967295, %s10730_s20   ;;  %s6510_s22 = sadd.s32 4294967294, %s10730_s20   ;;  %s10730_s20 = sphi %s10782_s20, %s23_s20   ;;  %s10726_s19 = sphi %s10780_s19, %s13523_s19   ;;  %s10722_s18 = sphi %s10778_s18, %s13522_s18   ;;  %s10718_s17 = sphi %s10776_s17, %s13521_s17   ;;  %s10714_s16 = sphi %s10774_s16, %s13520_s16   ;;  %s10710_s15 = sphi %s10772_s15, %s13519_s15  }
   0xf   : > { %p64_p0 = scmp.ne.s32.totalorder %s10714_s16, %s10710_s15  ;;  %p10806_p1 = scmp.eq.s32.totalorder %s6509_s21, 0 }
  0x10   : > { %p10810_p2 = scmp.eq.s32.totalorder %s6509_s21, 1  ;;  %p161_p3 = scmp.eq.s32.totalorder %s6510_s22, 1 }
  0x11   : > { %s13481_s23 = scalar_select %p10806_p1, 1, 0 }
  0x12   : > { %s13482_s24 = scalar_select %p10810_p2, 1, 0 }
  0x13   : > { %p10816_p4 = por %p10806_p1, %p64_p0  ;;  %p6511_p5 = scmp.ge.s32.totalorder %s10730_s20, 1 }
  0x14   : > { %p10821_p6 = por %p161_p3, %p64_p0  ;;  %p168_p7 = scmp.lt.s32.totalorder %s10730_s20, 3 }
  0x15   : > { %s13483_s25 = scalar_select %p10816_p4, 1, 0 }
  0x16   : > { %s13484_s26 = scalar_select %p10821_p6, 1, 0 }
  0x17   : > { %s13485_s1 = sld [smem:[#allocation18_spill]]  ;;  %p10829_p8 = pnand %p6511_p5, %p168_p7 }
  0x18   : > { %s13487_s2 = sld [smem:[#allocation19_spill]]  ;;  %s10732_s9 = smov [#allocation9]  }
  0x19   : > { %s13486_s30 = scalar_select %p10829_p8, 1, 0 }
  0x1a   : > { %p10449_p10 = pneg %p10829_p8  ;;  %s202_s10 = sshll.u32 %s10732_s9, 4  ;;  %s10845_s10 = int_to_ptr.vmem [resolvable:$true] %s202_s10 }
  0x1c   : > { %p10841_p11 = pnand %p10449_p10, %p10806_p1 }
  0x1d   : > { %s181_s29 = sshll.u32 %s13485_s1, 4  ;;  %s182_s29 = int_to_ptr.vmem [resolvable:$true] %s181_s29 }
  0x1e   : > { %s192_s7 = sshll.u32 %s13487_s2, 4  ;;  %s10548_s11 = scalar_lea.vmem %s182_s29, 16  ;;  %s193_s7 = int_to_ptr.vmem [resolvable:$true] %s192_s7 }
  0x1f   : > { %p10549_p12 = scmp.ne.s32.totalorder %s182_s29, %s10548_s11  ;;  %p10550_p13 = pneg %p10841_p11 }
  0x20   : > { %p10556_p5 = scmp.lt.s32.totalorder %s182_s29, %s182_s29  ;;  %p10557_p7 = scmp.lt.s32.totalorder %s10548_s11, %s10548_s11 }
  0x21   : > { %p10551_p0 = pnand %p10550_p13, %p10549_p12 }
  0x22   : > { %p10558_p10 = por %p10557_p7, %p10556_p5 }
  0x23   : > { %p10552_p3 = pneg %p10551_p0 }
  0x25   : > { %p10559_p9 = pnand %p10558_p10, %p10552_p3 }
  0x27   : > { %10562 = shalt.err (!%p10559_p9)
}
  0x28   : > { %s10733_s12 = smov [#allocation6]   ;;  %s10563_s13 = scalar_lea.vmem %s193_s7, 16 }
  0x29   : > { %10452 = dma.vmem_to_smem (!%p10841_p11), %s182_s29, 16, %s10733_s12, [#allocation5]  }
  0x2a   : > { %p10564_p6 = scmp.ne.s32.totalorder %s193_s7, %s10563_s13  ;;  %p10571_p8 = scmp.lt.s32.totalorder %s193_s7, %s193_s7 }
  0x2b   : > { %p10572_p2 = scmp.lt.s32.totalorder %s10563_s13, %s10563_s13 }
  0x2c   : > { %p10566_p1 = pnand %p10564_p6, %p10550_p13 }
  0x2d   : > { %p10573_p12 = por %p10572_p2, %p10571_p8 }
  0x2e   : > { %p10567_p4 = pneg %p10566_p1 }
  0x30   : > { %p10574_p0 = pnand %p10573_p12, %p10567_p4 }
  0x32   : > { %10577 = shalt.err (!%p10574_p0)
}
  0x33   : > { %s10734_s14 = smov [#allocation7]   ;;  %s13489_s3 = sld [smem:[#allocation20_spill]] }
  0x34   : > { %10455 = dma.vmem_to_smem (!%p10841_p11), %s193_s7, 16, %s10734_s14, [#allocation8]  }
  0x39   : > { %s10578_s27 = scalar_lea.hbm %s13489_s3, 2048 }
  0x3a   : > { %p10579_p9 = scmp.ne.s32.totalorder %s13489_s3, %s10578_s27  ;;  %p10585_p2 = scmp.lt.u32.totalorder %s10578_s27, %s13489_s3 }
  0x3c   : > { %p10581_p1 = pnand %p10579_p9, %p10550_p13 }
  0x3e   : > { %p10582_p6 = pneg %p10581_p1 }
  0x40   : > { %p10587_p4 = pnand %p10585_p2, %p10582_p6 }
  0x42   : > { %10590 = shalt.err (!%p10587_p4)
}
  0x43   : > { %s10591_s7 = scalar_lea.vmem %s10845_s10, 2048  ;;  %p10599_p7 = scmp.lt.s32.totalorder %s10845_s10, %s10845_s10 }
  0x44   : > { %p10592_p8 = scmp.ne.s32.totalorder %s10845_s10, %s10591_s7  ;;  %p10600_p10 = scmp.lt.s32.totalorder %s10591_s7, %s10591_s7 }
  0x46   : > { %p10594_p3 = pnand %p10592_p8, %p10550_p13  ;;  %p10601_p12 = por %p10600_p10, %p10599_p7 }
  0x48   : > { %p10595_p5 = pneg %p10594_p3 }
  0x4a   : > { %p10602_p0 = pnand %p10601_p12, %p10595_p5 }
  0x4c   : > { %10605 = shalt.err (!%p10602_p0)
}
  0x4d   : > { %s10735_s9 = smov 128   ;;  %s10736_s11 = smov 8  }
  0x4e   : > { %10458 = dma.hbm_to_vmem [thread:$0]  (!%p10841_p11), %s13489_s3, 2048, %s10845_s10, [#allocation10], %s10735_s9, %s10735_s9, %s10736_s11  }
  0x4f   : > { %s51_s14 = sadd.s32 1, %s10718_s17  ;;  %s42_s21 = sadd.s32 1, %s10726_s19 }
  0x50   : > { %p58_p13 = scmp.ne.s32.totalorder %s10718_s17, %s10714_s16  ;;  %p44_p9 = scmp.ge.s32.totalorder %s42_s21, 2 }
  0x51   : > { %p59_p1 = scmp.eq.s32.totalorder %s10730_s20, 0  ;;  %p13490_p6 = scmp.ne.s32.totalorder %s13482_s24, 0 }
  0x52   : > { %p10470_p4 = scmp.lt.s32.totalorder %s10730_s20, 2  ;;  %s13525_s21 = smov (%p44_p9, %s42_s21), 0 }
  0x53   : > { %p10894_p2 = por %p13490_p6, %p58_p13  ;;  %p60_p8 = por %p59_p1, %p58_p13 }
  0x54   : > { %s216_s8 = sand.u32 1, %s10718_s17   ;;  %s46_s27 = ssub.s32 %s10726_s19, %s13525_s21 }
  0x55   : > { %p49_p3 = scmp.eq.s32.totalorder %s46_s27, 0  ;;  %s6516_s10 = sshll.u32 %s216_s8, 5 }
  0x56   : > { %s6695_s28 = sshll.u32 %s10726_s19, 9  ;;  %s13492_s0 = sld [smem:[#allocation17_spill]] }
  0x57   : > { %s10906_s29 = scalar_select %p49_p3, %s10718_s17, %s51_s14  }
  0x58   : > { %s220_s7 = scalar_lea.vmem [#allocation2], %s6516_s10  ;;  %p10917_p11 = pnand %p10470_p4, %p60_p8 }
  0x59   : > { %s228_s12 = sshll.u32 %s220_s7, 4  ;;  %s10921_s14 = scalar_lea.sflag [#allocation3], %s216_s8  ;;  %s10913_s12 = int_to_ptr.vmem [resolvable:$true] %s228_s12 }
  0x5a   : > { %p10608_p7 = pneg %p10917_p11 }
  0x5c   : > { %s10911_s24 = scalar_lea.hbm %s13492_s0, %s6695_s28  ;;  %s10611_s5 = scalar_lea.hbm %s13492_s0, 1024 }
  0x5d   : > { %s10606_s27 = scalar_lea.hbm %s10911_s24, 512  ;;  %p10612_p0 = scmp.lt.u32.totalorder %s10911_s24, %s13492_s0 }
  0x5e   : > { %p10607_p5 = scmp.ne.s32.totalorder %s10911_s24, %s10606_s27  ;;  %p10613_p13 = scmp.lt.u32.totalorder %s10611_s5, %s10606_s27 }
  0x5f   : > { %p10615_p1 = scmp.lt.u32.totalorder %s10606_s27, %s10911_s24 }
  0x60   : > { %p10609_p10 = pnand %p10608_p7, %p10607_p5  ;;  %p10614_p9 = por %p10613_p13, %p10612_p0 }
  0x62   : > { %p10610_p12 = pneg %p10609_p10  ;;  %p10616_p6 = por %p10615_p1, %p10614_p9 }
  0x64   : > { %p10617_p4 = pnand %p10616_p6, %p10610_p12 }
  0x66   : > { %10620 = shalt.err (!%p10617_p4)
}
  0x67   : > { %s10621_s8 = scalar_lea.vmem %s10913_s12, 512  ;;  %s10737_s10 = smov [#allocation2]  }
  0x68   : > { %p10622_p8 = scmp.ne.s32.totalorder %s10913_s12, %s10621_s8  ;;  %s10626_s28 = sshll.u32 %s10737_s10, 4  ;;  %s10627_s28 = int_to_ptr.vmem [resolvable:$false] %s10626_s28 }
  0x69   : > { %s10628_s6 = scalar_lea.vmem %s10627_s28, 1024  ;;  %p10629_p10 = scmp.lt.s32.totalorder %s10913_s12, %s10627_s28 }
  0x6a   : > { %p10624_p3 = pnand %p10622_p8, %p10608_p7  ;;  %p10630_p0 = scmp.lt.s32.totalorder %s10628_s6, %s10621_s8 }
  0x6c   : > { %p10625_p5 = pneg %p10624_p3  ;;  %p10631_p13 = por %p10630_p0, %p10629_p10 }
  0x6e   : > { %p10632_p9 = pnand %p10631_p13, %p10625_p5 }
  0x70   : > { %10635 = shalt.err (!%p10632_p9)
}
  0x71   : > { %10462 = dma.hbm_to_vmem [thread:$0]  (!%p10917_p11), %s10911_s24, 512, %s10913_s12, %s10921_s14, %s10735_s9, %s10735_s9, %s10736_s11  }
  0x72   : > { %p13494_p7 = scmp.ne.s32.totalorder %s13486_s30, 0 }
  0x73   : > { %s10955_s27 = sand.u32 (!%p13494_p7), 1, %s10714_s16   ;;  %p13495_p12 = scmp.ne.s32.totalorder (!%p13494_p7), %s13483_s25, 0 }
  0x74   : > { %240 = sbr.rel (%p13494_p7) target bundleno = 1252 (0x4e4), region = 36  ;;  %s6520_s5 = sshll.u32 (!%p13494_p7), %s10955_s27, 5 }
  0x75   : > { %s243_s7 = scalar_lea.sflag (!%p13494_p7), [#allocation3], %s10955_s27  ;;  %s10959_s8 = scalar_lea.vmem (!%p13494_p7), [#allocation2], %s6520_s5 }
  0x7b   : > { %10689 = dma.done.wait (%p13495_p12), %s243_s7, 512  }
  0x7c   : > { %10691 = vsyncadd (%p13495_p12), %s243_s7, 4294966784  ;;  %p13496_p11 = scmp.ne.s32.totalorder %s13481_s23, 0 }
  0x7e   : > { %10693 = dma.done.wait (%p13496_p11), [#allocation5], 16  }
  0x7f   : > { %10695 = vsyncadd (%p13496_p11), [#allocation5], 4294967280 }
  0x80   : > { %10697 = dma.done.wait (%p13496_p11), [#allocation8], 16  }
  0x81   : > { %10699 = vsyncadd (%p13496_p11), [#allocation8], 4294967280 }
  0x82   : > { %10701 = dma.done.wait (%p13496_p11), [#allocation10], 2048  }
  0x83   : > { %10703 = vsyncadd (%p13496_p11), [#allocation10], 4294965248 }
  0x84   : > { %263 = sfence }
  0x85   : > { %s10977_s25 = sld [smem:[#allocation6 + $0x2]]  ;;  %v10986_v0 = vld [vmem:[%s10959_s8] sm:$0xff]  ;;  %v10989_v1 = vld [vmem:[%s10959_s8 + $0x8] sm:$0xff]  ;;  %s10991_s24 = sld [smem:[#allocation6 + $0x1]]  ;;  %v10994_v4 = vld [vmem:[%s10959_s8 + $0x10] sm:$0xff]  ;;  %v13475_v5 = vmov 0.0|0.0  }
  0x86   : > { %s10979_s30 = sld [smem:[#allocation6 + $0x22]]  ;;  %v390_v2 = vld [vmem:[#allocation9] sm:$0xff]  ;;  %v391_v3 = vld [vmem:[#allocation9 + $0x8] sm:$0xff]  ;;  %s10996_s23 = sld [smem:[#allocation6 + $0x21]]  ;;  %9193 = vmatprep.subr.bf16.mxu0 %v13475_v5  ;;  %9337 = vmatprep.subr.bf16.mxu1 %v13475_v5  ;;  %v392_v8 = vld [vmem:[#allocation9 + $0x10] sm:$0xff]  ;;  %vm10742_vm0 = vmmov 0  }
  0x87   : > { %s10981_s9 = sld [smem:[#allocation6 + $0x42]]  ;;  %s10998_s12 = sld [smem:[#allocation6 + $0x41]]  ;;  %v409_v6 = vand.u32 4294901760, %v390_v2  ;;  %v412_v7 = vand.u32 4294901760, %v391_v3  ;;  %v11004_v9 = vld [vmem:[#allocation9 + $0x18] sm:$0xff]  ;;  %v11006_v10 = vld [vmem:[#allocation9 + $0x20] sm:$0xff] }
  0x88   : > { %s10983_s11 = sld [smem:[#allocation6 + $0x62]]  ;;  %s11002_s13 = sld [smem:[#allocation6 + $0x61]]  ;;  %v11009_v11 = vld [vmem:[%s10959_s8 + $0x18] sm:$0xff]  ;;  %v415_v15 = vand.u32 4294901760, %v392_v8  ;;  %v418_v18 = vand.u32 4294901760, %v11004_v9  ;;  %v421_v19 = vand.u32 4294901760, %v11006_v10 }
  0x89   : > { %s11011_s14 = sld [smem:[#allocation6 + $0x6]]  ;;  %v11015_v12 = vpack.c.bf16 %v412_v7, %v409_v6  ;;  %v11017_v13 = vsub.f32 %v390_v2, %v409_v6  ;;  %v11019_v14 = vsub.f32 %v391_v3, %v412_v7  ;;  %s11033_s5 = sld [smem:[#allocation6 + $0x5]]  ;;  %vm384_vm1 = vcmask 261120  }
  0x8a   : > { %s11013_s10 = sld [smem:[#allocation6 + $0x26]]  ;;  %s11035_s7 = sld [smem:[#allocation6 + $0x25]]  ;;  %v11048_v27 = vpack.c.bf16 %v418_v18, %v415_v15  ;;  %v11062_v35 = vsub.f32 %v392_v8, %v415_v15  ;;  %v11094_v55 = vsub.f32 %v11004_v9, %v418_v18  ;;  %v395_v8 = vld [vmem:[#allocation9 + $0x28] sm:$0xff]  ;;  %vm388_vm2 = vcmask 785408  }
  0x8b   : > { %v297_v16 = vstv %s10977_s25  ;;  %s11023_s28 = sld [smem:[#allocation6 + $0x46]]  ;;  %9195 = vmatpush3.bf16.msra.mxu0 %v11015_v12  ;;  %9339 = vmatpush3.bf16.msra.mxu1 %v11015_v12  ;;  %v293_v26 = vstv %s10991_s24  ;;  %s11042_s25 = sld [smem:[#allocation6 + $0x45]]  ;;  %vm386_vm3 = vcmask 523264  }
  0x8c   : > { %v318_v17 = vstv %s10979_s30  ;;  %s11025_s6 = sld [smem:[#allocation6 + $0x66]]  ;;  %v298_v20 = vmul.f32 %v297_v16, %v10986_v0  ;;  %s11044_s30 = sld [smem:[#allocation6 + $0x65]]  ;;  %9196 = vmatprep.subr.bf16.mxu0 %v13475_v5  ;;  %9340 = vmatprep.subr.bf16.mxu1 %v13475_v5  ;;  %v294_v29 = vmul.f32 %v293_v26, %v10986_v0  ;;  %v313_v30 = vstv %s10996_s23 }
  0x8d   : > { %v319_v21 = vmul.f32 %v10989_v1, %v318_v17  ;;  %v341_v22 = vstv %s10981_s9  ;;  %v336_v31 = vstv %s10998_s12  ;;  %s11053_s9 = sld [smem:[#allocation6 + $0x7]]  ;;  %v314_v32 = vmul.f32 %v10989_v1, %v313_v30  ;;  %s11069_s12 = sld [smem:[#allocation6 + $0x3]] }
  0x8e   : > { %v364_v23 = vstv %s10983_s11  ;;  %v342_v24 = vmul.f32 %v10994_v4, %v341_v22  ;;  %v337_v33 = vmul.f32 %v10994_v4, %v336_v31  ;;  %v359_v34 = vstv %s11002_s13  ;;  %s11058_s11 = sld [smem:[#allocation6 + $0x27]]  ;;  %s11076_s13 = sld [smem:[#allocation6 + $0x23]] }
  0x8f   : > { %v365_v25 = vmul.f32 %v11009_v11, %v364_v23  ;;  %v320_v28 = vadd.f32 %v319_v21, %v298_v20  ;;  %s11060_s24 = sld [smem:[#allocation6 + $0x47]]  ;;  %v360_v37 = vmul.f32 %v11009_v11, %v359_v34  ;;  %v1062_v38 = vstv %s11011_s14  ;;  %9198 = vmatpush3.bf16.msra.mxu0 %v11048_v27  ;;  %9342 = vmatpush3.bf16.msra.mxu1 %v11048_v27  ;;  %s11083_s14 = sld [smem:[#allocation6 + $0x43]] }
  0x90   : > { %v1082_v39 = vstv %s11013_s10  ;;  %s11067_s23 = sld [smem:[#allocation6 + $0x67]]  ;;  %v315_v40 = vadd.f32 %v314_v32, %v294_v29  ;;  %v1063_v41 = vmul.f32 %v1062_v38, %v10986_v0  ;;  %9199 = vmatprep.subr.bf16.mxu0 %v13475_v5  ;;  %9343 = vmatprep.subr.bf16.mxu1 %v13475_v5  ;;  %v1058_v47 = vstv %s11033_s5  ;;  %s11085_s10 = sld [smem:[#allocation6 + $0x63]]  ;;  %v397_v29 = vld [vmem:[#allocation9 + $0x38] sm:$0xff] }
  0x91   : > { %v343_v36 = vadd.f32 %v342_v24, %v320_v28  ;;  %v1083_v42 = vmul.f32 %v10989_v1, %v1082_v39  ;;  %v1104_v43 = vstv %s11023_s28  ;;  %v1059_v51 = vmul.f32 %v1058_v47, %v10986_v0  ;;  %s13456_s28 = smov 64   ;;  %v396_v28 = vld [vmem:[#allocation9 + $0x30] sm:$0xff]  ;;  %s13454_s5 = smov 96  }
  0x92   : > { %v1105_v45 = vmul.f32 %v10994_v4, %v1104_v43  ;;  %v1126_v46 = vstv %s11025_s6  ;;  %v338_v48 = vadd.f32 %v337_v33, %v315_v40  ;;  %v1077_v52 = vstv %s11035_s7  ;;  %s13458_s6 = smov 32   ;;  %v398_v43 = vld [vmem:[#allocation9 + $0x40] sm:$0xff]  ;;  %v400_v47 = vld [vmem:[#allocation9 + $0x50] sm:$0xff]  ;;  %s6586_s7 = sld [smem:[#allocation6 + $0xd]] }
  0x93   : > { %v366_v44 = vadd.f32 %v365_v25, %v343_v36  ;;  %v1084_v49 = vadd.f32 %v1083_v42, %v1063_v41  ;;  %v1127_v50 = vmul.f32 %v11009_v11, %v1126_v46  ;;  %v1099_v53 = vstv %s11042_s25  ;;  %s6591_s25 = sld [smem:[#allocation6 + $0x2d]]  ;;  %s11339_s0 = sld [smem:[#allocation6 + $0x6b]] }
  0x94   : > { %v1121_v54 = vstv %s11044_s30  ;;  %v361_v56 = vadd.f32 %v360_v37, %v338_v48  ;;  %v1078_v58 = vmul.f32 %v10989_v1, %v1077_v52  ;;  %v1100_v59 = vmul.f32 %v10994_v4, %v1099_v53  ;;  %s6565_s30 = sld [smem:[#allocation6 + $0x9]]  ;;  %s11588_s1 = sld [smem:[#allocation6 + $0x32]] }
  0x95   : > { %377 = vrot.lane.b32.xlu1 %v366_v44, %s13456_s28  ;;  %v1106_v57 = vadd.f32 %v1105_v45, %v1084_v49  ;;  %v1122_v60 = vmul.f32 %v11009_v11, %v1121_v54  ;;  %v1066_v61 = vstv %s11053_s9  ;;  %v1087_v62 = vstv %s11058_s11  ;;  %v399_v44 = vld [vmem:[#allocation9 + $0x48] sm:$0xff]  ;;  %v402_v54 = vld [vmem:[#allocation9 + $0x60] sm:$0xff]  ;;  %s6570_s9 = sld [smem:[#allocation6 + $0x29]]  ;;  %s6596_s11 = sld [smem:[#allocation6 + $0x4d]] }
  0x96   : > { %v1109_v63 = vstv %s11060_s24  ;;  %373 = vrot.lane.b32.xlu0 %v361_v56, %s13458_s6  ;;  %v1079_v3 = vadd.f32 %v1078_v58, %v1059_v51  ;;  %v1067_v6 = vmul.f32 %v1066_v61, %v10986_v0  ;;  %v1088_v7 = vmul.f32 %v10989_v1, %v1087_v62  ;;  %v403_v56 = vld [vmem:[#allocation9 + $0x68] sm:$0xff]  ;;  %v404_v58 = vld [vmem:[#allocation9 + $0x70] sm:$0xff]  ;;  %s6575_s24 = sld [smem:[#allocation6 + $0x49]]  ;;  %s11590_s2 = sld [smem:[#allocation6 + $0x52]] }
  0x97   : > { %v1128_v2 = vadd.f32 %v1127_v50, %v1106_v57  ;;  %v1110_v9 = vmul.f32 %v10994_v4, %v1109_v63  ;;  %v1131_v15 = vstv %s11067_s23  ;;  %v301_v16 = vstv %s11069_s12  ;;  %v401_v50 = vld [vmem:[#allocation9 + $0x58] sm:$0xff]  ;;  %s11281_s23 = sld [smem:[#allocation6 + $0x6d]]  ;;  %s11283_s12 = sld [smem:[#allocation6 + $0x69]] }
  0x98   : > { %v323_v17 = vstv %s11076_s13  ;;  %v1101_v18 = vadd.f32 %v1100_v59, %v1079_v3  ;;  %v1089_v20 = vadd.f32 %v1088_v7, %v1067_v6  ;;  %v1132_v21 = vmul.f32 %v11009_v11, %v1131_v15  ;;  %v405_v63 = vld [vmem:[#allocation9 + $0x78] sm:$0xff]  ;;  %s11285_s13 = sld [smem:[#allocation6 + $0xe]]  ;;  %s11648_s3 = sld [smem:[#allocation6 + $0x73]] }
  0x99   : > { %1139 = vrot.lane.b32.xlu1 %v1128_v2, %s13456_s28  ;;  %v302_v22 = vmul.f32 %v301_v16, %v10986_v0  ;;  %v324_v23 = vmul.f32 %v10989_v1, %v323_v17  ;;  %v346_v24 = vstv %s11083_s14  ;;  %v369_v25 = vstv %s11085_s10  ;;  %s11287_s14 = sld [smem:[#allocation6 + $0x2e]]  ;;  %s11295_s28 = sld [smem:[#allocation6 + $0x2a]] }
  0x9a   : > { %v424_v26 = vand.u32 4294901760, %v395_v8  ;;  %v1123_v30 = vadd.f32 %v1122_v60, %v1101_v18  ;;  %v1111_v31 = vadd.f32 %v1110_v9, %v1089_v20  ;;  %v347_v32 = vmul.f32 %v10994_v4, %v346_v24  ;;  %s11289_s10 = sld [smem:[#allocation6 + $0x4e]] }
  0x9b   : > { %v370_v33 = vmul.f32 %v11009_v11, %v369_v25  ;;  %v325_v34 = vadd.f32 %v324_v23, %v302_v22  ;;  %v11124_v37 = vsub.f32 %v11006_v10, %v421_v19  ;;  %v427_v40 = vand.u32 4294901760, %v396_v28 }
  0x9c   : > { %v11119_v36 = vpack.c.bf16 %v424_v26, %v421_v19  ;;  %v11126_v38 = vsub.f32 %v395_v8, %v424_v26  ;;  %1135 = vrot.lane.b32.xlu0 %v1123_v30, %s13458_s6  ;;  %v1133_v39 = vadd.f32 %v1132_v21, %v1111_v31  ;;  %v430_v41 = vand.u32 4294901760, %v397_v29  ;;  %s11297_s6 = sld [smem:[#allocation6 + $0x4a]] }
  0x9d   : > { %v348_v42 = vadd.f32 %v347_v32, %v325_v34  ;;  %v11135_v19 = vsub.f32 %v396_v28, %v427_v40  ;;  %v433_v48 = vand.u32 4294901760, %v398_v43  ;;  %v436_v49 = vand.u32 4294901760, %v399_v44 }
  0x9e   : > { %9201 = vmatpush3.bf16.msra.mxu0 %v11119_v36  ;;  %9345 = vmatpush3.bf16.msra.mxu1 %v11119_v36  ;;  %v11133_v10 = vpack.c.bf16 %v430_v41, %v427_v40  ;;  %v11137_v45 = vsub.f32 %v397_v29, %v430_v41  ;;  %v439_v53 = vand.u32 4294901760, %v400_v47  ;;  %v442_v59 = vand.u32 4294901760, %v401_v50 }
  0x9f   : > { %1143 = vrot.lane.b32.xlu1 %v1133_v39, %s13454_s5  ;;  %9202 = vmatprep.subr.bf16.mxu0 %v13475_v5  ;;  %v371_v46 = vadd.f32 %v370_v33, %v348_v42  ;;  %v11144_v51 = vpack.c.bf16 %v436_v49, %v433_v48  ;;  %v11146_v52 = vsub.f32 %v398_v43, %v433_v48  ;;  %v445_v61 = vand.u32 4294901760, %v402_v54 }
  0xa0   : > { %9346 = vmatprep.subr.bf16.mxu1 %v13475_v5  ;;  %v11149_v57 = vsub.f32 %v399_v44, %v436_v49  ;;  %v11151_v60 = vsub.f32 %v400_v47, %v439_v53  ;;  %v448_v62 = vand.u32 4294901760, %v403_v56  ;;  %v11156_v2 = vpack.c.bf16 %v442_v59, %v439_v53 }
  0xa1   : > { %381 = vrot.lane.b32.xlu0 %v371_v46, %s13454_s5  ;;  %v11158_v3 = vsub.f32 %v401_v50, %v442_v59  ;;  %v451_v6 = vand.u32 4294901760, %v404_v58  ;;  %v11161_v7 = vsub.f32 %v402_v54, %v445_v61  ;;  %v454_v9 = vand.u32 4294901760, %v405_v63  ;;  %s11291_s5 = sld [smem:[#allocation6 + $0xa]] }
  0xa2   : > { %9204 = vmatpush3.bf16.msra.mxu0 %v11133_v10  ;;  %9348 = vmatpush3.bf16.msra.mxu1 %v11133_v10  ;;  %v11163_v8 = vsub.f32 %v403_v56, %v448_v62  ;;  %v11168_v16 = vpack.c.bf16 %v448_v62, %v445_v61  ;;  %v10743_v17 = vmov 0.0   ;;  %v13474_v18 = vand.u32 4294901760, %v11017_v13 }
  0xa3   : > { %9205 = vmatprep.subr.bf16.mxu0 %v13475_v5  ;;  %9349 = vmatprep.subr.bf16.mxu1 %v13475_v5  ;;  %v11165_v15 = vsub.f32 %v404_v58, %v451_v6  ;;  %v13473_v20 = vand.u32 4294901760, %v11019_v14  ;;  %v13472_v21 = vand.u32 4294901760, %v11062_v35  ;;  %v11177_v22 = vpack.c.bf16 %v454_v9, %v451_v6 }
  0xa4   : > { %7545 = vmatprep.mubr.msk.f32.mxu0 %vm10742_vm0, %v10743_v17  ;;  %v11179_v23 = vsub.f32 %v405_v63, %v454_v9  ;;  %v13471_v24 = vand.u32 4294901760, %v11094_v55  ;;  %v13470_v25 = vand.u32 4294901760, %v11124_v37  ;;  %7755 = vmatprep.mubr.msk.f32.mxu1 %vm10742_vm0, %v10743_v17  ;;  %v503_v26 = vsub.f32 %v11017_v13, %v13474_v18 }
  0xa5   : > { %v510_v28 = vsub.f32 %v11019_v14, %v13473_v20  ;;  %v517_v29 = vsub.f32 %v11062_v35, %v13472_v21  ;;  %v13469_v30 = vand.u32 4294901760, %v11126_v38  ;;  %v13468_v33 = vand.u32 4294901760, %v11135_v19 }
  0xa6   : > { %9207 = vmatpush3.bf16.msra.mxu0 %v11144_v51  ;;  %9351 = vmatpush3.bf16.msra.mxu1 %v11144_v51  ;;  %v524_v31 = vsub.f32 %v11094_v55, %v13471_v24  ;;  %v531_v32 = vsub.f32 %v11124_v37, %v13470_v25  ;;  %v13467_v34 = vand.u32 4294901760, %v11137_v45  ;;  %v504_v39 = vand.u32 4294901760, %v503_v26 }
  0xa7   : > { %9208 = vmatprep.subr.bf16.mxu0 %v13475_v5  ;;  %9352 = vmatprep.subr.bf16.mxu1 %v13475_v5  ;;  %v511_v40 = vand.u32 4294901760, %v510_v28  ;;  %v518_v41 = vand.u32 4294901760, %v517_v29  ;;  %v538_v42 = vsub.f32 %v11126_v38, %v13469_v30  ;;  %v545_v46 = vsub.f32 %v11135_v19, %v13468_v33 }
  0xa8   : > { %v525_v43 = vand.u32 4294901760, %v524_v31  ;;  %v532_v44 = vand.u32 4294901760, %v531_v32  ;;  %v552_v47 = vsub.f32 %v11137_v45, %v13467_v34  ;;  %v13466_v50 = vand.u32 4294901760, %v11146_v52 }
  0xa9   : > { %v11217_v48 = vpack.c.bf16 %v511_v40, %v504_v39  ;;  %v539_v49 = vand.u32 4294901760, %v538_v42  ;;  %v13465_v53 = vand.u32 4294901760, %v11149_v57  ;;  %v546_v56 = vand.u32 4294901760, %v545_v46 }
  0xaa   : > { %9210 = vmatpush3.bf16.msra.mxu0 %v11156_v2  ;;  %9354 = vmatpush3.bf16.msra.mxu1 %v11156_v2  ;;  %v11221_v54 = vpack.c.bf16 %v525_v43, %v518_v41  ;;  %v553_v58 = vand.u32 4294901760, %v552_v47  ;;  %v13464_v59 = vand.u32 4294901760, %v11151_v60  ;;  %v559_v62 = vsub.f32 %v11146_v52, %v13466_v50 }
  0xab   : > { %9211 = vmatprep.subr.bf16.mxu0 %v13475_v5  ;;  %9355 = vmatprep.subr.bf16.mxu1 %v13475_v5  ;;  %v11225_v61 = vpack.c.bf16 %v539_v49, %v532_v44  ;;  %v566_v63 = vsub.f32 %v11149_v57, %v13465_v53  ;;  %v13463_v6 = vand.u32 4294901760, %v11158_v3  ;;  %v13462_v28 = vand.u32 4294901760, %v11161_v7 }
  0xac   : > { %v11236_v9 = vpack.c.bf16 %v553_v58, %v546_v56  ;;  %v573_v26 = vsub.f32 %v11151_v60, %v13464_v59  ;;  %v13453_v29 = vand.u32 4294901760, %v11163_v8  ;;  %v560_v31 = vand.u32 4294901760, %v559_v62 }
  0xad   : > { %v567_v32 = vand.u32 4294901760, %v566_v63  ;;  %v580_v39 = vsub.f32 %v11158_v3, %v13463_v6  ;;  %v587_v41 = vsub.f32 %v11161_v7, %v13462_v28  ;;  %v13461_v43 = vand.u32 4294901760, %v11165_v15 }
  0xae   : > { %9213 = vmatpush3.bf16.msra.mxu0 %v11168_v16  ;;  %9357 = vmatpush3.bf16.msra.mxu1 %v11168_v16  ;;  %v574_v40 = vand.u32 4294901760, %v573_v26  ;;  %v594_v42 = vsub.f32 %v11163_v8, %v13453_v29  ;;  %v13460_v47 = vand.u32 4294901760, %v11179_v23  ;;  %v1859_v28 = vstv %s6575_s24  ;;  %s11322_s24 = sld [smem:[#allocation6 + $0xb]] }
  0xaf   : > { %9214 = vmatprep.subr.bf16.mxu0 %v13475_v5  ;;  %9358 = vmatprep.subr.bf16.mxu1 %v13475_v5  ;;  %v11254_v44 = vpack.c.bf16 %v567_v32, %v560_v31  ;;  %v581_v46 = vand.u32 4294901760, %v580_v39  ;;  %v588_v49 = vand.u32 4294901760, %v587_v41  ;;  %v601_v58 = vsub.f32 %v11165_v15, %v13461_v43 }
  0xb0   : > { %v595_v56 = vand.u32 4294901760, %v594_v42  ;;  %v608_v63 = vsub.f32 %v11179_v23, %v13460_v47  ;;  %v11271_v39 = vpack.c.bf16 %v11019_v14, %v11017_v13  ;;  %v11275_v41 = vpack.c.bf16 %v11094_v55, %v11062_v35 }
  0xb1   : > { %v11260_v62 = vpack.c.bf16 %v581_v46, %v574_v40  ;;  %v602_v29 = vand.u32 4294901760, %v601_v58  ;;  %v11279_v40 = vpack.c.bf16 %v11126_v38, %v11124_v37  ;;  %v2597_v42 = vstv %s6591_s25  ;;  %s11307_s25 = sld [smem:[#allocation6 + $0x6a]] }
  0xb2   : > { %9216 = vmatpush3.bf16.msra.mxu0 %v11177_v22  ;;  %9360 = vmatpush3.bf16.msra.mxu1 %v11177_v22  ;;  %v11265_v26 = vpack.c.bf16 %v595_v56, %v588_v49  ;;  %v609_v31 = vand.u32 4294901760, %v608_v63  ;;  %v2598_v49 = vmul.f32 %v10989_v1, %v2597_v42  ;;  %v1818_v56 = vstv %s6565_s30  ;;  %s11310_s30 = sld [smem:[#allocation6 + $0xf]] }
  0xb3   : > { %9217 = vmatprep.subr.bf16.mxu0 %v13475_v5  ;;  %9361 = vmatprep.subr.bf16.mxu1 %v13475_v5  ;;  %v1837_v58 = vstv %s6570_s9  ;;  %v11301_v63 = vpack.c.bf16 %v11137_v45, %v11135_v19  ;;  %v1819_v47 = vmul.f32 %v1818_v56, %v10986_v0  ;;  %s11312_s9 = sld [smem:[#allocation6 + $0x2f]]  ;;  %v2641_v6 = vstv %s11281_s23 }
  0xb4   : > { %v11267_v32 = vpack.c.bf16 %v609_v31, %v602_v29  ;;  %v2578_v29 = vstv %s6586_s7  ;;  %v2619_v31 = vstv %s6596_s11  ;;  %v1838_v43 = vmul.f32 %v10989_v1, %v1837_v58  ;;  %s11305_s7 = sld [smem:[#allocation6 + $0x6e]]  ;;  %s11317_s11 = sld [smem:[#allocation6 + $0x4f]] }
  0xb5   : > { %v2579_v46 = vmul.f32 %v2578_v29, %v10986_v0  ;;  %v2620_v42 = vmul.f32 %v10994_v4, %v2619_v31  ;;  %v1860_v56 = vmul.f32 %v10994_v4, %v1859_v28  ;;  %v1881_v58 = vstv %s11283_s12  ;;  %s11330_s23 = sld [smem:[#allocation6 + $0x6f]]  ;;  %s11332_s12 = sld [smem:[#allocation6 + $0x2b]] }
  0xb6   : > { %v1839_v59 = vadd.f32 %v1838_v43, %v1819_v47  ;;  %v2582_v31 = vstv %s11285_s13  ;;  %v11326_v43 = vpack.c.bf16 %v11149_v57, %v11146_v52  ;;  %v2602_v47 = vstv %s11287_s14  ;;  %s11337_s13 = sld [smem:[#allocation6 + $0x4b]]  ;;  %s13497_s14 = smov 32  }
  0xb7   : > { %v2599_v29 = vadd.f32 %v2598_v49, %v2579_v46  ;;  %v2642_v46 = vmul.f32 %v11009_v11, %v2641_v6  ;;  %v1882_v49 = vmul.f32 %v11009_v11, %v1881_v58  ;;  %v2583_v28 = vmul.f32 %v2582_v31, %v10986_v0 }
  0xb8   : > { %v1861_v50 = vadd.f32 %v1860_v56, %v1839_v59  ;;  %v1822_v58 = vstv %s11291_s5  ;;  %v1864_v33 = vstv %s11297_s6  ;;  %v1826_v20 = vstv %s11322_s24  ;;  %s6543_s6 = sld [smem:[#allocation6 + $0x4]]  ;;  %s6628_s24 = sld [smem:[#allocation6 + $0x15]] }
  0xb9   : > { %v2621_v53 = vadd.f32 %v2620_v42, %v2599_v29  ;;  %v2603_v29 = vmul.f32 %v10989_v1, %v2602_v47  ;;  %v2624_v42 = vstv %s11289_s10  ;;  %v1823_v34 = vmul.f32 %v1822_v58, %v10986_v0  ;;  %s6548_s5 = sld [smem:[#allocation6 + $0x24]]  ;;  %s288_s10 = sld [smem:[#allocation6]] }
  0xba   : > { %v1883_v59 = vadd.f32 %v1882_v49, %v1861_v50  ;;  %v2625_v56 = vmul.f32 %v10994_v4, %v2624_v42  ;;  %v2646_v31 = vstv %s11305_s7  ;;  %v1842_v47 = vstv %s11295_s28  ;;  %s13498_s28 = smov 64   ;;  %s6529_s7 = sld [smem:[#allocation6 + $0x20]] }
  0xbb   : > { %v2643_v6 = vadd.f32 %v2642_v46, %v2621_v53  ;;  %v2604_v53 = vadd.f32 %v2603_v29, %v2583_v28  ;;  %v2647_v46 = vmul.f32 %v11009_v11, %v2646_v31  ;;  %v1843_v50 = vmul.f32 %v10989_v1, %v1842_v47 }
  0xbc   : > { %1895 = vrot.lane.b32.xlu0 %v1883_v59, %s13497_s14  ;;  %v1865_v49 = vmul.f32 %v10994_v4, %v1864_v33  ;;  %v1886_v42 = vstv %s11307_s25  ;;  %v11354_v58 = vpack.c.bf16 %v11158_v3, %v11151_v60  ;;  %v2586_v29 = vstv %s11310_s30  ;;  %s6553_s25 = sld [smem:[#allocation6 + $0x44]]  ;;  %s6534_s30 = sld [smem:[#allocation6 + $0x40]] }
  0xbd   : > { %2655 = vrot.lane.b32.xlu1 %v2643_v6, %s13497_s14  ;;  %v2626_v6 = vadd.f32 %v2625_v56, %v2604_v53  ;;  %v1887_v28 = vmul.f32 %v11009_v11, %v1886_v42  ;;  %v2607_v31 = vstv %s11312_s9  ;;  %v1844_v30 = vadd.f32 %v1843_v50, %v1823_v34  ;;  %s6558_s9 = sld [smem:[#allocation6 + $0x64]] }
  0xbe   : > { %v2587_v59 = vmul.f32 %v2586_v29, %v10986_v0  ;;  %v2608_v47 = vmul.f32 %v10989_v1, %v2607_v31  ;;  %v2629_v25 = vstv %s11317_s11  ;;  %v2651_v21 = vstv %s11330_s23  ;;  %s6539_s11 = sld [smem:[#allocation6 + $0x60]]  ;;  %s6633_s23 = sld [smem:[#allocation6 + $0x35]] }
  0xbf   : > { %v2648_v33 = vadd.f32 %v2647_v46, %v2626_v6  ;;  %v2630_v24 = vmul.f32 %v10994_v4, %v2629_v25  ;;  %v1866_v18 = vadd.f32 %v1865_v49, %v1844_v30  ;;  %v2652_v53 = vmul.f32 %v11009_v11, %v2651_v21 }
  0xc0   : > { %v2609_v56 = vadd.f32 %v2608_v47, %v2587_v59  ;;  %v1827_v42 = vmul.f32 %v1826_v20, %v10986_v0  ;;  %v1847_v5 = vstv %s11332_s12  ;;  %v1869_v34 = vstv %s11337_s13  ;;  %s11552_s12 = sld [smem:[#allocation6 + $0x11]] }
  0xc1   : > { %2659 = vrot.lane.b32.xlu1 %v2648_v33, %s13498_s28  ;;  %v1891_v50 = vstv %s11339_s0  ;;  %v11373_v29 = vpack.c.bf16 %v11163_v8, %v11161_v7  ;;  %v1888_v46 = vadd.f32 %v1887_v28, %v1866_v18  ;;  %v1848_v25 = vmul.f32 %v10989_v1, %v1847_v5  ;;  %s13499_s0 = smov 96   ;;  %s11554_s13 = sld [smem:[#allocation6 + $0x31]] }
  0xc2   : > { %v2631_v6 = vadd.f32 %v2630_v24, %v2609_v56  ;;  %v1870_v30 = vmul.f32 %v10994_v4, %v1869_v34  ;;  %v1892_v20 = vmul.f32 %v11009_v11, %v1891_v50  ;;  %v11381_v31 = vpack.c.bf16 %v11179_v23, %v11165_v15 }
  0xc3   : > { %1899 = vrot.lane.b32.xlu0 %v1888_v46, %s13498_s28  ;;  %v1849_v49 = vadd.f32 %v1848_v25, %v1827_v42  ;;  %v1054_v5 = vstv %s6543_s6  ;;  %v1072_v18 = vstv %s6548_s5  ;;  %v289_v24 = vstv %s288_s10  ;;  %s11556_s6 = sld [smem:[#allocation6 + $0x55]]  ;;  %s11558_s5 = sld [smem:[#allocation6 + $0x51]] }
  0xc4   : > { %v2653_v21 = vadd.f32 %v2652_v53, %v2631_v6  ;;  %v308_v28 = vstv %s6529_s7  ;;  %v1055_v33 = vmul.f32 %v1054_v5, %v10986_v0  ;;  %v1073_v56 = vmul.f32 %v10989_v1, %v1072_v18  ;;  %s11565_s10 = sld [smem:[#allocation6 + $0x75]]  ;;  %s11567_s7 = sld [smem:[#allocation6 + $0x71]] }
  0xc5   : > { %v1871_v59 = vadd.f32 %v1870_v30, %v1849_v49  ;;  %v309_v53 = vmul.f32 %v10989_v1, %v308_v28  ;;  %v290_v42 = vmul.f32 %v289_v24, %v10986_v0  ;;  %v1094_v34 = vstv %s6553_s25  ;;  %s11570_s25 = sld [smem:[#allocation6 + $0x16]] }
  0xc6   : > { %2663 = vrot.lane.b32.xlu1 %v2653_v21, %s13499_s0  ;;  %v331_v50 = vstv %s6534_s30  ;;  %v1074_v46 = vadd.f32 %v1073_v56, %v1055_v33  ;;  %v1095_v6 = vmul.f32 %v10994_v4, %v1094_v34  ;;  %v1116_v21 = vstv %s6558_s9  ;;  %s11572_s30 = sld [smem:[#allocation6 + $0x36]] }
  0xc7   : > { %v1893_v47 = vadd.f32 %v1892_v20, %v1871_v59  ;;  %v332_v25 = vmul.f32 %v10994_v4, %v331_v50  ;;  %v310_v30 = vadd.f32 %v309_v53, %v290_v42  ;;  %v354_v20 = vstv %s6539_s11  ;;  %s11580_s9 = sld [smem:[#allocation6 + $0x56]]  ;;  %s11582_s11 = sld [smem:[#allocation6 + $0x12]] }
  0xc8   : > { %v1096_v59 = vadd.f32 %v1095_v6, %v1074_v46  ;;  %v355_v5 = vmul.f32 %v11009_v11, %v354_v20 }
  0xc9   : > { %1903 = vrot.lane.b32.xlu0 %v1893_v47, %s13499_s0  ;;  %v1117_v47 = vmul.f32 %v11009_v11, %v1116_v21  ;;  %v333_v1 = vadd.f32 %v332_v25, %v310_v30 }
  0xcb   : > { %v1118_v0 = vadd.f32 %v1117_v47, %v1096_v59  ;;  %v356_v24 = vadd.f32 %v355_v5, %v333_v1  ;;  %v13500_v1 = vmov 0.0|0.0  }
 0x107   : > { %v378_v49 = vpop.permute.xlu1 %377 }
 0x108   : > { %v374_v18 = vpop.permute.xlu0 %373 }
 0x109   : > { %v385_v4 = vsel %vm384_vm1, %v356_v24, %v374_v18 }
 0x10a   : > { %v387_v46 = vsel %vm386_vm3, %v385_v4, %v378_v49 }
 0x10b   : > { %v1140_v28 = vpop.permute.xlu1 %1139 }
 0x10e   : > { %v1136_v33 = vpop.permute.xlu0 %1135 }
 0x10f   : > { %v1146_v56 = vsel %vm384_vm1, %v1118_v0, %v1136_v33 }
 0x110   : > { %v1147_v42 = vsel %vm386_vm3, %v1146_v56, %v1140_v28  ;;  %v4139_v28 = vstv %s11556_s6  ;;  %s11624_s6 = sld [smem:[#allocation6 + $0x57]] }
 0x111   : > { %v1144_v53 = vpop.permute.xlu1 %1143 }
 0x112   : > { %v1148_v34 = vsel %vm388_vm2, %v1147_v42, %v1144_v53  ;;  %v3379_v53 = vstv %s11558_s5  ;;  %v11619_v42 = vld [vmem:[%s10959_s8 + $0x18] sm:$0xff]  ;;  %s11629_s5 = sld [smem:[#allocation6 + $0x13]] }
 0x113   : > { %v11397_v50 = vand.u32 4294901760, %v1148_v34  ;;  %v382_v11 = vpop.permute.xlu0 %381 }
 0x114   : > { %v389_v25 = vsel %vm388_vm2, %v387_v46, %v382_v11 }
 0x115   : > { %v11401_v6 = vsub.f32 %v1148_v34, %v11397_v50  ;;  %v11404_v30 = vand.u32 4294901760, %v389_v25  ;;  %v4161_v34 = vstv %s11565_s10  ;;  %s11638_s10 = sld [smem:[#allocation6 + $0x77]] }
 0x117   : > { %v1250_v21 = vand.u32 4294901760, %v11401_v6  ;;  %v11408_v20 = vsub.f32 %v389_v25, %v11404_v30 }
 0x119   : > { %v1251_v59 = vsub.f32 %v11401_v6, %v1250_v21  ;;  %v491_v47 = vand.u32 4294901760, %v11408_v20 }
 0x11b   : > { %v1252_v5 = vand.u32 4294901760, %v1251_v59  ;;  %v492_v49 = vsub.f32 %v11408_v20, %v491_v47  ;;  %v13514_v59 = vand.u32 4294901760, %v11163_v8 }
 0x11d   : > { %7756 = vmatmul.mubr.f32.vlgmr.msra.gmra.mrb[0].mxu1 %v1252_v5  ;;  %v493_v18 = vand.u32 4294901760, %v492_v49 }
 0x11e   : > { %9363 = vmatpush3.bf16.msra.mxu1 %v11217_v48  ;;  %7790 = vmatprep.mubr.msk.f32.mxu1 %vm10742_vm0, %v10743_v17 }
 0x11f   : > { %9364 = vmatprep.subr.bf16.mxu1 %v13500_v1  ;;  %7546 = vmatmul.mubr.f32.vlgmr.msra.gmra.mrb[0].mxu0 %v493_v18  ;;  %v4122_v18 = vstv %s11572_s30  ;;  %s6569_s30 = sld [smem:[#allocation6 + $0x28]] }
 0x120   : > { %9219 = vmatpush3.bf16.msra.mxu0 %v11217_v48  ;;  %7580 = vmatprep.mubr.msk.f32.mxu0 %vm10742_vm0, %v10743_v17  ;;  %v13501_v48 = vand.u32 4294901760, %v11017_v13  ;;  %v13505_v13 = vand.u32 4294901760, %v11124_v37  ;;  %v13508_v37 = vand.u32 4294901760, %v11137_v45  ;;  %v4117_v45 = vstv %s6633_s23  ;;  %s11605_s23 = sld [smem:[#allocation6 + $0x72]] }
 0x121   : > { %9220 = vmatprep.subr.bf16.mxu0 %v13500_v1 }
 0x122   : > { %9366 = vmatpush3.bf16.msra.mxu1 %v11221_v54 }
 0x123   : > { %9367 = vmatprep.subr.bf16.mxu1 %v13500_v1 }
 0x124   : > { %9222 = vmatpush3.bf16.msra.mxu0 %v11221_v54  ;;  %v13502_v54 = vand.u32 4294901760, %v11019_v14  ;;  %v13506_v14 = vand.u32 4294901760, %v11126_v38 }
 0x125   : > { %9223 = vmatprep.subr.bf16.mxu0 %v13500_v1 }
 0x126   : > { %9369 = vmatpush3.bf16.msra.mxu1 %v11225_v61 }
 0x127   : > { %9370 = vmatprep.subr.bf16.mxu1 %v13500_v1 }
 0x128   : > { %9225 = vmatpush3.bf16.msra.mxu0 %v11225_v61  ;;  %v9290_v61 = vpack.c.bf16 %v13502_v54, %v13501_v48 }
 0x129   : > { %9226 = vmatprep.subr.bf16.mxu0 %v13500_v1 }
 0x12a   : > { %9372 = vmatpush3.bf16.msra.mxu1 %v11236_v9 }
 0x12b   : > { %9373 = vmatprep.subr.bf16.mxu1 %v13500_v1 }
 0x12c   : > { %9228 = vmatpush3.bf16.msra.mxu0 %v11236_v9  ;;  %v13503_v9 = vand.u32 4294901760, %v11062_v35  ;;  %v9296_v35 = vpack.c.bf16 %v13506_v14, %v13505_v13 }
 0x12d   : > { %9229 = vmatprep.subr.bf16.mxu0 %v13500_v1 }
 0x12e   : > { %9375 = vmatpush3.bf16.msra.mxu1 %v11254_v44 }
 0x12f   : > { %9376 = vmatprep.subr.bf16.mxu1 %v13500_v1 }
 0x130   : > { %9231 = vmatpush3.bf16.msra.mxu0 %v11254_v44  ;;  %v13504_v44 = vand.u32 4294901760, %v11094_v55  ;;  %v13507_v55 = vand.u32 4294901760, %v11135_v19  ;;  %v11578_v19 = vld [vmem:[%s10959_s8 + $0x8] sm:$0xff] }
 0x131   : > { %9232 = vmatprep.subr.bf16.mxu0 %v13500_v1  ;;  %v4123_v54 = vmul.f32 %v11578_v19, %v4122_v18 }
 0x132   : > { %9378 = vmatpush3.bf16.msra.mxu1 %v11260_v62  ;;  %v9299_v38 = vpack.c.bf16 %v13508_v37, %v13507_v55  ;;  %v3384_v55 = vstv %s11590_s2  ;;  %v13515_v37 = vand.u32 4294901760, %v11165_v15  ;;  %s6590_s2 = sld [smem:[#allocation6 + $0x2c]] }
 0x133   : > { %9379 = vmatprep.subr.bf16.mxu1 %v13500_v1 }
 0x134   : > { %9234 = vmatpush3.bf16.msra.mxu0 %v11260_v62  ;;  %v9293_v62 = vpack.c.bf16 %v13504_v44, %v13503_v9 }
 0x135   : > { %9235 = vmatprep.subr.bf16.mxu0 %v13500_v1 }
 0x136   : > { %9381 = vmatpush3.bf16.msra.mxu1 %v11265_v26 }
 0x137   : > { %9382 = vmatprep.subr.bf16.mxu1 %v13500_v1 }
 0x138   : > { %9237 = vmatpush3.bf16.msra.mxu0 %v11265_v26  ;;  %v11575_v26 = vld [vmem:[%s10959_s8] sm:$0xff] }
 0x139   : > { %9238 = vmatprep.subr.bf16.mxu0 %v13500_v1 }
 0x13a   : > { %9384 = vmatpush3.bf16.msra.mxu1 %v11267_v32 }
 0x13b   : > { %9385 = vmatprep.subr.bf16.mxu1 %v13500_v1 }
 0x13c   : > { %9240 = vmatpush3.bf16.msra.mxu0 %v11267_v32  ;;  %v4098_v32 = vstv %s6628_s24  ;;  %s11603_s24 = sld [smem:[#allocation6 + $0x76]] }
 0x13d   : > { %7791 = vmatmul.mubr.f32.vlgmr.msra.gmra.mrb[0].mxu1 %v11397_v50  ;;  %9241 = vmatprep.subr.bf16.mxu0 %v13500_v1 }
 0x13e   : > { %9387 = vmatpush3.bf16.msra.mxu1 %v11271_v39  ;;  %7825 = vmatprep.mubr.msk.f32.mxu1 %vm10742_vm0, %v10743_v17 }
 0x13f   : > { %9388 = vmatprep.subr.bf16.mxu1 %v13500_v1  ;;  %7581 = vmatmul.mubr.f32.vlgmr.msra.gmra.mrb[0].mxu0 %v11404_v30 }
 0x140   : > { %9243 = vmatpush3.bf16.msra.mxu0 %v11271_v39  ;;  %7615 = vmatprep.mubr.msk.f32.mxu0 %vm10742_vm0, %v10743_v17  ;;  %v4099_v39 = vmul.f32 %v4098_v32, %v11575_v26 }
 0x141   : > { %9244 = vmatprep.subr.bf16.mxu0 %v13500_v1 }
 0x142   : > { %9390 = vmatpush3.bf16.msra.mxu1 %v11275_v41  ;;  %v4166_v44 = vstv %s11603_s24  ;;  %s11721_s24 = sld [smem:[#allocation6 + $0x6c]] }
 0x143   : > { %9391 = vmatprep.subr.bf16.mxu1 %v13500_v1  ;;  %v4167_v14 = vmul.f32 %v11619_v42, %v4166_v44  ;;  %v10538_v44 = vld [vmem:[%s10959_s8 + $0x10] sm:$0xff] }
 0x144   : > { %9246 = vmatpush3.bf16.msra.mxu0 %v11275_v41  ;;  %v4118_v41 = vmul.f32 %v11578_v19, %v4117_v45 }
 0x145   : > { %9247 = vmatprep.subr.bf16.mxu0 %v13500_v1 }
 0x146   : > { %9393 = vmatpush3.bf16.msra.mxu1 %v11279_v40  ;;  %v4119_v56 = vadd.f32 %v4118_v41, %v4099_v39  ;;  %v3406_v41 = vstv %s11605_s23  ;;  %s11723_s23 = sld [smem:[#allocation6 + $0x68]] }
 0x147   : > { %9394 = vmatprep.subr.bf16.mxu1 %v13500_v1 }
 0x148   : > { %9249 = vmatpush3.bf16.msra.mxu0 %v11279_v40  ;;  %v3338_v40 = vstv %s11552_s12  ;;  %s11614_s12 = sld [smem:[#allocation6 + $0x17]] }
 0x149   : > { %9250 = vmatprep.subr.bf16.mxu0 %v13500_v1  ;;  %v3339_v0 = vmul.f32 %v11575_v26, %v3338_v40 }
 0x14a   : > { %9396 = vmatpush3.bf16.msra.mxu1 %v11301_v63 }
 0x14b   : > { %9397 = vmatprep.subr.bf16.mxu1 %v13500_v1 }
 0x14c   : > { %9252 = vmatpush3.bf16.msra.mxu0 %v11301_v63  ;;  %v3357_v63 = vstv %s11554_s13  ;;  %s11616_s13 = sld [smem:[#allocation6 + $0x37]] }
 0x14d   : > { %9253 = vmatprep.subr.bf16.mxu0 %v13500_v1  ;;  %v3358_v24 = vmul.f32 %v11578_v19, %v3357_v63  ;;  %v3407_v63 = vmul.f32 %v11619_v42, %v3406_v41 }
 0x14e   : > { %9399 = vmatpush3.bf16.msra.mxu1 %v11326_v43 }
 0x14f   : > { %9400 = vmatprep.subr.bf16.mxu1 %v13500_v1  ;;  %v3359_v11 = vadd.f32 %v3358_v24, %v3339_v0 }
 0x150   : > { %9255 = vmatpush3.bf16.msra.mxu0 %v11326_v43  ;;  %v13509_v43 = vand.u32 4294901760, %v11146_v52  ;;  %v13511_v52 = vand.u32 4294901760, %v11151_v60  ;;  %v3401_v60 = vstv %s11567_s7  ;;  %s11640_s7 = sld [smem:[#allocation6 + $0x33]] }
 0x151   : > { %9256 = vmatprep.subr.bf16.mxu0 %v13500_v1  ;;  %v3402_v25 = vmul.f32 %v11619_v42, %v3401_v60  ;;  %v3411_v60 = vstv %s11648_s3  ;;  %s6564_s3 = sld [smem:[#allocation6 + $0x8]] }
 0x152   : > { %9402 = vmatpush3.bf16.msra.mxu1 %v11354_v58  ;;  %v4127_v15 = vstv %s11616_s13  ;;  %s6675_s13 = sld [smem:[#allocation6 + $0x3d]] }
 0x153   : > { %9403 = vmatprep.subr.bf16.mxu1 %v13500_v1 }
 0x154   : > { %9258 = vmatpush3.bf16.msra.mxu0 %v11354_v58  ;;  %v13510_v58 = vand.u32 4294901760, %v11149_v57  ;;  %v13512_v57 = vand.u32 4294901760, %v11158_v3 }
 0x155   : > { %9259 = vmatprep.subr.bf16.mxu0 %v13500_v1 }
 0x156   : > { %9405 = vmatpush3.bf16.msra.mxu1 %v11373_v29  ;;  %v9305_v33 = vpack.c.bf16 %v13512_v57, %v13511_v52  ;;  %v4171_v52 = vstv %s11638_s10  ;;  %v3346_v57 = vstv %s11629_s5  ;;  %s12170_s5 = sld [smem:[#allocation6 + $0x39]]  ;;  %s12172_s10 = sld [smem:[#allocation6 + $0x5d]] }
 0x157   : > { %9406 = vmatprep.subr.bf16.mxu1 %v13500_v1 }
 0x158   : > { %9261 = vmatpush3.bf16.msra.mxu0 %v11373_v29  ;;  %v9302_v29 = vpack.c.bf16 %v13510_v58, %v13509_v43  ;;  %v4106_v43 = vstv %s11614_s12  ;;  %s6670_s12 = sld [smem:[#allocation6 + $0x1d]] }
 0x159   : > { %9262 = vmatprep.subr.bf16.mxu0 %v13500_v1 }
 0x15a   : > { %9408 = vmatpush3.bf16.msra.mxu1 %v11381_v31 }
 0x15b   : > { %9409 = vmatprep.subr.bf16.mxu1 %v13500_v1 }
 0x15c   : > { %9264 = vmatpush3.bf16.msra.mxu0 %v11381_v31  ;;  %v11598_v31 = vld [vmem:[%s10959_s8 + $0x10] sm:$0xff] }
 0x15d   : > { %7826 = vmatmul.mubr.f32.vlgmr.msra.gmra.mrb[0].mxu1 %v11401_v6  ;;  %9265 = vmatprep.subr.bf16.mxu0 %v13500_v1  ;;  %v4140_v4 = vmul.f32 %v11598_v31, %v4139_v28  ;;  %v3380_v46 = vmul.f32 %v11598_v31, %v3379_v53  ;;  %v4162_v6 = vmul.f32 %v11619_v42, %v4161_v34  ;;  %v4149_v28 = vstv %s11624_s6  ;;  %s12168_s6 = sld [smem:[#allocation6 + $0x19]] }
 0x15e   : > { %9411 = vmatpush3.bf16.msra.mxu1 %v11015_v12  ;;  %7860 = vmatprep.mubr.msk.f32.mxu1 %vm10742_vm0, %v10743_v17  ;;  %v3385_v39 = vmul.f32 %v11598_v31, %v3384_v55  ;;  %v4150_v24 = vmul.f32 %v11598_v31, %v4149_v28  ;;  %v4172_v53 = vmul.f32 %v11619_v42, %v4171_v52  ;;  %v3367_v34 = vstv %s11640_s7  ;;  %v11745_v55 = vld [vmem:[#allocation9 + $0x10] sm:$0xff]  ;;  %s12174_s7 = sld [smem:[#allocation6 + $0x59]] }
 0x15f   : > { %9412 = vmatprep.subr.bf16.mxu1 %v13500_v1  ;;  %7616 = vmatmul.mubr.f32.vlgmr.msra.gmra.mrb[0].mxu0 %v11408_v20  ;;  %v4141_v3 = vadd.f32 %v4140_v4, %v4119_v56  ;;  %v13513_v20 = vand.u32 4294901760, %v11161_v7  ;;  %v3381_v5 = vadd.f32 %v3380_v46, %v3359_v11  ;;  %v4144_v7 = vstv %s11580_s9  ;;  %s11713_s9 = sld [smem:[#allocation6 + $0x4c]] }
 0x160   : > { %9267 = vmatpush3.bf16.msra.mxu0 %v11015_v12  ;;  %7650 = vmatprep.mubr.msk.f32.mxu0 %vm10742_vm0, %v10743_v17  ;;  %v4145_v9 = vmul.f32 %v11598_v31, %v4144_v7  ;;  %v3368_v11 = vmul.f32 %v11578_v19, %v3367_v34 }
 0x161   : > { %9268 = vmatprep.subr.bf16.mxu0 %v13500_v1  ;;  %v4163_v48 = vadd.f32 %v4162_v6, %v4141_v3  ;;  %v3403_v8 = vadd.f32 %v3402_v25, %v3381_v5 }
 0x162   : > { %9414 = vmatpush3.bf16.msra.mxu1 %v11048_v27 }
 0x163   : > { %9415 = vmatprep.subr.bf16.mxu1 %v13500_v1  ;;  %4175 = vrot.lane.b32.xlu1 %v4163_v48, %s13497_s14 }
 0x164   : > { %9270 = vmatpush3.bf16.msra.mxu0 %v11048_v27  ;;  %3415 = vrot.lane.b32.xlu0 %v3403_v8, %s13497_s14 }
 0x165   : > { %9271 = vmatprep.subr.bf16.mxu0 %v13500_v1  ;;  %v2614_v48 = vstv %s11713_s9  ;;  %s12198_s9 = sld [smem:[#allocation6 + $0x1a]] }
 0x166   : > { %9417 = vmatpush3.bf16.msra.mxu1 %v11119_v36 }
 0x167   : > { %9418 = vmatprep.subr.bf16.mxu1 %v13500_v1 }
 0x168   : > { %9273 = vmatpush3.bf16.msra.mxu0 %v11119_v36 }
 0x169   : > { %9274 = vmatprep.subr.bf16.mxu0 %v13500_v1 }
 0x16a   : > { %9420 = vmatpush3.bf16.msra.mxu1 %v11133_v10 }
 0x16b   : > { %9421 = vmatprep.subr.bf16.mxu1 %v13500_v1 }
 0x16c   : > { %9276 = vmatpush3.bf16.msra.mxu0 %v11133_v10 }
 0x16d   : > { %9277 = vmatprep.subr.bf16.mxu0 %v13500_v1 }
 0x16e   : > { %9423 = vmatpush3.bf16.msra.mxu1 %v11144_v51 }
 0x16f   : > { %9424 = vmatprep.subr.bf16.mxu1 %v13500_v1 }
 0x170   : > { %9279 = vmatpush3.bf16.msra.mxu0 %v11144_v51 }
 0x171   : > { %9280 = vmatprep.subr.bf16.mxu0 %v13500_v1 }
 0x172   : > { %9426 = vmatpush3.bf16.msra.mxu1 %v11156_v2 }
 0x173   : > { %9427 = vmatprep.subr.bf16.mxu1 %v13500_v1 }
 0x174   : > { %9282 = vmatpush3.bf16.msra.mxu0 %v11156_v2 }
 0x175   : > { %9283 = vmatprep.subr.bf16.mxu0 %v13500_v1 }
 0x176   : > { %9429 = vmatpush3.bf16.msra.mxu1 %v11168_v16 }
 0x177   : > { %9430 = vmatprep.subr.bf16.mxu1 %v13500_v1 }
 0x178   : > { %9285 = vmatpush3.bf16.msra.mxu0 %v11168_v16 }
 0x179   : > { %9286 = vmatprep.subr.bf16.mxu0 %v13500_v1 }
 0x17a   : > { %9432 = vmatpush3.bf16.msra.mxu1 %v11177_v22 }
 0x17b   : > { %9433 = vmatprep.subr.bf16.mxu1 %v13500_v1 }
 0x17c   : > { %9288 = vmatpush3.bf16.msra.mxu0 %v11177_v22 }
 0x17d   : > { %7861 = vmatmul.mubr.f32.vlgmr.msra.gmra.mrb[0].mxu1 %v1250_v21  ;;  %9289 = vmatprep.subr.bf16.mxu0 %v13500_v1  ;;  %v4102_v21 = vstv %s11570_s25  ;;  %s11646_s25 = sld [smem:[#allocation6 + $0x53]] }
 0x17e   : > { %9435 = vmatpush3.bf16.msra.mxu1 %v9290_v61  ;;  %7895 = vmatprep.mubr.msk.f32.mxu1 %vm10742_vm0, %v10743_v17  ;;  %v4103_v49 = vmul.f32 %v4102_v21, %v11575_v26 }
 0x17f   : > { %9436 = vmatprep.subr.bf16.mxu1 %v13500_v1  ;;  %7651 = vmatmul.mubr.f32.vlgmr.msra.gmra.mrb[0].mxu0 %v491_v47  ;;  %v9308_v47 = vpack.c.bf16 %v13514_v59, %v13513_v20  ;;  %v3412_v20 = vmul.f32 %v11619_v42, %v3411_v60  ;;  %v11730_v42 = vld [vmem:[#allocation9 + $0x8] sm:$0xff] }
 0x180   : > { %9291 = vmatpush3.bf16.msra.mxu0 %v9290_v61  ;;  %7685 = vmatprep.mubr.msk.f32.mxu0 %vm10742_vm0, %v10743_v17  ;;  %v3342_v61 = vstv %s11582_s11  ;;  %v4124_v13 = vadd.f32 %v4123_v54, %v4103_v49  ;;  %s11715_s11 = sld [smem:[#allocation6 + $0x48]]  ;;  %v10537_v49 = vld [vmem:[%s10959_s8 + $0x8] sm:$0xff]  ;;  %v1931_v8 = vand.u32 4294901760, %v11730_v42 }
 0x181   : > { %9292 = vmatprep.subr.bf16.mxu0 %v13500_v1 }
 0x182   : > { %9438 = vmatpush3.bf16.msra.mxu1 %v9293_v62  ;;  %v4146_v40 = vadd.f32 %v4145_v9, %v4124_v13  ;;  %v2636_v13 = vstv %s11721_s24  ;;  %s12206_s24 = sld [smem:[#allocation6 + $0x5a]] }
 0x183   : > { %9439 = vmatprep.subr.bf16.mxu1 %v13500_v1  ;;  %v3389_v46 = vstv %s11646_s25  ;;  %s12181_s25 = sld [smem:[#allocation6 + $0x7d]] }
 0x184   : > { %9294 = vmatpush3.bf16.msra.mxu0 %v9293_v62  ;;  %v3343_v62 = vmul.f32 %v11575_v26, %v3342_v61  ;;  %v4168_v0 = vadd.f32 %v4167_v14, %v4146_v40  ;;  %v3390_v25 = vmul.f32 %v11598_v31, %v3389_v46  ;;  %v1832_v31 = vstv %s6569_s30  ;;  %v1896_v40 = vpop.permute.xlu0 %1895  ;;  %v11805_v46 = vld [vmem:[#allocation9 + $0x48] sm:$0xff]  ;;  %s12196_s30 = sld [smem:[#allocation6 + $0x5e]] }
 0x185   : > { %9295 = vmatprep.subr.bf16.mxu0 %v13500_v1  ;;  %v1833_v7 = vmul.f32 %v10537_v49, %v1832_v31 }
 0x186   : > { %9441 = vmatpush3.bf16.msra.mxu1 %v9296_v35  ;;  %4179 = vrot.lane.b32.xlu1 %v4168_v0, %s13498_s28 }
 0x187   : > { %9442 = vmatprep.subr.bf16.mxu1 %v13500_v1 }
 0x188   : > { %9297 = vmatpush3.bf16.msra.mxu0 %v9296_v35  ;;  %v3362_v35 = vstv %s11588_s1  ;;  %s6585_s1 = sld [smem:[#allocation6 + $0xc]] }
 0x189   : > { %9298 = vmatprep.subr.bf16.mxu0 %v13500_v1  ;;  %v3363_v45 = vmul.f32 %v11578_v19, %v3362_v35 }
 0x18a   : > { %9444 = vmatpush3.bf16.msra.mxu1 %v9299_v38 }
 0x18b   : > { %9445 = vmatprep.subr.bf16.mxu1 %v13500_v1  ;;  %v3364_v58 = vadd.f32 %v3363_v45, %v3343_v62  ;;  %v2615_v62 = vmul.f32 %v10538_v44, %v2614_v48 }
 0x18c   : > { %9300 = vmatpush3.bf16.msra.mxu0 %v9299_v38  ;;  %v13516_v38 = vand.u32 4294901760, %v11179_v23  ;;  %v4107_v23 = vmul.f32 %v4106_v43, %v11575_v26 }
 0x18d   : > { %9301 = vmatprep.subr.bf16.mxu0 %v13500_v1  ;;  %v3386_v56 = vadd.f32 %v3385_v39, %v3364_v58  ;;  %v10539_v39 = vld [vmem:[%s10959_s8 + $0x18] sm:$0xff]  ;;  %v11763_v58 = vld [vmem:[#allocation9 + $0x20] sm:$0xff] }
 0x18e   : > { %9447 = vmatpush3.bf16.msra.mxu1 %v9302_v29  ;;  %v9311_v32 = vpack.c.bf16 %v13516_v38, %v13515_v37  ;;  %v1876_v37 = vstv %s11723_s23  ;;  %v2637_v41 = vmul.f32 %v10539_v39, %v2636_v13  ;;  %v1940_v0 = vand.u32 4294901760, %v11763_v58  ;;  %v11884_v13 = vld [vmem:[#allocation9 + $0x70] sm:$0xff]  ;;  %s12219_s23 = sld [smem:[#allocation6 + $0x7e]] }
 0x18f   : > { %9448 = vmatprep.subr.bf16.mxu1 %v13500_v1  ;;  %v3408_v3 = vadd.f32 %v3407_v63, %v3386_v56  ;;  %v1934_v63 = vand.u32 4294901760, %v11745_v55  ;;  %v1900_v56 = vpop.permute.xlu0 %1899 }
 0x190   : > { %9303 = vmatpush3.bf16.msra.mxu0 %v9302_v29  ;;  %v4128_v29 = vmul.f32 %v11578_v19, %v4127_v15  ;;  %v1877_v15 = vmul.f32 %v10539_v39, %v1876_v37 }
 0x191   : > { %9304 = vmatprep.subr.bf16.mxu0 %v13500_v1  ;;  %3419 = vrot.lane.b32.xlu0 %v3408_v3, %s13498_s28 }
 0x192   : > { %9450 = vmatpush3.bf16.msra.mxu1 %v9305_v33  ;;  %v4129_v4 = vadd.f32 %v4128_v29, %v4107_v23  ;;  %v11765_v23 = vld [vmem:[#allocation9 + $0x28] sm:$0xff] }
 0x193   : > { %9451 = vmatprep.subr.bf16.mxu1 %v13500_v1 }
 0x194   : > { %9306 = vmatpush3.bf16.msra.mxu0 %v9305_v33  ;;  %v3347_v33 = vmul.f32 %v11575_v26, %v3346_v57  ;;  %v4151_v6 = vadd.f32 %v4150_v24, %v4129_v4  ;;  %v1943_v24 = vand.u32 4294901760, %v11765_v23  ;;  %v11782_v57 = vld [vmem:[#allocation9 + $0x38] sm:$0xff] }
 0x195   : > { %9307 = vmatprep.subr.bf16.mxu0 %v13500_v1  ;;  %v1949_v34 = vand.u32 4294901760, %v11782_v57 }
 0x196   : > { %9453 = vmatpush3.bf16.msra.mxu1 %v9308_v47  ;;  %v3369_v21 = vadd.f32 %v3368_v11, %v3347_v33  ;;  %v4173_v59 = vadd.f32 %v4172_v53, %v4151_v6  ;;  %v11797_v53 = vpack.c.bf16 %v1943_v24, %v1940_v0  ;;  %v11803_v11 = vld [vmem:[#allocation9 + $0x40] sm:$0xff]  ;;  %v11908_v39 = vsub.f32 %v11765_v23, %v1943_v24 }
 0x197   : > { %9454 = vmatprep.subr.bf16.mxu1 %v13500_v1  ;;  %v11938_v24 = vsub.f32 %v11782_v57, %v1949_v34 }
 0x198   : > { %9309 = vmatpush3.bf16.msra.mxu0 %v9308_v47  ;;  %v3391_v26 = vadd.f32 %v3390_v25, %v3369_v21  ;;  %4183 = vrot.lane.b32.xlu1 %v4173_v59, %s13499_s0  ;;  %v10536_v47 = vld [vmem:[%s10959_s8] sm:$0xff]  ;;  %v1904_v25 = vpop.permute.xlu0 %1903  ;;  %v1955_v59 = vand.u32 4294901760, %v11805_v46 }
 0x199   : > { %9310 = vmatprep.subr.bf16.mxu0 %v13500_v1 }
 0x19a   : > { %9456 = vmatpush3.bf16.msra.mxu1 %v9311_v32  ;;  %v3413_v19 = vadd.f32 %v3412_v20, %v3391_v26  ;;  %v1952_v20 = vand.u32 4294901760, %v11803_v11  ;;  %v11821_v26 = vld [vmem:[#allocation9 + $0x50] sm:$0xff] }
 0x19b   : > { %9457 = vmatprep.subr.bf16.mxu1 %v13500_v1 }
 0x19c   : > { %9312 = vmatpush3.bf16.msra.mxu0 %v9311_v32  ;;  %3423 = vrot.lane.b32.xlu0 %v3413_v19, %s13499_s0  ;;  %v2656_v32 = vpop.permute.xlu1 %2655  ;;  %v11823_v19 = vld [vmem:[#allocation9 + $0x58] sm:$0xff]  ;;  %v11957_v57 = vsub.f32 %v11803_v11, %v1952_v20 }
 0x19d   : > { %7896 = vmatmul.mubr.f32.vlgmr.msra.gmra.mrb[0].mxu1 %v11397_v50  ;;  %9313 = vmatprep.subr.bf16.mxu0 %v13500_v1 }
 0x19e   : > { %9459 = vmatpush3.bf16.msra.mxu1 %v11015_v12  ;;  %7930 = vmatprep.mubr.msk.f32.mxu1 %vm10742_vm0, %v10743_v17 }
 0x19f   : > { %9460 = vmatprep.subr.bf16.mxu1 %v13500_v1  ;;  %7686 = vmatmul.mubr.f32.vlgmr.msra.gmra.mrb[0].mxu0 %v11404_v30 }
 0x1a0   : > { %9315 = vmatpush3.bf16.msra.mxu0 %v11015_v12  ;;  %7720 = vmatprep.mubr.msk.f32.mxu0 %vm10742_vm0, %v10743_v17  ;;  %v2574_v12 = vstv %s6585_s1  ;;  %s12183_s1 = sld [smem:[#allocation6 + $0x79]] }
 0x1a1   : > { %9316 = vmatprep.subr.bf16.mxu0 %v13500_v1  ;;  %v2575_v5 = vmul.f32 %v10536_v47, %v2574_v12 }
 0x1a2   : > { %9462 = vmatpush3.bf16.msra.mxu1 %v11048_v27 }
 0x1a3   : > { %9463 = vmatprep.subr.bf16.mxu1 %v13500_v1 }
 0x1a4   : > { %9318 = vmatpush3.bf16.msra.mxu0 %v11048_v27  ;;  %v2592_v27 = vstv %s6590_s2  ;;  %s12186_s2 = sld [smem:[#allocation6 + $0x1e]] }
 0x1a5   : > { %9319 = vmatprep.subr.bf16.mxu0 %v13500_v1  ;;  %v2593_v18 = vmul.f32 %v10537_v49, %v2592_v27  ;;  %v11851_v49 = vld [vmem:[#allocation9 + $0x60] sm:$0xff] }
 0x1a6   : > { %9465 = vmatpush3.bf16.msra.mxu1 %v11119_v36 }
 0x1a7   : > { %9466 = vmatprep.subr.bf16.mxu1 %v13500_v1  ;;  %v2594_v9 = vadd.f32 %v2593_v18, %v2575_v5  ;;  %v1961_v5 = vand.u32 4294901760, %v11823_v19  ;;  %v11853_v18 = vld [vmem:[#allocation9 + $0x68] sm:$0xff] }
 0x1a8   : > { %9321 = vmatpush3.bf16.msra.mxu0 %v11119_v36  ;;  %v1814_v36 = vstv %s6564_s3  ;;  %s12188_s3 = sld [smem:[#allocation6 + $0x3e]] }
 0x1a9   : > { %9322 = vmatprep.subr.bf16.mxu0 %v13500_v1  ;;  %v1815_v54 = vmul.f32 %v10536_v47, %v1814_v36  ;;  %v2616_v45 = vadd.f32 %v2615_v62, %v2594_v9  ;;  %v11834_v36 = vsub.f32 %v11730_v42, %v1931_v8  ;;  %v11844_v47 = vpack.c.bf16 %v1955_v59, %v1952_v20 }
 0x1aa   : > { %9468 = vmatpush3.bf16.msra.mxu1 %v11133_v10  ;;  %v1964_v9 = vand.u32 4294901760, %v11851_v49 }
 0x1ab   : > { %9469 = vmatprep.subr.bf16.mxu1 %v13500_v1  ;;  %v1834_v14 = vadd.f32 %v1833_v7, %v1815_v54  ;;  %v2638_v29 = vadd.f32 %v2637_v41, %v2616_v45  ;;  %v11860_v54 = vsub.f32 %v11745_v55, %v1934_v63 }
 0x1ac   : > { %9324 = vmatpush3.bf16.msra.mxu0 %v11133_v10  ;;  %v11728_v10 = vld [vmem:[#allocation9] sm:$0xff] }
 0x1ad   : > { %9325 = vmatprep.subr.bf16.mxu0 %v13500_v1  ;;  %v1928_v61 = vand.u32 4294901760, %v11728_v10  ;;  %v2666_v4 = vsel %vm384_vm1, %v2638_v29, %v2656_v32  ;;  %v2035_v32 = vand.u32 4294901760, %v11860_v54 }
 0x1ae   : > { %9471 = vmatpush3.bf16.msra.mxu1 %v11144_v51 }
 0x1af   : > { %9472 = vmatprep.subr.bf16.mxu1 %v13500_v1  ;;  %v11755_v38 = vpack.c.bf16 %v1931_v8, %v1928_v61  ;;  %v11829_v27 = vsub.f32 %v11728_v10, %v1928_v61  ;;  %v1958_v10 = vand.u32 4294901760, %v11821_v26  ;;  %v2028_v61 = vand.u32 4294901760, %v11834_v36 }
 0x1b0   : > { %9327 = vmatpush3.bf16.msra.mxu0 %v11144_v51  ;;  %v1854_v51 = vstv %s11715_s11  ;;  %v2036_v29 = vsub.f32 %v11860_v54, %v2035_v32  ;;  %s12204_s11 = sld [smem:[#allocation6 + $0x3a]] }
 0x1b1   : > { %9328 = vmatprep.subr.bf16.mxu0 %v13500_v1  ;;  %v1855_v35 = vmul.f32 %v10538_v44, %v1854_v51  ;;  %v2021_v51 = vand.u32 4294901760, %v11829_v27  ;;  %v11876_v8 = vpack.c.bf16 %v1961_v5, %v1958_v10  ;;  %v1967_v44 = vand.u32 4294901760, %v11853_v18 }
 0x1b2   : > { %9474 = vmatpush3.bf16.msra.mxu1 %v11156_v2  ;;  %v2029_v37 = vsub.f32 %v11834_v36, %v2028_v61  ;;  %v11982_v20 = vsub.f32 %v11821_v26, %v1958_v10 }
 0x1b3   : > { %9475 = vmatprep.subr.bf16.mxu1 %v13500_v1  ;;  %v11916_v41 = vpack.c.bf16 %v1967_v44, %v1964_v9 }
 0x1b4   : > { %9330 = vmatpush3.bf16.msra.mxu0 %v11156_v2  ;;  %v11747_v2 = vld [vmem:[#allocation9 + $0x18] sm:$0xff]  ;;  %v2030_v23 = vand.u32 4294901760, %v2029_v37 }
 0x1b5   : > { %9331 = vmatprep.subr.bf16.mxu0 %v13500_v1  ;;  %v1937_v43 = vand.u32 4294901760, %v11747_v2 }
 0x1b6   : > { %9477 = vmatpush3.bf16.msra.mxu1 %v11168_v16 }
 0x1b7   : > { %9478 = vmatprep.subr.bf16.mxu1 %v13500_v1  ;;  %v11775_v28 = vpack.c.bf16 %v1937_v43, %v1934_v63  ;;  %v11865_v7 = vsub.f32 %v11747_v2, %v1937_v43  ;;  %v2022_v2 = vsub.f32 %v11829_v27, %v2021_v51 }
 0x1b8   : > { %9333 = vmatpush3.bf16.msra.mxu0 %v11168_v16  ;;  %v1856_v16 = vadd.f32 %v1855_v35, %v1834_v14  ;;  %v11886_v14 = vld [vmem:[#allocation9 + $0x78] sm:$0xff]  ;;  %v11891_v35 = vsub.f32 %v11763_v58, %v1940_v0 }
 0x1b9   : > { %9334 = vmatprep.subr.bf16.mxu0 %v13500_v1  ;;  %v2042_v45 = vand.u32 4294901760, %v11865_v7  ;;  %v1973_v63 = vand.u32 4294901760, %v11886_v14  ;;  %v2023_v58 = vand.u32 4294901760, %v2022_v2  ;;  %v2077_v2 = vand.u32 4294901760, %v11957_v57 }
 0x1ba   : > { %9480 = vmatpush3.bf16.msra.mxu1 %v11177_v22  ;;  %v1878_v52 = vadd.f32 %v1877_v15, %v1856_v16 }
 0x1bb   : > { %9625 = vmatprep.subr.bf16.mxu1 %v13500_v1  ;;  %v2043_v0 = vsub.f32 %v11865_v7, %v2042_v45 }
 0x1bc   : > { %9336 = vmatpush3.bf16.msra.mxu0 %v11177_v22  ;;  %v2660_v22 = vpop.permute.xlu1 %2659  ;;  %v1906_v33 = vsel %vm384_vm1, %v1878_v52, %v1896_v40  ;;  %v1970_v40 = vand.u32 4294901760, %v11884_v13 }
 0x1bd   : > { %7931 = vmatmul.mubr.f32.vlgmr.msra.gmra.mrb[0].mxu1 %v11397_v50  ;;  %9481 = vmatprep.subr.bf16.mxu0 %v13500_v1  ;;  %v11780_v50 = vld [vmem:[#allocation9 + $0x30] sm:$0xff]  ;;  %v2667_v60 = vsel %vm386_vm3, %v2666_v4, %v2660_v22  ;;  %v1907_v6 = vsel %vm386_vm3, %v1906_v33, %v1900_v56  ;;  %v2049_v22 = vand.u32 4294901760, %v11891_v35  ;;  %v11962_v4 = vsub.f32 %v11805_v46, %v1955_v59 }
 0x1be   : > { %9627 = vmatpush3.bf16.msra.mxu1 %v11755_v38  ;;  %8175 = vmatprep.mubr.msk.f32.mxu1 %vm10742_vm0, %v10743_v17  ;;  %v1908_v31 = vsel %vm388_vm2, %v1907_v6, %v1904_v25  ;;  %v11946_v52 = vpack.c.bf16 %v1973_v63, %v1970_v40  ;;  %v2037_v33 = vand.u32 4294901760, %v2036_v29  ;;  %v2070_v6 = vand.u32 4294901760, %v11938_v24 }
 0x1bf   : > { %9628 = vmatprep.subr.bf16.mxu1 %v13500_v1  ;;  %7721 = vmatmul.mubr.f32.vlgmr.msra.gmra.mrb[0].mxu0 %v11404_v30  ;;  %v1946_v30 = vand.u32 4294901760, %v11780_v50  ;;  %v11855_v48 = vand.u32 4294901760, %v1908_v31  ;;  %v2050_v11 = vsub.f32 %v11891_v35, %v2049_v22  ;;  %v11987_v59 = vsub.f32 %v11823_v19, %v1961_v5 }
 0x1c0   : > { %9483 = vmatpush3.bf16.msra.mxu0 %v11755_v38  ;;  %7965 = vmatprep.mubr.msk.f32.mxu0 %vm10742_vm0, %v10743_v17  ;;  %v2664_v3 = vpop.permute.xlu1 %2663  ;;  %v2084_v37 = vand.u32 4294901760, %v11962_v4  ;;  %v2071_v19 = vsub.f32 %v11938_v24, %v2070_v6  ;;  %v12005_v5 = vsub.f32 %v11851_v49, %v1964_v9  ;;  %v12020_v49 = vsub.f32 %v11853_v18, %v1967_v44 }
 0x1c1   : > { %9484 = vmatprep.subr.bf16.mxu0 %v13500_v1  ;;  %v11816_v21 = vpack.c.bf16 %v1949_v34, %v1946_v30  ;;  %v2668_v12 = vsel %vm388_vm2, %v2667_v60, %v2664_v3  ;;  %v11894_v55 = vsub.f32 %v1908_v31, %v11855_v48  ;;  %v11926_v15 = vsub.f32 %v11780_v50, %v1946_v30 }
 0x1c2   : > { %9630 = vmatpush3.bf16.msra.mxu1 %v11775_v28  ;;  %v11848_v42 = vand.u32 4294901760, %v2668_v12  ;;  %v2056_v50 = vand.u32 4294901760, %v11908_v39  ;;  %v9506_v34 = vpack.c.bf16 %v2030_v23, %v2023_v58  ;;  %v2044_v60 = vand.u32 4294901760, %v2043_v0 }
 0x1c3   : > { %9631 = vmatprep.subr.bf16.mxu1 %v13500_v1  ;;  %v2010_v16 = vand.u32 4294901760, %v11894_v55  ;;  %v2063_v3 = vand.u32 4294901760, %v11926_v15  ;;  %v2051_v58 = vand.u32 4294901760, %v2050_v11  ;;  %v2078_v23 = vsub.f32 %v11957_v57, %v2077_v2 }
 0x1c4   : > { %9486 = vmatpush3.bf16.msra.mxu0 %v11775_v28  ;;  %v11881_v62 = vsub.f32 %v2668_v12, %v11848_v42  ;;  %v2057_v46 = vsub.f32 %v11908_v39, %v2056_v50  ;;  %v9509_v31 = vpack.c.bf16 %v2044_v60, %v2037_v33  ;;  %v2085_v29 = vsub.f32 %v11962_v4, %v2084_v37 }
 0x1c5   : > { %9487 = vmatprep.subr.bf16.mxu0 %v13500_v1  ;;  %v2011_v30 = vsub.f32 %v11894_v55, %v2010_v16  ;;  %v2064_v10 = vsub.f32 %v11926_v15, %v2063_v3  ;;  %v2091_v0 = vand.u32 4294901760, %v11982_v20  ;;  %v12027_v33 = vsub.f32 %v11884_v13, %v1970_v40 }
 0x1c6   : > { %9633 = vmatpush3.bf16.msra.mxu1 %v11797_v53  ;;  %v2770_v43 = vand.u32 4294901760, %v11881_v62  ;;  %v2058_v26 = vand.u32 4294901760, %v2057_v46  ;;  %v2079_v60 = vand.u32 4294901760, %v2078_v23  ;;  %v2086_v11 = vand.u32 4294901760, %v2085_v29 }
 0x1c7   : > { %9634 = vmatprep.subr.bf16.mxu1 %v13500_v1  ;;  %v2012_v12 = vand.u32 4294901760, %v2011_v30  ;;  %v2065_v30 = vand.u32 4294901760, %v2064_v10  ;;  %v2092_v18 = vsub.f32 %v11982_v20, %v2091_v0  ;;  %v12038_v46 = vsub.f32 %v11886_v14, %v1973_v63 }
 0x1c8   : > { %9489 = vmatpush3.bf16.msra.mxu0 %v11797_v53  ;;  %v2771_v56 = vsub.f32 %v11881_v62, %v2770_v43  ;;  %v9512_v9 = vpack.c.bf16 %v2058_v26, %v2051_v58  ;;  %v2105_v40 = vand.u32 4294901760, %v12005_v5  ;;  %v2119_v26 = vand.u32 4294901760, %v12027_v33 }
 0x1c9   : > { %9490 = vmatprep.subr.bf16.mxu0 %v13500_v1  ;;  %v2126_v10 = vand.u32 4294901760, %v12038_v46 }
 0x1ca   : > { %9636 = vmatpush3.bf16.msra.mxu1 %v11816_v21  ;;  %v2772_v25 = vand.u32 4294901760, %v2771_v56  ;;  %v2098_v56 = vand.u32 4294901760, %v11987_v59  ;;  %v2106_v14 = vsub.f32 %v12005_v5, %v2105_v40 }
 0x1cb   : > { %9637 = vmatprep.subr.bf16.mxu1 %v13500_v1 }
 0x1cc   : > { %9492 = vmatpush3.bf16.msra.mxu0 %v11816_v21  ;;  %v2099_v44 = vsub.f32 %v11987_v59, %v2098_v56  ;;  %v2107_v23 = vand.u32 4294901760, %v2106_v14  ;;  %v9545_v14 = vpack.c.bf16 %v11987_v59, %v11982_v20  ;;  %v4921_v20 = vstv %s12183_s1  ;;  %s12262_s1 = sld [smem:[#allocation6 + $0x5b]] }
 0x1cd   : > { %9493 = vmatprep.subr.bf16.mxu0 %v13500_v1 }
 0x1ce   : > { %9639 = vmatpush3.bf16.msra.mxu1 %v11844_v47  ;;  %v2100_v58 = vand.u32 4294901760, %v2099_v44  ;;  %v9530_v44 = vpack.c.bf16 %v11834_v36, %v11829_v27  ;;  %v9584_v27 = vpack.c.bf16 %v2056_v50, %v2049_v22  ;;  %v9587_v36 = vpack.c.bf16 %v2070_v6, %v2063_v3 }
 0x1cf   : > { %9640 = vmatprep.subr.bf16.mxu1 %v13500_v1  ;;  %v5681_v3 = vstv %s12181_s25  ;;  %s12256_s25 = sld [smem:[#allocation6 + $0x3b]] }
 0x1d0   : > { %9495 = vmatpush3.bf16.msra.mxu0 %v11844_v47 }
 0x1d1   : > { %9496 = vmatprep.subr.bf16.mxu0 %v13500_v1 }
 0x1d2   : > { %9642 = vmatpush3.bf16.msra.mxu1 %v11876_v8 }
 0x1d3   : > { %9643 = vmatprep.subr.bf16.mxu1 %v13500_v1 }
 0x1d4   : > { %9498 = vmatpush3.bf16.msra.mxu0 %v11876_v8 }
 0x1d5   : > { %9499 = vmatprep.subr.bf16.mxu0 %v13500_v1 }
 0x1d6   : > { %9645 = vmatpush3.bf16.msra.mxu1 %v11916_v41 }
 0x1d7   : > { %9646 = vmatprep.subr.bf16.mxu1 %v13500_v1 }
 0x1d8   : > { %9501 = vmatpush3.bf16.msra.mxu0 %v11916_v41 }
 0x1d9   : > { %9502 = vmatprep.subr.bf16.mxu0 %v13500_v1 }
 0x1da   : > { %9648 = vmatpush3.bf16.msra.mxu1 %v11946_v52 }
 0x1db   : > { %9649 = vmatprep.subr.bf16.mxu1 %v13500_v1 }
 0x1dc   : > { %9504 = vmatpush3.bf16.msra.mxu0 %v11946_v52 }
 0x1dd   : > { %8176 = vmatmul.mubr.f32.vlgmr.msra.gmra.mrb[2].mxu1 %v2772_v25  ;;  %9505 = vmatprep.subr.bf16.mxu0 %v13500_v1  ;;  %v2112_v25 = vand.u32 4294901760, %v12020_v49 }
 0x1de   : > { %9651 = vmatpush3.bf16.msra.mxu1 %v9506_v34  ;;  %8210 = vmatprep.mubr.msk.f32.mxu1 %vm10742_vm0, %v10743_v17 }
 0x1df   : > { %9652 = vmatprep.subr.bf16.mxu1 %v13500_v1  ;;  %7966 = vmatmul.mubr.f32.vlgmr.msra.gmra.mrb[2].mxu0 %v2012_v12  ;;  %v9518_v12 = vpack.c.bf16 %v2086_v11, %v2079_v60  ;;  %v2113_v63 = vsub.f32 %v12020_v49, %v2112_v25 }
 0x1e0   : > { %9507 = vmatpush3.bf16.msra.mxu0 %v9506_v34  ;;  %8000 = vmatprep.mubr.msk.f32.mxu0 %vm10742_vm0, %v10743_v17  ;;  %v2072_v34 = vand.u32 4294901760, %v2071_v19 }
 0x1e1   : > { %9508 = vmatprep.subr.bf16.mxu0 %v13500_v1  ;;  %v2114_v29 = vand.u32 4294901760, %v2113_v63  ;;  %v9548_v63 = vpack.c.bf16 %v12020_v49, %v12005_v5  ;;  %v5664_v5 = vstv %s12196_s30  ;;  %s12329_s30 = sld [smem:[#allocation6 + $0x54]] }
 0x1e2   : > { %9654 = vmatpush3.bf16.msra.mxu1 %v9509_v31  ;;  %v9515_v13 = vpack.c.bf16 %v2072_v34, %v2065_v30  ;;  %v2127_v30 = vsub.f32 %v12038_v46, %v2126_v10 }
 0x1e3   : > { %9655 = vmatprep.subr.bf16.mxu1 %v13500_v1  ;;  %v9524_v34 = vpack.c.bf16 %v2114_v29, %v2107_v23  ;;  %v9578_v23 = vpack.c.bf16 %v2028_v61, %v2021_v51  ;;  %v9581_v29 = vpack.c.bf16 %v2042_v45, %v2035_v32  ;;  %v12194_v51 = vld [vmem:[%s10959_s8 + $0x8] sm:$0xff]  ;;  %v5637_v61 = vstv %s6675_s13  ;;  %s12230_s13 = sld [smem:[#allocation6 + $0x1f]] }
 0x1e4   : > { %9510 = vmatpush3.bf16.msra.mxu0 %v9509_v31  ;;  %v2093_v31 = vand.u32 4294901760, %v2092_v18  ;;  %v2128_v11 = vand.u32 4294901760, %v2127_v30  ;;  %v4877_v32 = vstv %s12170_s5  ;;  %v9590_v45 = vpack.c.bf16 %v2084_v37, %v2077_v2  ;;  %s12240_s5 = sld [smem:[#allocation6 + $0x5f]] }
 0x1e5   : > { %9511 = vmatprep.subr.bf16.mxu0 %v13500_v1 }
 0x1e6   : > { %9657 = vmatpush3.bf16.msra.mxu1 %v9512_v9  ;;  %v9521_v19 = vpack.c.bf16 %v2100_v58, %v2093_v31  ;;  %v9539_v31 = vpack.c.bf16 %v11938_v24, %v11926_v15  ;;  %v9542_v58 = vpack.c.bf16 %v11962_v4, %v11957_v57  ;;  %v4878_v15 = vmul.f32 %v12194_v51, %v4877_v32  ;;  %v12235_v4 = vld [vmem:[%s10959_s8 + $0x18] sm:$0xff] }
 0x1e7   : > { %9658 = vmatprep.subr.bf16.mxu1 %v13500_v1  ;;  %v9593_v24 = vpack.c.bf16 %v2098_v56, %v2091_v0  ;;  %v4899_v57 = vstv %s12174_s7  ;;  %v5682_v37 = vmul.f32 %v12235_v4, %v5681_v3  ;;  %v4922_v0 = vmul.f32 %v12235_v4, %v4921_v20  ;;  %s12254_s7 = sld [smem:[#allocation6 + $0x7f]] }
 0x1e8   : > { %9513 = vmatpush3.bf16.msra.mxu0 %v9512_v9  ;;  %v2120_v9 = vsub.f32 %v12027_v33, %v2119_v26  ;;  %v5622_v56 = vstv %s12186_s2  ;;  %s12264_s2 = sld [smem:[#allocation6 + $0x7b]] }
 0x1e9   : > { %9514 = vmatprep.subr.bf16.mxu0 %v13500_v1 }
 0x1ea   : > { %9660 = vmatpush3.bf16.msra.mxu1 %v9515_v13  ;;  %v2121_v60 = vand.u32 4294901760, %v2120_v9  ;;  %v9596_v9 = vpack.c.bf16 %v2112_v25, %v2105_v40  ;;  %v5686_v25 = vstv %s12219_s23  ;;  %s12436_s23 = sld [smem:[#allocation7 + $0x1]] }
 0x1eb   : > { %9661 = vmatprep.subr.bf16.mxu1 %v13500_v1 }
 0x1ec   : > { %9516 = vmatpush3.bf16.msra.mxu0 %v9515_v13  ;;  %v9527_v18 = vpack.c.bf16 %v2128_v11, %v2121_v60  ;;  %v9533_v13 = vpack.c.bf16 %v11865_v7, %v11860_v54  ;;  %v12191_v54 = vld [vmem:[%s10959_s8] sm:$0xff]  ;;  %v5618_v7 = vstv %s6670_s12  ;;  %s12221_s12 = sld [smem:[#allocation6 + $0x7a]]  ;;  %v5642_v60 = vstv %s12188_s3  ;;  %s6611_s3 = sld [smem:[#allocation6 + $0x30]] }
 0x1ed   : > { %9517 = vmatprep.subr.bf16.mxu0 %v13500_v1 }
 0x1ee   : > { %9663 = vmatpush3.bf16.msra.mxu1 %v9518_v12 }
 0x1ef   : > { %9664 = vmatprep.subr.bf16.mxu1 %v13500_v1 }
 0x1f0   : > { %9519 = vmatpush3.bf16.msra.mxu0 %v9518_v12  ;;  %v9536_v12 = vpack.c.bf16 %v11908_v39, %v11891_v35  ;;  %v5638_v35 = vmul.f32 %v12194_v51, %v5637_v61  ;;  %v12214_v39 = vld [vmem:[%s10959_s8 + $0x10] sm:$0xff] }
 0x1f1   : > { %9520 = vmatprep.subr.bf16.mxu0 %v13500_v1  ;;  %v4900_v2 = vmul.f32 %v12214_v39, %v4899_v57  ;;  %v5665_v40 = vmul.f32 %v12214_v39, %v5664_v5  ;;  %v4931_v57 = vstv %s12264_s2  ;;  %s12852_s2 = sld [smem:[#allocation6 + $0x58]] }
 0x1f2   : > { %9666 = vmatpush3.bf16.msra.mxu1 %v9521_v19 }
 0x1f3   : > { %9667 = vmatprep.subr.bf16.mxu1 %v13500_v1 }
 0x1f4   : > { %9522 = vmatpush3.bf16.msra.mxu0 %v9521_v19  ;;  %v9551_v19 = vpack.c.bf16 %v12038_v46, %v12027_v33 }
 0x1f5   : > { %9523 = vmatprep.subr.bf16.mxu0 %v13500_v1 }
 0x1f6   : > { %9669 = vmatpush3.bf16.msra.mxu1 %v9524_v34 }
 0x1f7   : > { %9670 = vmatprep.subr.bf16.mxu1 %v13500_v1 }
 0x1f8   : > { %9525 = vmatpush3.bf16.msra.mxu0 %v9524_v34  ;;  %v5623_v34 = vmul.f32 %v5622_v56, %v12191_v54 }
 0x1f9   : > { %9526 = vmatprep.subr.bf16.mxu0 %v13500_v1 }
 0x1fa   : > { %9672 = vmatpush3.bf16.msra.mxu1 %v9527_v18 }
 0x1fb   : > { %9673 = vmatprep.subr.bf16.mxu1 %v13500_v1 }
 0x1fc   : > { %9528 = vmatpush3.bf16.msra.mxu0 %v9527_v18  ;;  %v5643_v18 = vmul.f32 %v12194_v51, %v5642_v60 }
 0x1fd   : > { %8211 = vmatmul.mubr.f32.vlgmr.msra.gmra.mrb[2].mxu1 %v11848_v42  ;;  %9529 = vmatprep.subr.bf16.mxu0 %v13500_v1 }
 0x1fe   : > { %9675 = vmatpush3.bf16.msra.mxu1 %v9530_v44  ;;  %8245 = vmatprep.mubr.msk.f32.mxu1 %vm10742_vm0, %v10743_v17 }
 0x1ff   : > { %9676 = vmatprep.subr.bf16.mxu1 %v13500_v1  ;;  %8001 = vmatmul.mubr.f32.vlgmr.msra.gmra.mrb[2].mxu0 %v11855_v48 }
 0x200   : > { %9531 = vmatpush3.bf16.msra.mxu0 %v9530_v44  ;;  %8035 = vmatprep.mubr.msk.f32.mxu0 %vm10742_vm0, %v10743_v17  ;;  %v4862_v44 = vstv %s12198_s9  ;;  %s12331_s9 = sld [smem:[#allocation6 + $0x50]] }
 0x201   : > { %9532 = vmatprep.subr.bf16.mxu0 %v13500_v1 }
 0x202   : > { %9678 = vmatpush3.bf16.msra.mxu1 %v9533_v13 }
 0x203   : > { %9679 = vmatprep.subr.bf16.mxu1 %v13500_v1 }
 0x204   : > { %9534 = vmatpush3.bf16.msra.mxu0 %v9533_v13  ;;  %v4863_v13 = vmul.f32 %v12191_v54, %v4862_v44 }
 0x205   : > { %9535 = vmatprep.subr.bf16.mxu0 %v13500_v1 }
 0x206   : > { %9681 = vmatpush3.bf16.msra.mxu1 %v9536_v12 }
 0x207   : > { %9682 = vmatprep.subr.bf16.mxu1 %v13500_v1 }
 0x208   : > { %9537 = vmatpush3.bf16.msra.mxu0 %v9536_v12  ;;  %v5644_v12 = vadd.f32 %v5643_v18, %v5623_v34  ;;  %v4134_v34 = vstv %s12329_s30  ;;  %s6625_s30 = sld [smem:[#allocation7 + $0x4]] }
 0x209   : > { %9538 = vmatprep.subr.bf16.mxu0 %v13500_v1 }
 0x20a   : > { %9684 = vmatpush3.bf16.msra.mxu1 %v9539_v31 }
 0x20b   : > { %9685 = vmatprep.subr.bf16.mxu1 %v13500_v1 }
 0x20c   : > { %9540 = vmatpush3.bf16.msra.mxu0 %v9539_v31  ;;  %v5687_v31 = vmul.f32 %v12235_v4, %v5686_v25 }
 0x20d   : > { %9541 = vmatprep.subr.bf16.mxu0 %v13500_v1 }
 0x20e   : > { %9687 = vmatpush3.bf16.msra.mxu1 %v9542_v58 }
 0x20f   : > { %9688 = vmatprep.subr.bf16.mxu1 %v13500_v1 }
 0x210   : > { %9543 = vmatpush3.bf16.msra.mxu0 %v9542_v58  ;;  %v4882_v58 = vstv %s12204_s11  ;;  %s12337_s11 = sld [smem:[#allocation6 + $0x74]] }
 0x211   : > { %9544 = vmatprep.subr.bf16.mxu0 %v13500_v1 }
 0x212   : > { %9690 = vmatpush3.bf16.msra.mxu1 %v9545_v14 }
 0x213   : > { %9691 = vmatprep.subr.bf16.mxu1 %v13500_v1 }
 0x214   : > { %9546 = vmatpush3.bf16.msra.mxu0 %v9545_v14  ;;  %v4904_v14 = vstv %s12206_s24  ;;  %s12339_s24 = sld [smem:[#allocation6 + $0x70]] }
 0x215   : > { %9547 = vmatprep.subr.bf16.mxu0 %v13500_v1 }
 0x216   : > { %9693 = vmatpush3.bf16.msra.mxu1 %v9548_v63  ;;  %v4156_v25 = vstv %s12337_s11  ;;  %s6667_s11 = sld [smem:[#allocation7 + $0x6]] }
 0x217   : > { %9694 = vmatprep.subr.bf16.mxu1 %v13500_v1 }
 0x218   : > { %9549 = vmatpush3.bf16.msra.mxu0 %v9548_v63  ;;  %v9599_v63 = vpack.c.bf16 %v2126_v10, %v2119_v26  ;;  %v5669_v10 = vstv %s12240_s5  ;;  %s6669_s5 = sld [smem:[#allocation6 + $0x1c]] }
 0x219   : > { %9550 = vmatprep.subr.bf16.mxu0 %v13500_v1 }
 0x21a   : > { %9696 = vmatpush3.bf16.msra.mxu1 %v9551_v19 }
 0x21b   : > { %9697 = vmatprep.subr.bf16.mxu1 %v13500_v1 }
 0x21c   : > { %9552 = vmatpush3.bf16.msra.mxu0 %v9551_v19  ;;  %v4883_v19 = vmul.f32 %v12194_v51, %v4882_v58  ;;  %v3396_v58 = vstv %s12339_s24  ;;  %s6696_s24 = sshll.u32 %s10722_s18, 10  ;;  %s6371_s18 = scalar_lea.sflag [#allocation4], %s10955_s27 }
 0x21d   : > { %8246 = vmatmul.mubr.f32.vlgmr.msra.gmra.mrb[2].mxu1 %v11881_v62  ;;  %9553 = vmatprep.subr.bf16.mxu0 %v13500_v1  ;;  %v5619_v62 = vmul.f32 %v5618_v7, %v12191_v54  ;;  %v5626_v7 = vstv %s12230_s13  ;;  %s6524_s13 = sshll.u32 %s10955_s27, 6 }
 0x21e   : > { %9699 = vmatpush3.bf16.msra.mxu1 %v11755_v38  ;;  %8280 = vmatprep.mubr.msk.f32.mxu1 %vm10742_vm0, %v10743_v17  ;;  %v4884_v61 = vadd.f32 %v4883_v19, %v4863_v13  ;;  %v5627_v46 = vmul.f32 %v5626_v7, %v12191_v54 }
 0x21f   : > { %9700 = vmatprep.subr.bf16.mxu1 %v13500_v1  ;;  %8036 = vmatmul.mubr.f32.vlgmr.msra.gmra.mrb[2].mxu0 %v11894_v55  ;;  %v4858_v55 = vstv %s12168_s6  ;;  %v5639_v22 = vadd.f32 %v5638_v35, %v5619_v62  ;;  %s12232_s6 = sld [smem:[#allocation6 + $0x3f]]  ;;  %v5670_v35 = vmul.f32 %v12214_v39, %v5669_v10 }
 0x220   : > { %9555 = vmatpush3.bf16.msra.mxu0 %v11755_v38  ;;  %8070 = vmatprep.mubr.msk.f32.mxu0 %vm10742_vm0, %v10743_v17 }
 0x221   : > { %9556 = vmatprep.subr.bf16.mxu0 %v13500_v1 }
 0x222   : > { %9702 = vmatpush3.bf16.msra.mxu1 %v11775_v28 }
 0x223   : > { %9703 = vmatprep.subr.bf16.mxu1 %v13500_v1 }
 0x224   : > { %9558 = vmatpush3.bf16.msra.mxu0 %v11775_v28 }
 0x225   : > { %9559 = vmatprep.subr.bf16.mxu0 %v13500_v1  ;;  %v5647_v33 = vstv %s12232_s6  ;;  %s12546_s6 = scalar_lea.vmem [#allocation11], %s6524_s13 }
 0x226   : > { %9705 = vmatpush3.bf16.msra.mxu1 %v11797_v53  ;;  %v5648_v26 = vmul.f32 %v12194_v51, %v5647_v33 }
 0x227   : > { %9706 = vmatprep.subr.bf16.mxu1 %v13500_v1 }
 0x228   : > { %9561 = vmatpush3.bf16.msra.mxu0 %v11797_v53 }
 0x229   : > { %9562 = vmatprep.subr.bf16.mxu0 %v13500_v1 }
 0x22a   : > { %9708 = vmatpush3.bf16.msra.mxu1 %v11816_v21 }
 0x22b   : > { %9709 = vmatprep.subr.bf16.mxu1 %v13500_v1 }
 0x22c   : > { %9564 = vmatpush3.bf16.msra.mxu0 %v11816_v21 }
 0x22d   : > { %9565 = vmatprep.subr.bf16.mxu0 %v13500_v1 }
 0x22e   : > { %9711 = vmatpush3.bf16.msra.mxu1 %v11844_v47 }
 0x22f   : > { %9712 = vmatprep.subr.bf16.mxu1 %v13500_v1 }
 0x230   : > { %9567 = vmatpush3.bf16.msra.mxu0 %v11844_v47 }
 0x231   : > { %9568 = vmatprep.subr.bf16.mxu0 %v13500_v1 }
 0x232   : > { %9714 = vmatpush3.bf16.msra.mxu1 %v11876_v8 }
 0x233   : > { %9715 = vmatprep.subr.bf16.mxu1 %v13500_v1 }
 0x234   : > { %9570 = vmatpush3.bf16.msra.mxu0 %v11876_v8 }
 0x235   : > { %9571 = vmatprep.subr.bf16.mxu0 %v13500_v1 }
 0x236   : > { %9717 = vmatpush3.bf16.msra.mxu1 %v11916_v41 }
 0x237   : > { %9718 = vmatprep.subr.bf16.mxu1 %v13500_v1 }
 0x238   : > { %9573 = vmatpush3.bf16.msra.mxu0 %v11916_v41 }
 0x239   : > { %9574 = vmatprep.subr.bf16.mxu0 %v13500_v1 }
 0x23a   : > { %9720 = vmatpush3.bf16.msra.mxu1 %v11946_v52 }
 0x23b   : > { %9721 = vmatprep.subr.bf16.mxu1 %v13500_v1 }
 0x23c   : > { %9576 = vmatpush3.bf16.msra.mxu0 %v11946_v52 }
 0x23d   : > { %8281 = vmatmul.mubr.f32.vlgmr.msra.gmra.mrb[2].mxu1 %v2770_v43  ;;  %9577 = vmatprep.subr.bf16.mxu0 %v13500_v1  ;;  %v5659_v43 = vstv %s12172_s10  ;;  %s12245_s10 = sld [smem:[#allocation6 + $0x1b]] }
 0x23e   : > { %9723 = vmatpush3.bf16.msra.mxu1 %v9578_v23  ;;  %8315 = vmatprep.mubr.msk.f32.mxu1 %vm10742_vm0, %v10743_v17  ;;  %v5660_v50 = vmul.f32 %v12214_v39, %v5659_v43  ;;  %v5649_v43 = vadd.f32 %v5648_v26, %v5627_v46  ;;  %v12381_v46 = vld [vmem:[#allocation9 + $0x28] sm:$0xff] }
 0x23f   : > { %9724 = vmatprep.subr.bf16.mxu1 %v13500_v1  ;;  %8071 = vmatmul.mubr.f32.vlgmr.msra.gmra.mrb[2].mxu0 %v2010_v16  ;;  %v4859_v16 = vmul.f32 %v12191_v54, %v4858_v55  ;;  %v5691_v55 = vstv %s12254_s7  ;;  %s6648_s7 = sld [smem:[#allocation6 + $0x18]] }
 0x240   : > { %9579 = vmatpush3.bf16.msra.mxu0 %v9578_v23  ;;  %8105 = vmatprep.mubr.msk.f32.mxu0 %vm10742_vm0, %v10743_v17  ;;  %v5661_v59 = vadd.f32 %v5660_v50, %v5639_v22  ;;  %v4905_v23 = vmul.f32 %v12214_v39, %v4904_v14  ;;  %v4909_v50 = vstv %s12262_s1  ;;  %s12850_s1 = sld [smem:[#allocation6 + $0x5c]] }
 0x241   : > { %9580 = vmatprep.subr.bf16.mxu0 %v13500_v1  ;;  %v4879_v6 = vadd.f32 %v4878_v15, %v4859_v16  ;;  %v5692_v16 = vmul.f32 %v12235_v4, %v5691_v55  ;;  %v4887_v15 = vstv %s12256_s25  ;;  %s6653_s25 = sld [smem:[#allocation6 + $0x38]] }
 0x242   : > { %9726 = vmatpush3.bf16.msra.mxu1 %v9581_v29  ;;  %v5683_v11 = vadd.f32 %v5682_v37, %v5661_v59  ;;  %v4888_v22 = vmul.f32 %v12194_v51, %v4887_v15  ;;  %v4932_v59 = vmul.f32 %v12235_v4, %v4931_v57 }
 0x243   : > { %9727 = vmatprep.subr.bf16.mxu1 %v13500_v1  ;;  %v4901_v30 = vadd.f32 %v4900_v2, %v4879_v6  ;;  %v4866_v32 = vstv %s12245_s10  ;;  %v5671_v6 = vadd.f32 %v5670_v35, %v5649_v43  ;;  %v4910_v2 = vmul.f32 %v12214_v39, %v4909_v50  ;;  %v12421_v50 = vld [vmem:[#allocation9 + $0x48] sm:$0xff]  ;;  %s6674_s10 = sld [smem:[#allocation6 + $0x3c]] }
 0x244   : > { %9582 = vmatpush3.bf16.msra.mxu0 %v9581_v29  ;;  %5695 = vrot.lane.b32.xlu1 %v5683_v11, %s13497_s14  ;;  %v4926_v29 = vstv %s12221_s12  ;;  %v3352_v39 = vstv %s6611_s3  ;;  %v3463_v35 = vand.u32 4294901760, %v12381_v46  ;;  %s12449_s12 = sld [smem:[#allocation7]]  ;;  %s6646_s3 = sld [smem:[#allocation7 + $0x5]] }
 0x245   : > { %9583 = vmatprep.subr.bf16.mxu0 %v13500_v1  ;;  %v4923_v49 = vadd.f32 %v4922_v0, %v4901_v30  ;;  %v5693_v37 = vadd.f32 %v5692_v16, %v5671_v6  ;;  %v10540_v0 = vld [vmem:[%s10959_s8] sm:$0xff] }
 0x246   : > { %9729 = vmatpush3.bf16.msra.mxu1 %v9584_v27 }
 0x247   : > { %9730 = vmatprep.subr.bf16.mxu1 %v13500_v1  ;;  %4935 = vrot.lane.b32.xlu0 %v4923_v49, %s13497_s14  ;;  %s6627_s14 = sld [smem:[#allocation6 + $0x14]]  ;;  %v10542_v49 = vld [vmem:[%s10959_s8 + $0x10] sm:$0xff] }
 0x248   : > { %9585 = vmatpush3.bf16.msra.mxu0 %v9584_v27  ;;  %v5666_v27 = vadd.f32 %v5665_v40, %v5644_v12  ;;  %v4135_v40 = vmul.f32 %v10542_v49, %v4134_v34 }
 0x249   : > { %9586 = vmatprep.subr.bf16.mxu0 %v13500_v1 }
 0x24a   : > { %9732 = vmatpush3.bf16.msra.mxu1 %v9587_v36  ;;  %v5688_v62 = vadd.f32 %v5687_v31, %v5666_v27  ;;  %v12361_v31 = vld [vmem:[#allocation9 + $0x10] sm:$0xff]  ;;  %v3416_v27 = vpop.permute.xlu0 %3415 }
 0x24b   : > { %9733 = vmatprep.subr.bf16.mxu1 %v13500_v1 }
 0x24c   : > { %9588 = vmatpush3.bf16.msra.mxu0 %v9587_v36  ;;  %v4927_v36 = vmul.f32 %v12235_v4, %v4926_v29  ;;  %5699 = vrot.lane.b32.xlu1 %v5688_v62, %s13498_s28  ;;  %v12346_v4 = vld [vmem:[#allocation9 + $0x8] sm:$0xff] }
 0x24d   : > { %9589 = vmatprep.subr.bf16.mxu0 %v13500_v1  ;;  %v3451_v5 = vand.u32 4294901760, %v12346_v4 }
 0x24e   : > { %9735 = vmatpush3.bf16.msra.mxu1 %v9590_v45 }
 0x24f   : > { %9736 = vmatprep.subr.bf16.mxu1 %v13500_v1 }
 0x250   : > { %9591 = vmatpush3.bf16.msra.mxu0 %v9590_v45  ;;  %v4906_v45 = vadd.f32 %v4905_v23, %v4884_v61  ;;  %5703 = vrot.lane.b32.xlu1 %v5693_v37, %s13499_s0  ;;  %v10543_v23 = vld [vmem:[%s10959_s8 + $0x18] sm:$0xff]  ;;  %v12379_v61 = vld [vmem:[#allocation9 + $0x20] sm:$0xff]  ;;  %v3475_v37 = vand.u32 4294901760, %v12421_v50 }
 0x251   : > { %9592 = vmatprep.subr.bf16.mxu0 %v13500_v1  ;;  %v4157_v29 = vmul.f32 %v10543_v23, %v4156_v25  ;;  %v3397_v33 = vmul.f32 %v10543_v23, %v3396_v58  ;;  %v3460_v62 = vand.u32 4294901760, %v12379_v61  ;;  %v407_v58 = vstv %s12449_s12 }
 0x252   : > { %9738 = vmatpush3.bf16.msra.mxu1 %v9593_v24  ;;  %v4928_v3 = vadd.f32 %v4927_v36, %v4906_v45  ;;  %v3454_v36 = vand.u32 4294901760, %v12361_v31  ;;  %v3420_v45 = vpop.permute.xlu0 %3419 }
 0x253   : > { %9739 = vmatprep.subr.bf16.mxu1 %v13500_v1  ;;  %v12413_v16 = vpack.c.bf16 %v3463_v35, %v3460_v62 }
 0x254   : > { %9594 = vmatpush3.bf16.msra.mxu0 %v9593_v24  ;;  %v4867_v24 = vmul.f32 %v12191_v54, %v4866_v32  ;;  %4939 = vrot.lane.b32.xlu0 %v4928_v3, %s13498_s28  ;;  %s6632_s28 = sld [smem:[#allocation6 + $0x34]]  ;;  %v12398_v32 = vld [vmem:[#allocation9 + $0x38] sm:$0xff] }
 0x255   : > { %9595 = vmatprep.subr.bf16.mxu0 %v13500_v1  ;;  %v3469_v15 = vand.u32 4294901760, %v12398_v32 }
 0x256   : > { %9741 = vmatpush3.bf16.msra.mxu1 %v9596_v9  ;;  %v4889_v20 = vadd.f32 %v4888_v22, %v4867_v24  ;;  %v12419_v22 = vld [vmem:[#allocation9 + $0x40] sm:$0xff] }
 0x257   : > { %9742 = vmatprep.subr.bf16.mxu1 %v13500_v1 }
 0x258   : > { %9597 = vmatpush3.bf16.msra.mxu0 %v9596_v9  ;;  %v4911_v54 = vadd.f32 %v4910_v2, %v4889_v20  ;;  %v10541_v9 = vld [vmem:[%s10959_s8 + $0x8] sm:$0xff]  ;;  %v3424_v2 = vpop.permute.xlu0 %3423 }
 0x259   : > { %9598 = vmatprep.subr.bf16.mxu0 %v13500_v1  ;;  %v3353_v11 = vmul.f32 %v10541_v9, %v3352_v39 }
 0x25a   : > { %9744 = vmatpush3.bf16.msra.mxu1 %v9599_v63  ;;  %v4933_v51 = vadd.f32 %v4932_v59, %v4911_v54  ;;  %v3472_v59 = vand.u32 4294901760, %v12419_v22  ;;  %v12439_v54 = vld [vmem:[#allocation9 + $0x50] sm:$0xff] }
 0x25b   : > { %9745 = vmatprep.subr.bf16.mxu1 %v13500_v1 }
 0x25c   : > { %9600 = vmatpush3.bf16.msra.mxu0 %v9599_v63  ;;  %4943 = vrot.lane.b32.xlu0 %v4933_v51, %s13499_s0  ;;  %s6606_s0 = sld [smem:[#allocation6 + $0x10]]  ;;  %v4176_v63 = vpop.permute.xlu1 %4175  ;;  %v12441_v51 = vld [vmem:[#allocation9 + $0x58] sm:$0xff] }
 0x25d   : > { %8316 = vmatmul.mubr.f32.vlgmr.msra.gmra.mrb[2].mxu1 %v11848_v42  ;;  %9601 = vmatprep.subr.bf16.mxu0 %v13500_v1 }
 0x25e   : > { %9747 = vmatpush3.bf16.msra.mxu1 %v11755_v38  ;;  %8350 = vmatprep.mubr.msk.f32.mxu1 %vm10742_vm0, %v10743_v17 }
 0x25f   : > { %9748 = vmatprep.subr.bf16.mxu1 %v13500_v1  ;;  %8106 = vmatmul.mubr.f32.vlgmr.msra.gmra.mrb[2].mxu0 %v11855_v48 }
 0x260   : > { %9603 = vmatpush3.bf16.msra.mxu0 %v11755_v38  ;;  %8140 = vmatprep.mubr.msk.f32.mxu0 %vm10742_vm0, %v10743_v17  ;;  %v4094_v38 = vstv %s6627_s14  ;;  %s12858_s14 = sld [smem:[#allocation6 + $0x7c]] }
 0x261   : > { %9604 = vmatprep.subr.bf16.mxu0 %v13500_v1  ;;  %v4095_v56 = vmul.f32 %v10540_v0, %v4094_v38 }
 0x262   : > { %9750 = vmatpush3.bf16.msra.mxu1 %v11775_v28 }
 0x263   : > { %9751 = vmatprep.subr.bf16.mxu1 %v13500_v1 }
 0x264   : > { %9606 = vmatpush3.bf16.msra.mxu0 %v11775_v28  ;;  %v4112_v28 = vstv %s6632_s28  ;;  %s12860_s28 = sld [smem:[#allocation6 + $0x78]] }
 0x265   : > { %9607 = vmatprep.subr.bf16.mxu0 %v13500_v1  ;;  %v4113_v30 = vmul.f32 %v10541_v9, %v4112_v28  ;;  %v12471_v9 = vld [vmem:[#allocation9 + $0x60] sm:$0xff] }
 0x266   : > { %9753 = vmatpush3.bf16.msra.mxu1 %v11797_v53 }
 0x267   : > { %9754 = vmatprep.subr.bf16.mxu1 %v13500_v1  ;;  %v4114_v44 = vadd.f32 %v4113_v30, %v4095_v56  ;;  %v12473_v30 = vld [vmem:[#allocation9 + $0x68] sm:$0xff] }
 0x268   : > { %9609 = vmatpush3.bf16.msra.mxu0 %v11797_v53  ;;  %v3334_v53 = vstv %s6606_s0  ;;  %s12970_s0 = sld [smem:[#allocation7 + $0x2]] }
 0x269   : > { %9610 = vmatprep.subr.bf16.mxu0 %v13500_v1  ;;  %v3335_v60 = vmul.f32 %v10540_v0, %v3334_v53  ;;  %v4136_v19 = vadd.f32 %v4135_v40, %v4114_v44  ;;  %v12454_v53 = vsub.f32 %v12346_v4, %v3451_v5  ;;  %v3478_v0 = vand.u32 4294901760, %v12439_v54 }
 0x26a   : > { %9756 = vmatpush3.bf16.msra.mxu1 %v11816_v21  ;;  %v3481_v4 = vand.u32 4294901760, %v12441_v51  ;;  %v3487_v40 = vand.u32 4294901760, %v12473_v30 }
 0x26b   : > { %9757 = vmatprep.subr.bf16.mxu1 %v13500_v1  ;;  %v3354_v13 = vadd.f32 %v3353_v11, %v3335_v60  ;;  %v4158_v26 = vadd.f32 %v4157_v29, %v4136_v19  ;;  %v12481_v11 = vsub.f32 %v12361_v31, %v3454_v36  ;;  %v12513_v31 = vsub.f32 %v12379_v61, %v3460_v62 }
 0x26c   : > { %9612 = vmatpush3.bf16.msra.mxu0 %v11816_v21  ;;  %v12344_v21 = vld [vmem:[#allocation9] sm:$0xff]  ;;  %v12498_v44 = vpack.c.bf16 %v3481_v4, %v3478_v0 }
 0x26d   : > { %9613 = vmatprep.subr.bf16.mxu0 %v13500_v1  ;;  %v3448_v18 = vand.u32 4294901760, %v12344_v21  ;;  %v4186_v43 = vsel %vm384_vm1, %v4158_v26, %v4176_v63 }
 0x26e   : > { %9759 = vmatpush3.bf16.msra.mxu1 %v11844_v47 }
 0x26f   : > { %9760 = vmatprep.subr.bf16.mxu1 %v13500_v1  ;;  %v12371_v14 = vpack.c.bf16 %v3451_v5, %v3448_v18  ;;  %v12446_v38 = vsub.f32 %v12344_v21, %v3448_v18  ;;  %v12464_v21 = vpack.c.bf16 %v3475_v37, %v3472_v59  ;;  %v3548_v18 = vand.u32 4294901760, %v12454_v53 }
 0x270   : > { %9615 = vmatpush3.bf16.msra.mxu0 %v11844_v47  ;;  %v3374_v47 = vstv %s12331_s9  ;;  %v1166_v5 = vstv %s12436_s23  ;;  %s6688_s9 = sld [smem:[#allocation7 + $0x7]]  ;;  %s6387_s23 = sshll.u32 %s12546_s6, 4  ;;  %s13394_s23 = int_to_ptr.vmem [resolvable:$true] %s6387_s23 }
 0x271   : > { %9616 = vmatprep.subr.bf16.mxu0 %v13500_v1  ;;  %v3375_v12 = vmul.f32 %v10542_v49, %v3374_v47  ;;  %v3541_v60 = vand.u32 4294901760, %v12446_v38  ;;  %v3484_v49 = vand.u32 4294901760, %v12471_v9 }
 0x272   : > { %9762 = vmatpush3.bf16.msra.mxu1 %v11876_v8 }
 0x273   : > { %9763 = vmatprep.subr.bf16.mxu1 %v13500_v1  ;;  %v3542_v19 = vsub.f32 %v12446_v38, %v3541_v60 }
 0x274   : > { %9618 = vmatpush3.bf16.msra.mxu0 %v11876_v8  ;;  %v12363_v8 = vld [vmem:[#allocation9 + $0x18] sm:$0xff] }
 0x275   : > { %9619 = vmatprep.subr.bf16.mxu0 %v13500_v1  ;;  %v3457_v7 = vand.u32 4294901760, %v12363_v8 }
 0x276   : > { %9765 = vmatpush3.bf16.msra.mxu1 %v11916_v41 }
 0x277   : > { %9766 = vmatprep.subr.bf16.mxu1 %v13500_v1  ;;  %v12391_v10 = vpack.c.bf16 %v3457_v7, %v3454_v36  ;;  %v12486_v47 = vsub.f32 %v12363_v8, %v3457_v7  ;;  %v3555_v36 = vand.u32 4294901760, %v12481_v11 }
 0x278   : > { %9621 = vmatpush3.bf16.msra.mxu0 %v11916_v41  ;;  %v3376_v41 = vadd.f32 %v3375_v12, %v3354_v13  ;;  %v12506_v13 = vld [vmem:[#allocation9 + $0x70] sm:$0xff]  ;;  %v12508_v12 = vld [vmem:[#allocation9 + $0x78] sm:$0xff] }
 0x279   : > { %9622 = vmatprep.subr.bf16.mxu0 %v13500_v1  ;;  %v3562_v7 = vand.u32 4294901760, %v12486_v47  ;;  %v3490_v61 = vand.u32 4294901760, %v12506_v13  ;;  %v3493_v26 = vand.u32 4294901760, %v12508_v12 }
 0x27a   : > { %9768 = vmatpush3.bf16.msra.mxu1 %v11946_v52  ;;  %v3398_v55 = vadd.f32 %v3397_v33, %v3376_v41  ;;  %v12531_v41 = vsub.f32 %v12381_v46, %v3463_v35  ;;  %v12539_v33 = vpack.c.bf16 %v3487_v40, %v3484_v49 }
 0x27b   : > { %9913 = vmatprep.subr.bf16.mxu1 %v13500_v1 }
 0x27c   : > { %9624 = vmatpush3.bf16.msra.mxu0 %v11946_v52  ;;  %v4180_v52 = vpop.permute.xlu1 %4179  ;;  %v3426_v24 = vsel %vm384_vm1, %v3398_v55, %v3416_v27  ;;  %v3549_v27 = vsub.f32 %v12454_v53, %v3548_v18 }
 0x27d   : > { %8351 = vmatmul.mubr.f32.vlgmr.msra.gmra.mrb[2].mxu1 %v11848_v42  ;;  %9769 = vmatprep.subr.bf16.mxu0 %v13500_v1  ;;  %v12396_v42 = vld [vmem:[#allocation9 + $0x30] sm:$0xff]  ;;  %v4187_v57 = vsel %vm386_vm3, %v4186_v43, %v4180_v52  ;;  %v3427_v6 = vsel %vm386_vm3, %v3426_v24, %v3420_v45  ;;  %v3543_v43 = vand.u32 4294901760, %v3542_v19 }
 0x27e   : > { %9915 = vmatpush3.bf16.msra.mxu1 %v12371_v14  ;;  %8595 = vmatprep.mubr.msk.f32.mxu1 %vm10742_vm0, %v10743_v17  ;;  %v3428_v39 = vsel %vm388_vm2, %v3427_v6, %v3424_v2  ;;  %v3550_v24 = vand.u32 4294901760, %v3549_v27  ;;  %v12566_v6 = vsub.f32 %v12398_v32, %v3469_v15  ;;  %v3576_v2 = vand.u32 4294901760, %v12531_v41 }
 0x27f   : > { %9916 = vmatprep.subr.bf16.mxu1 %v13500_v1  ;;  %8141 = vmatmul.mubr.f32.vlgmr.msra.gmra.mrb[2].mxu0 %v11855_v48  ;;  %v3466_v48 = vand.u32 4294901760, %v12396_v42  ;;  %v12475_v34 = vand.u32 4294901760, %v3428_v39 }
 0x280   : > { %9771 = vmatpush3.bf16.msra.mxu0 %v12371_v14  ;;  %8385 = vmatprep.mubr.msk.f32.mxu0 %vm10742_vm0, %v10743_v17  ;;  %v4184_v3 = vpop.permute.xlu1 %4183 }
 0x281   : > { %9772 = vmatprep.subr.bf16.mxu0 %v13500_v1  ;;  %v12432_v20 = vpack.c.bf16 %v3469_v15, %v3466_v48  ;;  %v4188_v28 = vsel %vm388_vm2, %v4187_v57, %v4184_v3  ;;  %v12516_v8 = vsub.f32 %v3428_v39, %v12475_v34  ;;  %v12554_v35 = vsub.f32 %v12396_v42, %v3466_v48 }
 0x282   : > { %9918 = vmatpush3.bf16.msra.mxu1 %v12391_v10  ;;  %v12468_v56 = vand.u32 4294901760, %v4188_v28  ;;  %v3556_v57 = vsub.f32 %v12481_v11, %v3555_v36  ;;  %v3563_v3 = vsub.f32 %v12486_v47, %v3562_v7  ;;  %v12575_v42 = vpack.c.bf16 %v3493_v26, %v3490_v61 }
 0x283   : > { %9919 = vmatprep.subr.bf16.mxu1 %v13500_v1  ;;  %v3530_v46 = vand.u32 4294901760, %v12516_v8  ;;  %v3569_v48 = vand.u32 4294901760, %v12513_v31  ;;  %v12586_v15 = vsub.f32 %v12419_v22, %v3472_v59  ;;  %v3583_v59 = vand.u32 4294901760, %v12554_v35 }
 0x284   : > { %9774 = vmatpush3.bf16.msra.mxu0 %v12391_v10  ;;  %v12503_v25 = vsub.f32 %v4188_v28, %v12468_v56  ;;  %v12591_v28 = vsub.f32 %v12421_v50, %v3475_v37  ;;  %v3577_v50 = vsub.f32 %v12531_v41, %v3576_v2  ;;  %v3590_v37 = vand.u32 4294901760, %v12566_v6 }
 0x285   : > { %9775 = vmatprep.subr.bf16.mxu0 %v13500_v1  ;;  %v3531_v39 = vsub.f32 %v12516_v8, %v3530_v46  ;;  %v3570_v22 = vsub.f32 %v12513_v31, %v3569_v48 }
 0x286   : > { %9921 = vmatpush3.bf16.msra.mxu1 %v12413_v16  ;;  %v4290_v62 = vand.u32 4294901760, %v12503_v25 }
 0x287   : > { %9922 = vmatprep.subr.bf16.mxu1 %v13500_v1  ;;  %v3532_v27 = vand.u32 4294901760, %v3531_v39 }
 0x288   : > { %9777 = vmatpush3.bf16.msra.mxu0 %v12413_v16  ;;  %v4291_v32 = vsub.f32 %v12503_v25, %v4290_v62 }
 0x289   : > { %9778 = vmatprep.subr.bf16.mxu0 %v13500_v1 }
 0x28a   : > { %9924 = vmatpush3.bf16.msra.mxu1 %v12432_v20  ;;  %v4292_v19 = vand.u32 4294901760, %v4291_v32 }
 0x28b   : > { %9925 = vmatprep.subr.bf16.mxu1 %v13500_v1 }
 0x28c   : > { %9780 = vmatpush3.bf16.msra.mxu0 %v12432_v20 }
 0x28d   : > { %9781 = vmatprep.subr.bf16.mxu0 %v13500_v1 }
 0x28e   : > { %9927 = vmatpush3.bf16.msra.mxu1 %v12464_v21 }
 0x28f   : > { %9928 = vmatprep.subr.bf16.mxu1 %v13500_v1 }
 0x290   : > { %v1804_v63 = vpop.f32.mrb[0].mxu1  ;;  %9783 = vmatpush3.bf16.msra.mxu0 %v12464_v21 }
 0x291   : > { %v10346_v23 = vadd.f32 %v1804_v63, %v1166_v5  ;;  %v7932_v29 = vpop.f32.mrb[1].mxu1  ;;  %9784 = vmatprep.subr.bf16.mxu0 %v13500_v1  ;;  %v9794_v5 = vpack.c.bf16 %v3550_v24, %v3543_v43  ;;  %v3564_v63 = vand.u32 4294901760, %v3563_v3  ;;  %v3571_v43 = vand.u32 4294901760, %v3570_v22 }
 0x292   : > { %9930 = vmatpush3.bf16.msra.mxu1 %v12498_v44  ;;  %v1045_v55 = vpop.f32.mrb[0].mxu0  ;;  %v12616_v29 = vsub.f32 %v12441_v51, %v3481_v4  ;;  %v3591_v51 = vsub.f32 %v12566_v6, %v3590_v37  ;;  %v12634_v4 = vsub.f32 %v12471_v9, %v3484_v49  ;;  %v12649_v9 = vsub.f32 %v12473_v30, %v3487_v40 }
 0x293   : > { %6563 = vst [vmem:[%s12546_s6 + $0x8] sm:$0xff] %v10346_v23  ;;  %9931 = vmatprep.subr.bf16.mxu1 %v13500_v1  ;;  %v10345_v52 = vadd.f32 %v1045_v55, %v407_v58  ;;  %v7722_v45 = vpop.f32.mrb[1].mxu0  ;;  %v3557_v58 = vand.u32 4294901760, %v3556_v57  ;;  %v12611_v23 = vsub.f32 %v12439_v54, %v3478_v0  ;;  %v3578_v54 = vand.u32 4294901760, %v3577_v50 }
 0x294   : > { %9786 = vmatpush3.bf16.msra.mxu0 %v12498_v44  ;;  %v3604_v45 = vand.u32 4294901760, %v12591_v28  ;;  %v3584_v0 = vsub.f32 %v12554_v35, %v3583_v59  ;;  %v3618_v32 = vand.u32 4294901760, %v12616_v29  ;;  %v12667_v50 = vsub.f32 %v12508_v12, %v3493_v26 }
 0x295   : > { %1049 = vst [vmem:[%s12546_s6] sm:$0xff] %v10345_v52  ;;  %9787 = vmatprep.subr.bf16.mxu0 %v13500_v1  ;;  %v9797_v55 = vpack.c.bf16 %v3564_v63, %v3557_v58  ;;  %v3597_v52 = vand.u32 4294901760, %v12586_v15  ;;  %v3611_v3 = vand.u32 4294901760, %v12611_v23  ;;  %v9800_v49 = vpack.c.bf16 %v3578_v54, %v3571_v43 }
 0x296   : > { %9933 = vmatpush3.bf16.msra.mxu1 %v12539_v33  ;;  %v3605_v57 = vsub.f32 %v12591_v28, %v3604_v45  ;;  %v3585_v39 = vand.u32 4294901760, %v3584_v0  ;;  %v12656_v58 = vsub.f32 %v12506_v13, %v3490_v61  ;;  %v3619_v40 = vsub.f32 %v12616_v29, %v3618_v32 }
 0x297   : > { %9934 = vmatprep.subr.bf16.mxu1 %v13500_v1  ;;  %v3598_v24 = vsub.f32 %v12586_v15, %v3597_v52  ;;  %v3612_v30 = vsub.f32 %v12611_v23, %v3611_v3  ;;  %v3625_v61 = vand.u32 4294901760, %v12634_v4  ;;  %v3646_v0 = vand.u32 4294901760, %v12667_v50 }
 0x298   : > { %9789 = vmatpush3.bf16.msra.mxu0 %v12539_v33  ;;  %v3606_v22 = vand.u32 4294901760, %v3605_v57  ;;  %v3620_v43 = vand.u32 4294901760, %v3619_v40  ;;  %v3639_v54 = vand.u32 4294901760, %v12656_v58  ;;  %v9818_v40 = vpack.c.bf16 %v12454_v53, %v12446_v38 }
 0x299   : > { %9790 = vmatprep.subr.bf16.mxu0 %v13500_v1  ;;  %v3599_v63 = vand.u32 4294901760, %v3598_v24  ;;  %v3626_v12 = vsub.f32 %v12634_v4, %v3625_v61  ;;  %v9872_v38 = vpack.c.bf16 %v3576_v2, %v3569_v48  ;;  %v9875_v53 = vpack.c.bf16 %v3590_v37, %v3583_v59 }
 0x29a   : > { %9936 = vmatpush3.bf16.msra.mxu1 %v12575_v42  ;;  %v5676_v59 = vstv %s12858_s14 }
 0x29b   : > { %9937 = vmatprep.subr.bf16.mxu1 %v13500_v1  ;;  %v3627_v24 = vand.u32 4294901760, %v3626_v12  ;;  %v9833_v12 = vpack.c.bf16 %v12616_v29, %v12611_v23  ;;  %v12882_v29 = vld [vmem:[#allocation9 + $0x10] sm:$0xff] }
 0x29c   : > { %9792 = vmatpush3.bf16.msra.mxu0 %v12575_v42 }
 0x29d   : > { %8596 = vmatmul.mubr.f32.vlgmr.msra.gmra.mrb[4].mxu1 %v4292_v19  ;;  %9793 = vmatprep.subr.bf16.mxu0 %v13500_v1  ;;  %v3632_v19 = vand.u32 4294901760, %v12649_v9 }
 0x29e   : > { %9939 = vmatpush3.bf16.msra.mxu1 %v9794_v5  ;;  %8630 = vmatprep.mubr.msk.f32.mxu1 %vm10742_vm0, %v10743_v17 }
 0x29f   : > { %9940 = vmatprep.subr.bf16.mxu1 %v13500_v1  ;;  %8386 = vmatmul.mubr.f32.vlgmr.msra.gmra.mrb[4].mxu0 %v3532_v27  ;;  %v9806_v27 = vpack.c.bf16 %v3606_v22, %v3599_v63  ;;  %v3633_v26 = vsub.f32 %v12649_v9, %v3632_v19 }
 0x2a0   : > { %9795 = vmatpush3.bf16.msra.mxu0 %v9794_v5  ;;  %8420 = vmatprep.mubr.msk.f32.mxu0 %vm10742_vm0, %v10743_v17  ;;  %v3592_v5 = vand.u32 4294901760, %v3591_v51 }
 0x2a1   : > { %9796 = vmatprep.subr.bf16.mxu0 %v13500_v1  ;;  %v3634_v57 = vand.u32 4294901760, %v3633_v26  ;;  %v9836_v26 = vpack.c.bf16 %v12649_v9, %v12634_v4 }
 0x2a2   : > { %9942 = vmatpush3.bf16.msra.mxu1 %v9797_v55  ;;  %v9803_v13 = vpack.c.bf16 %v3592_v5, %v3585_v39  ;;  %v3647_v39 = vsub.f32 %v12667_v50, %v3646_v0 }
 0x2a3   : > { %9943 = vmatprep.subr.bf16.mxu1 %v13500_v1  ;;  %v9812_v5 = vpack.c.bf16 %v3634_v57, %v3627_v24  ;;  %v9866_v24 = vpack.c.bf16 %v3548_v18, %v3541_v60  ;;  %v9869_v57 = vpack.c.bf16 %v3562_v7, %v3555_v36  ;;  %v9878_v60 = vpack.c.bf16 %v3604_v45, %v3597_v52  ;;  %v10545_v7 = vld [vmem:[%s10959_s8 + $0x8] sm:$0xff] }
 0x2a4   : > { %9798 = vmatpush3.bf16.msra.mxu0 %v9797_v55  ;;  %v3613_v55 = vand.u32 4294901760, %v3612_v30  ;;  %v3648_v22 = vand.u32 4294901760, %v3647_v39  ;;  %v9887_v18 = vpack.c.bf16 %v3646_v0, %v3639_v54  ;;  %v4916_v52 = vstv %s12860_s28  ;;  %v12902_v0 = vld [vmem:[#allocation9 + $0x28] sm:$0xff] }
 0x2a5   : > { %9799 = vmatprep.subr.bf16.mxu0 %v13500_v1 }
 0x2a6   : > { %9945 = vmatpush3.bf16.msra.mxu1 %v9800_v49  ;;  %v9809_v51 = vpack.c.bf16 %v3620_v43, %v3613_v55  ;;  %v9827_v55 = vpack.c.bf16 %v12566_v6, %v12554_v35  ;;  %v9830_v43 = vpack.c.bf16 %v12591_v28, %v12586_v15  ;;  %v10546_v15 = vld [vmem:[%s10959_s8 + $0x10] sm:$0xff] }
 0x2a7   : > { %9946 = vmatprep.subr.bf16.mxu1 %v13500_v1 }
 0x2a8   : > { %9801 = vmatpush3.bf16.msra.mxu0 %v9800_v49  ;;  %v3640_v49 = vsub.f32 %v12656_v58, %v3639_v54  ;;  %v12900_v54 = vld [vmem:[#allocation9 + $0x20] sm:$0xff] }
 0x2a9   : > { %9802 = vmatprep.subr.bf16.mxu0 %v13500_v1 }
 0x2aa   : > { %9948 = vmatpush3.bf16.msra.mxu1 %v9803_v13  ;;  %v3641_v63 = vand.u32 4294901760, %v3640_v49 }
 0x2ab   : > { %9949 = vmatprep.subr.bf16.mxu1 %v13500_v1 }
 0x2ac   : > { %9804 = vmatpush3.bf16.msra.mxu0 %v9803_v13  ;;  %v9815_v30 = vpack.c.bf16 %v3648_v22, %v3641_v63  ;;  %v9821_v13 = vpack.c.bf16 %v12486_v47, %v12481_v11  ;;  %v9881_v11 = vpack.c.bf16 %v3618_v32, %v3611_v3  ;;  %v9884_v47 = vpack.c.bf16 %v3632_v19, %v3625_v61  ;;  %v10547_v32 = vld [vmem:[%s10959_s8 + $0x18] sm:$0xff] }
 0x2ad   : > { %9805 = vmatprep.subr.bf16.mxu0 %v13500_v1  ;;  %v5677_v9 = vmul.f32 %v10547_v32, %v5676_v59  ;;  %v4917_v19 = vmul.f32 %v10547_v32, %v4916_v52  ;;  %v4983_v63 = vand.u32 4294901760, %v12902_v0  ;;  %v1926_v52 = vstv %s12970_s0 }
 0x2ae   : > { %9951 = vmatpush3.bf16.msra.mxu1 %v9806_v27 }
 0x2af   : > { %9952 = vmatprep.subr.bf16.mxu1 %v13500_v1 }
 0x2b0   : > { %9807 = vmatpush3.bf16.msra.mxu0 %v9806_v27  ;;  %v9824_v27 = vpack.c.bf16 %v12531_v41, %v12513_v31  ;;  %v12867_v31 = vld [vmem:[#allocation9 + $0x8] sm:$0xff] }
 0x2b1   : > { %9808 = vmatprep.subr.bf16.mxu0 %v13500_v1  ;;  %v4971_v48 = vand.u32 4294901760, %v12867_v31 }
 0x2b2   : > { %9954 = vmatpush3.bf16.msra.mxu1 %v9809_v51 }
 0x2b3   : > { %9955 = vmatprep.subr.bf16.mxu1 %v13500_v1 }
 0x2b4   : > { %9810 = vmatpush3.bf16.msra.mxu0 %v9809_v51  ;;  %v9839_v51 = vpack.c.bf16 %v12667_v50, %v12656_v58  ;;  %v4974_v50 = vand.u32 4294901760, %v12882_v29 }
 0x2b5   : > { %9811 = vmatprep.subr.bf16.mxu0 %v13500_v1 }
 0x2b6   : > { %9957 = vmatpush3.bf16.msra.mxu1 %v9812_v5  ;;  %v5696_v4 = vpop.permute.xlu1 %5695 }
 0x2b7   : > { %9958 = vmatprep.subr.bf16.mxu1 %v13500_v1 }
 0x2b8   : > { %9813 = vmatpush3.bf16.msra.mxu0 %v9812_v5  ;;  %v4980_v5 = vand.u32 4294901760, %v12900_v54 }
 0x2b9   : > { %9814 = vmatprep.subr.bf16.mxu0 %v13500_v1  ;;  %v4936_v58 = vpop.permute.xlu0 %4935 }
 0x2ba   : > { %9960 = vmatpush3.bf16.msra.mxu1 %v9815_v30 }
 0x2bb   : > { %9961 = vmatprep.subr.bf16.mxu1 %v13500_v1 }
 0x2bc   : > { %9816 = vmatpush3.bf16.msra.mxu0 %v9815_v30  ;;  %v12919_v30 = vld [vmem:[#allocation9 + $0x38] sm:$0xff] }
 0x2bd   : > { %8631 = vmatmul.mubr.f32.vlgmr.msra.gmra.mrb[4].mxu1 %v12468_v56  ;;  %9817 = vmatprep.subr.bf16.mxu0 %v13500_v1 }
 0x2be   : > { %9963 = vmatpush3.bf16.msra.mxu1 %v9818_v40  ;;  %8665 = vmatprep.mubr.msk.f32.mxu1 %vm10742_vm0, %v10743_v17 }
 0x2bf   : > { %9964 = vmatprep.subr.bf16.mxu1 %v13500_v1  ;;  %8421 = vmatmul.mubr.f32.vlgmr.msra.gmra.mrb[4].mxu0 %v12475_v34 }
 0x2c0   : > { %9819 = vmatpush3.bf16.msra.mxu0 %v9818_v40  ;;  %8455 = vmatprep.mubr.msk.f32.mxu0 %vm10742_vm0, %v10743_v17 }
 0x2c1   : > { %9820 = vmatprep.subr.bf16.mxu0 %v13500_v1 }
 0x2c2   : > { %9966 = vmatpush3.bf16.msra.mxu1 %v9821_v13 }
 0x2c3   : > { %9967 = vmatprep.subr.bf16.mxu1 %v13500_v1 }
 0x2c4   : > { %9822 = vmatpush3.bf16.msra.mxu0 %v9821_v13 }
 0x2c5   : > { %9823 = vmatprep.subr.bf16.mxu0 %v13500_v1 }
 0x2c6   : > { %9969 = vmatpush3.bf16.msra.mxu1 %v9824_v27  ;;  %v4940_v40 = vpop.permute.xlu0 %4939 }
 0x2c7   : > { %9970 = vmatprep.subr.bf16.mxu1 %v13500_v1 }
 0x2c8   : > { %9825 = vmatpush3.bf16.msra.mxu0 %v9824_v27  ;;  %v12934_v27 = vpack.c.bf16 %v4983_v63, %v4980_v5 }
 0x2c9   : > { %9826 = vmatprep.subr.bf16.mxu0 %v13500_v1 }
 0x2ca   : > { %9972 = vmatpush3.bf16.msra.mxu1 %v9827_v55 }
 0x2cb   : > { %9973 = vmatprep.subr.bf16.mxu1 %v13500_v1 }
 0x2cc   : > { %9828 = vmatpush3.bf16.msra.mxu0 %v9827_v55  ;;  %v4989_v55 = vand.u32 4294901760, %v12919_v30 }
 0x2cd   : > { %9829 = vmatprep.subr.bf16.mxu0 %v13500_v1 }
 0x2ce   : > { %9975 = vmatpush3.bf16.msra.mxu1 %v9830_v43 }
 0x2cf   : > { %9976 = vmatprep.subr.bf16.mxu1 %v13500_v1 }
 0x2d0   : > { %9831 = vmatpush3.bf16.msra.mxu0 %v9830_v43 }
 0x2d1   : > { %9832 = vmatprep.subr.bf16.mxu0 %v13500_v1 }
 0x2d2   : > { %9978 = vmatpush3.bf16.msra.mxu1 %v9833_v12 }
 0x2d3   : > { %9979 = vmatprep.subr.bf16.mxu1 %v13500_v1 }
 0x2d4   : > { %9834 = vmatpush3.bf16.msra.mxu0 %v9833_v12  ;;  %v12940_v12 = vld [vmem:[#allocation9 + $0x40] sm:$0xff] }
 0x2d5   : > { %9835 = vmatprep.subr.bf16.mxu0 %v13500_v1 }
 0x2d6   : > { %9981 = vmatpush3.bf16.msra.mxu1 %v9836_v26 }
 0x2d7   : > { %9982 = vmatprep.subr.bf16.mxu1 %v13500_v1 }
 0x2d8   : > { %9837 = vmatpush3.bf16.msra.mxu0 %v9836_v26  ;;  %v12942_v26 = vld [vmem:[#allocation9 + $0x48] sm:$0xff] }
 0x2d9   : > { %9838 = vmatprep.subr.bf16.mxu0 %v13500_v1 }
 0x2da   : > { %9984 = vmatpush3.bf16.msra.mxu1 %v9839_v51 }
 0x2db   : > { %9985 = vmatprep.subr.bf16.mxu1 %v13500_v1 }
 0x2dc   : > { %9840 = vmatpush3.bf16.msra.mxu0 %v9839_v51 }
 0x2dd   : > { %8666 = vmatmul.mubr.f32.vlgmr.msra.gmra.mrb[4].mxu1 %v12503_v25  ;;  %9841 = vmatprep.subr.bf16.mxu0 %v13500_v1  ;;  %v4872_v25 = vstv %s6653_s25 }
 0x2de   : > { %9987 = vmatpush3.bf16.msra.mxu1 %v12371_v14  ;;  %8700 = vmatprep.mubr.msk.f32.mxu1 %vm10742_vm0, %v10743_v17  ;;  %v4873_v35 = vmul.f32 %v10545_v7, %v4872_v25 }
 0x2df   : > { %9988 = vmatprep.subr.bf16.mxu1 %v13500_v1  ;;  %8456 = vmatmul.mubr.f32.vlgmr.msra.gmra.mrb[4].mxu0 %v12516_v8  ;;  %v10544_v8 = vld [vmem:[%s10959_s8] sm:$0xff]  ;;  %s12957_s8 = sld [smem:[#allocation7 + $0x3]] }
 0x2e0   : > { %9843 = vmatpush3.bf16.msra.mxu0 %v12371_v14  ;;  %8490 = vmatprep.mubr.msk.f32.mxu0 %vm10742_vm0, %v10743_v17 }
 0x2e1   : > { %9844 = vmatprep.subr.bf16.mxu0 %v13500_v1 }
 0x2e2   : > { %9990 = vmatpush3.bf16.msra.mxu1 %v12391_v10 }
 0x2e3   : > { %9991 = vmatprep.subr.bf16.mxu1 %v13500_v1 }
 0x2e4   : > { %9846 = vmatpush3.bf16.msra.mxu0 %v12391_v10 }
 0x2e5   : > { %9847 = vmatprep.subr.bf16.mxu0 %v13500_v1 }
 0x2e6   : > { %9993 = vmatpush3.bf16.msra.mxu1 %v12413_v16 }
 0x2e7   : > { %9994 = vmatprep.subr.bf16.mxu1 %v13500_v1 }
 0x2e8   : > { %9849 = vmatpush3.bf16.msra.mxu0 %v12413_v16 }
 0x2e9   : > { %9850 = vmatprep.subr.bf16.mxu0 %v13500_v1 }
 0x2ea   : > { %9996 = vmatpush3.bf16.msra.mxu1 %v12432_v20 }
 0x2eb   : > { %9997 = vmatprep.subr.bf16.mxu1 %v13500_v1 }
 0x2ec   : > { %9852 = vmatpush3.bf16.msra.mxu0 %v12432_v20 }
 0x2ed   : > { %9853 = vmatprep.subr.bf16.mxu0 %v13500_v1 }
 0x2ee   : > { %9999 = vmatpush3.bf16.msra.mxu1 %v12464_v21 }
 0x2ef   : > { %10000 = vmatprep.subr.bf16.mxu1 %v13500_v1 }
 0x2f0   : > { %9855 = vmatpush3.bf16.msra.mxu0 %v12464_v21 }
 0x2f1   : > { %9856 = vmatprep.subr.bf16.mxu0 %v13500_v1 }
 0x2f2   : > { %10002 = vmatpush3.bf16.msra.mxu1 %v12498_v44 }
 0x2f3   : > { %10003 = vmatprep.subr.bf16.mxu1 %v13500_v1 }
 0x2f4   : > { %9858 = vmatpush3.bf16.msra.mxu0 %v12498_v44 }
 0x2f5   : > { %9859 = vmatprep.subr.bf16.mxu0 %v13500_v1 }
 0x2f6   : > { %10005 = vmatpush3.bf16.msra.mxu1 %v12539_v33 }
 0x2f7   : > { %10006 = vmatprep.subr.bf16.mxu1 %v13500_v1 }
 0x2f8   : > { %9861 = vmatpush3.bf16.msra.mxu0 %v12539_v33 }
 0x2f9   : > { %9862 = vmatprep.subr.bf16.mxu0 %v13500_v1 }
 0x2fa   : > { %10008 = vmatpush3.bf16.msra.mxu1 %v12575_v42 }
 0x2fb   : > { %10009 = vmatprep.subr.bf16.mxu1 %v13500_v1 }
 0x2fc   : > { %9864 = vmatpush3.bf16.msra.mxu0 %v12575_v42 }
 0x2fd   : > { %8701 = vmatmul.mubr.f32.vlgmr.msra.gmra.mrb[4].mxu1 %v4290_v62  ;;  %9865 = vmatprep.subr.bf16.mxu0 %v13500_v1  ;;  %v5654_v62 = vstv %s12850_s1 }
 0x2fe   : > { %10011 = vmatpush3.bf16.msra.mxu1 %v9866_v24  ;;  %8735 = vmatprep.mubr.msk.f32.mxu1 %vm10742_vm0, %v10743_v17  ;;  %v5655_v28 = vmul.f32 %v10546_v15, %v5654_v62 }
 0x2ff   : > { %10012 = vmatprep.subr.bf16.mxu1 %v13500_v1  ;;  %8491 = vmatmul.mubr.f32.vlgmr.msra.gmra.mrb[4].mxu0 %v3530_v46 }
 0x300   : > { %9867 = vmatpush3.bf16.msra.mxu0 %v9866_v24  ;;  %8525 = vmatprep.mubr.msk.f32.mxu0 %vm10742_vm0, %v10743_v17 }
 0x301   : > { %9868 = vmatprep.subr.bf16.mxu0 %v13500_v1 }
 0x302   : > { %10014 = vmatpush3.bf16.msra.mxu1 %v9869_v57 }
 0x303   : > { %10015 = vmatprep.subr.bf16.mxu1 %v13500_v1 }
 0x304   : > { %9870 = vmatpush3.bf16.msra.mxu0 %v9869_v57 }
 0x305   : > { %9871 = vmatprep.subr.bf16.mxu0 %v13500_v1 }
 0x306   : > { %10017 = vmatpush3.bf16.msra.mxu1 %v9872_v38 }
 0x307   : > { %10018 = vmatprep.subr.bf16.mxu1 %v13500_v1 }
 0x308   : > { %9873 = vmatpush3.bf16.msra.mxu0 %v9872_v38  ;;  %v4944_v38 = vpop.permute.xlu0 %4943 }
 0x309   : > { %9874 = vmatprep.subr.bf16.mxu0 %v13500_v1 }
 0x30a   : > { %10020 = vmatpush3.bf16.msra.mxu1 %v9875_v53 }
 0x30b   : > { %10021 = vmatprep.subr.bf16.mxu1 %v13500_v1 }
 0x30c   : > { %9876 = vmatpush3.bf16.msra.mxu0 %v9875_v53 }
 0x30d   : > { %9877 = vmatprep.subr.bf16.mxu0 %v13500_v1 }
 0x30e   : > { %10023 = vmatpush3.bf16.msra.mxu1 %v9878_v60 }
 0x30f   : > { %10024 = vmatprep.subr.bf16.mxu1 %v13500_v1 }
 0x310   : > { %9879 = vmatpush3.bf16.msra.mxu0 %v9878_v60  ;;  %v4992_v60 = vand.u32 4294901760, %v12940_v12 }
 0x311   : > { %9880 = vmatprep.subr.bf16.mxu0 %v13500_v1 }
 0x312   : > { %10026 = vmatpush3.bf16.msra.mxu1 %v9881_v11 }
 0x313   : > { %10027 = vmatprep.subr.bf16.mxu1 %v13500_v1 }
 0x314   : > { %9882 = vmatpush3.bf16.msra.mxu0 %v9881_v11  ;;  %v4995_v11 = vand.u32 4294901760, %v12942_v26 }
 0x315   : > { %9883 = vmatprep.subr.bf16.mxu0 %v13500_v1 }
 0x316   : > { %10029 = vmatpush3.bf16.msra.mxu1 %v9884_v47 }
 0x317   : > { %10030 = vmatprep.subr.bf16.mxu1 %v13500_v1 }
 0x318   : > { %9885 = vmatpush3.bf16.msra.mxu0 %v9884_v47  ;;  %v12960_v47 = vld [vmem:[#allocation9 + $0x50] sm:$0xff] }
 0x319   : > { %9886 = vmatprep.subr.bf16.mxu0 %v13500_v1 }
 0x31a   : > { %10032 = vmatpush3.bf16.msra.mxu1 %v9887_v18 }
 0x31b   : > { %10033 = vmatprep.subr.bf16.mxu1 %v13500_v1 }
 0x31c   : > { %9888 = vmatpush3.bf16.msra.mxu0 %v9887_v18  ;;  %v12962_v18 = vld [vmem:[#allocation9 + $0x58] sm:$0xff] }
 0x31d   : > { %8736 = vmatmul.mubr.f32.vlgmr.msra.gmra.mrb[4].mxu1 %v12468_v56  ;;  %9889 = vmatprep.subr.bf16.mxu0 %v13500_v1 }
 0x31e   : > { %10035 = vmatpush3.bf16.msra.mxu1 %v12371_v14  ;;  %8770 = vmatprep.mubr.msk.f32.mxu1 %vm10742_vm0, %v10743_v17 }
 0x31f   : > { %10036 = vmatprep.subr.bf16.mxu1 %v13500_v1  ;;  %8526 = vmatmul.mubr.f32.vlgmr.msra.gmra.mrb[4].mxu0 %v12475_v34 }
 0x320   : > { %9891 = vmatpush3.bf16.msra.mxu0 %v12371_v14  ;;  %8560 = vmatprep.mubr.msk.f32.mxu0 %vm10742_vm0, %v10743_v17  ;;  %v5614_v14 = vstv %s6669_s5  ;;  %s13392_s5 = scalar_lea.hbm %s13448_s4, %s6696_s24 }
 0x321   : > { %9892 = vmatprep.subr.bf16.mxu0 %v13500_v1  ;;  %v5615_v36 = vmul.f32 %v10544_v8, %v5614_v14 }
 0x322   : > { %10038 = vmatpush3.bf16.msra.mxu1 %v12391_v10 }
 0x323   : > { %10039 = vmatprep.subr.bf16.mxu1 %v13500_v1 }
 0x324   : > { %9894 = vmatpush3.bf16.msra.mxu0 %v12391_v10  ;;  %v5632_v10 = vstv %s6674_s10  ;;  %s10636_s10 = scalar_lea.vmem %s13394_s23, 1024 }
 0x325   : > { %9895 = vmatprep.subr.bf16.mxu0 %v13500_v1  ;;  %v5633_v41 = vmul.f32 %v10545_v7, %v5632_v10  ;;  %v12992_v7 = vld [vmem:[#allocation9 + $0x60] sm:$0xff]  ;;  %p10637_p1 = scmp.ne.s32.totalorder %s13394_s23, %s10636_s10 }
 0x326   : > { %10041 = vmatpush3.bf16.msra.mxu1 %v12413_v16 }
 0x327   : > { %10042 = vmatprep.subr.bf16.mxu1 %v13500_v1  ;;  %v5634_v2 = vadd.f32 %v5633_v41, %v5615_v36  ;;  %v12994_v41 = vld [vmem:[#allocation9 + $0x68] sm:$0xff]  ;;  %p10638_p6 = pnand %p10637_p1, %p10894_p2 }
 0x328   : > { %9897 = vmatpush3.bf16.msra.mxu0 %v12413_v16  ;;  %v4854_v16 = vstv %s6648_s7  ;;  %s10744_s7 = smov [#allocation11]  }
 0x329   : > { %9898 = vmatprep.subr.bf16.mxu0 %v13500_v1  ;;  %v4855_v46 = vmul.f32 %v10544_v8, %v4854_v16  ;;  %v5656_v3 = vadd.f32 %v5655_v28, %v5634_v2  ;;  %v12975_v16 = vsub.f32 %v12867_v31, %v4971_v48  ;;  %v4998_v8 = vand.u32 4294901760, %v12960_v47  ;;  %p10639_p4 = pneg %p10638_p6  ;;  %s10640_s25 = sshll.u32 %s10744_s7, 4  ;;  %s10641_s25 = int_to_ptr.vmem [resolvable:$false] %s10640_s25 }
 0x32a   : > { %10044 = vmatpush3.bf16.msra.mxu1 %v12432_v20  ;;  %v5001_v31 = vand.u32 4294901760, %v12962_v18  ;;  %v5007_v28 = vand.u32 4294901760, %v12994_v41  ;;  %s10642_s1 = scalar_lea.vmem %s10641_s25, 2048  ;;  %p10643_p8 = scmp.lt.s32.totalorder %s13394_s23, %s10641_s25 }
 0x32b   : > { %10045 = vmatprep.subr.bf16.mxu1 %v13500_v1  ;;  %v4874_v37 = vadd.f32 %v4873_v35, %v4855_v46  ;;  %v5678_v49 = vadd.f32 %v5677_v9, %v5656_v3  ;;  %v13002_v35 = vsub.f32 %v12882_v29, %v4974_v50  ;;  %v13033_v29 = vsub.f32 %v12900_v54, %v4980_v5  ;;  %p10644_p3 = scmp.lt.s32.totalorder %s10642_s1, %s10636_s10 }
 0x32c   : > { %9900 = vmatpush3.bf16.msra.mxu0 %v12432_v20  ;;  %v12865_v20 = vld [vmem:[#allocation9] sm:$0xff]  ;;  %v13018_v2 = vpack.c.bf16 %v5001_v31, %v4998_v8 }
 0x32d   : > { %9901 = vmatprep.subr.bf16.mxu0 %v13500_v1  ;;  %v4968_v6 = vand.u32 4294901760, %v12865_v20  ;;  %v5706_v13 = vsel %vm384_vm1, %v5678_v49, %v5696_v4  ;;  %p10645_p5 = por %p10644_p3, %p10643_p8 }
 0x32e   : > { %10047 = vmatpush3.bf16.msra.mxu1 %v12464_v21 }
 0x32f   : > { %10048 = vmatprep.subr.bf16.mxu1 %v13500_v1  ;;  %v12892_v45 = vpack.c.bf16 %v4971_v48, %v4968_v6  ;;  %v12967_v14 = vsub.f32 %v12865_v20, %v4968_v6  ;;  %v12985_v20 = vpack.c.bf16 %v4995_v11, %v4992_v60  ;;  %v5068_v6 = vand.u32 4294901760, %v12975_v16  ;;  %p10646_p10 = pnand %p10645_p5, %p10639_p4 }
 0x330   : > { %9903 = vmatpush3.bf16.msra.mxu0 %v12464_v21  ;;  %v4894_v21 = vstv %s12852_s2  ;;  %v2686_v48 = vstv %s12957_s8 }
 0x331   : > { %9904 = vmatprep.subr.bf16.mxu0 %v13500_v1  ;;  %v4895_v23 = vmul.f32 %v10546_v15, %v4894_v21  ;;  %v5061_v46 = vand.u32 4294901760, %v12967_v14  ;;  %v5004_v15 = vand.u32 4294901760, %v12992_v7 }
 0x332   : > { %10050 = vmatpush3.bf16.msra.mxu1 %v12498_v44 }
 0x333   : > { %10051 = vmatprep.subr.bf16.mxu1 %v13500_v1  ;;  %v5062_v3 = vsub.f32 %v12967_v14, %v5061_v46 }
 0x334   : > { %9906 = vmatpush3.bf16.msra.mxu0 %v12498_v44  ;;  %v12884_v44 = vld [vmem:[#allocation9 + $0x18] sm:$0xff] }
 0x335   : > { %9907 = vmatprep.subr.bf16.mxu0 %v13500_v1  ;;  %v4977_v61 = vand.u32 4294901760, %v12884_v44 }
 0x336   : > { %10053 = vmatpush3.bf16.msra.mxu1 %v12539_v33 }
 0x337   : > { %10054 = vmatprep.subr.bf16.mxu1 %v13500_v1  ;;  %v12912_v39 = vpack.c.bf16 %v4977_v61, %v4974_v50  ;;  %v13007_v21 = vsub.f32 %v12884_v44, %v4977_v61  ;;  %v5075_v50 = vand.u32 4294901760, %v13002_v35 }
 0x338   : > { %9909 = vmatpush3.bf16.msra.mxu0 %v12539_v33  ;;  %v4896_v33 = vadd.f32 %v4895_v23, %v4874_v37  ;;  %v13026_v37 = vld [vmem:[#allocation9 + $0x70] sm:$0xff]  ;;  %v13028_v23 = vld [vmem:[#allocation9 + $0x78] sm:$0xff] }
 0x339   : > { %9910 = vmatprep.subr.bf16.mxu0 %v13500_v1  ;;  %v5082_v61 = vand.u32 4294901760, %v13007_v21  ;;  %v5010_v54 = vand.u32 4294901760, %v13026_v37  ;;  %v5013_v49 = vand.u32 4294901760, %v13028_v23 }
 0x33a   : > { %10056 = vmatpush3.bf16.msra.mxu1 %v12575_v42  ;;  %v4918_v22 = vadd.f32 %v4917_v19, %v4896_v33  ;;  %v13051_v33 = vsub.f32 %v12902_v0, %v4983_v63  ;;  %v13059_v19 = vpack.c.bf16 %v5007_v28, %v5004_v15 }
 0x33b   : > { %10201 = vmatprep.subr.bf16.mxu1 %v13500_v1 }
 0x33c   : > { %9912 = vmatpush3.bf16.msra.mxu0 %v12575_v42  ;;  %v5700_v42 = vpop.permute.xlu1 %5699  ;;  %v4946_v43 = vsel %vm384_vm1, %v4918_v22, %v4936_v58  ;;  %v5069_v58 = vsub.f32 %v12975_v16, %v5068_v6 }
 0x33d   : > { %8771 = vmatmul.mubr.f32.vlgmr.msra.gmra.mrb[4].mxu1 %v12468_v56  ;;  %10057 = vmatprep.subr.bf16.mxu0 %v13500_v1  ;;  %v12917_v56 = vld [vmem:[#allocation9 + $0x30] sm:$0xff]  ;;  %v5707_v51 = vsel %vm386_vm3, %v5706_v13, %v5700_v42  ;;  %v4947_v57 = vsel %vm386_vm3, %v4946_v43, %v4940_v40  ;;  %v5063_v13 = vand.u32 4294901760, %v5062_v3 }
 0x33e   : > { %10203 = vmatpush3.bf16.msra.mxu1 %v12892_v45  ;;  %9015 = vmatprep.mubr.msk.f32.mxu1 %vm10742_vm0, %v10743_v17  ;;  %v4948_v25 = vsel %vm388_vm2, %v4947_v57, %v4944_v38  ;;  %v5070_v43 = vand.u32 4294901760, %v5069_v58  ;;  %v13082_v57 = vsub.f32 %v12919_v30, %v4989_v55  ;;  %v5096_v38 = vand.u32 4294901760, %v13051_v33 }
 0x33f   : > { %10204 = vmatprep.subr.bf16.mxu1 %v13500_v1  ;;  %8561 = vmatmul.mubr.f32.vlgmr.msra.gmra.mrb[4].mxu0 %v12475_v34  ;;  %v4986_v34 = vand.u32 4294901760, %v12917_v56  ;;  %v12996_v62 = vand.u32 4294901760, %v4948_v25 }
 0x340   : > { %10059 = vmatpush3.bf16.msra.mxu0 %v12892_v45  ;;  %8805 = vmatprep.mubr.msk.f32.mxu0 %vm10742_vm0, %v10743_v17  ;;  %v5704_v24 = vpop.permute.xlu1 %5703 }
 0x341   : > { %10060 = vmatprep.subr.bf16.mxu0 %v13500_v1  ;;  %v12953_v53 = vpack.c.bf16 %v4989_v55, %v4986_v34  ;;  %v5708_v10 = vsel %vm388_vm2, %v5707_v51, %v5704_v24  ;;  %v13036_v44 = vsub.f32 %v4948_v25, %v12996_v62  ;;  %v13070_v63 = vsub.f32 %v12917_v56, %v4986_v34 }
 0x342   : > { %10206 = vmatpush3.bf16.msra.mxu1 %v12912_v39  ;;  %v12989_v36 = vand.u32 4294901760, %v5708_v10  ;;  %v5076_v51 = vsub.f32 %v13002_v35, %v5075_v50  ;;  %v5083_v24 = vsub.f32 %v13007_v21, %v5082_v61  ;;  %v13091_v56 = vpack.c.bf16 %v5013_v49, %v5010_v54 }
 0x343   : > { %10207 = vmatprep.subr.bf16.mxu1 %v13500_v1  ;;  %v5050_v0 = vand.u32 4294901760, %v13036_v44  ;;  %v5089_v34 = vand.u32 4294901760, %v13033_v29  ;;  %v13102_v55 = vsub.f32 %v12940_v12, %v4992_v60  ;;  %v5103_v60 = vand.u32 4294901760, %v13070_v63 }
 0x344   : > { %10062 = vmatpush3.bf16.msra.mxu0 %v12912_v39  ;;  %v13023_v59 = vsub.f32 %v5708_v10, %v12989_v36  ;;  %v13107_v10 = vsub.f32 %v12942_v26, %v4995_v11  ;;  %v5097_v26 = vsub.f32 %v13051_v33, %v5096_v38  ;;  %v5110_v11 = vand.u32 4294901760, %v13082_v57 }
 0x345   : > { %10063 = vmatprep.subr.bf16.mxu0 %v13500_v1  ;;  %v5051_v25 = vsub.f32 %v13036_v44, %v5050_v0  ;;  %v5090_v12 = vsub.f32 %v13033_v29, %v5089_v34 }
 0x346   : > { %10209 = vmatpush3.bf16.msra.mxu1 %v12934_v27  ;;  %v5810_v5 = vand.u32 4294901760, %v13023_v59 }
 0x347   : > { %10210 = vmatprep.subr.bf16.mxu1 %v13500_v1  ;;  %v5052_v58 = vand.u32 4294901760, %v5051_v25 }
 0x348   : > { %10065 = vmatpush3.bf16.msra.mxu0 %v12934_v27  ;;  %v5811_v30 = vsub.f32 %v13023_v59, %v5810_v5 }
 0x349   : > { %10066 = vmatprep.subr.bf16.mxu0 %v13500_v1 }
 0x34a   : > { %10212 = vmatpush3.bf16.msra.mxu1 %v12953_v53  ;;  %v5812_v3 = vand.u32 4294901760, %v5811_v30 }
 0x34b   : > { %10213 = vmatprep.subr.bf16.mxu1 %v13500_v1 }
 0x34c   : > { %10068 = vmatpush3.bf16.msra.mxu0 %v12953_v53 }
 0x34d   : > { %10069 = vmatprep.subr.bf16.mxu0 %v13500_v1 }
 0x34e   : > { %10215 = vmatpush3.bf16.msra.mxu1 %v12985_v20 }
 0x34f   : > { %10216 = vmatprep.subr.bf16.mxu1 %v13500_v1 }
 0x350   : > { %v3324_v4 = vpop.f32.mrb[2].mxu1  ;;  %10071 = vmatpush3.bf16.msra.mxu0 %v12985_v20 }
 0x351   : > { %v10348_v32 = vadd.f32 %v3324_v4, %v2686_v48  ;;  %v8352_v9 = vpop.f32.mrb[3].mxu1  ;;  %10072 = vmatprep.subr.bf16.mxu0 %v13500_v1  ;;  %v10082_v48 = vpack.c.bf16 %v5070_v43, %v5063_v13  ;;  %v5084_v4 = vand.u32 4294901760, %v5083_v24  ;;  %v5091_v13 = vand.u32 4294901760, %v5090_v12 }
 0x352   : > { %10218 = vmatpush3.bf16.msra.mxu1 %v13018_v2  ;;  %v2564_v22 = vpop.f32.mrb[2].mxu0  ;;  %v13132_v9 = vsub.f32 %v12962_v18, %v5001_v31  ;;  %v5111_v18 = vsub.f32 %v13082_v57, %v5110_v11  ;;  %v13150_v31 = vsub.f32 %v12992_v7, %v5004_v15  ;;  %v13165_v7 = vsub.f32 %v12994_v41, %v5007_v28 }
 0x353   : > { %6605 = vst [vmem:[%s12546_s6 + $0x18] sm:$0xff] %v10348_v32  ;;  %10219 = vmatprep.subr.bf16.mxu1 %v13500_v1  ;;  %v10347_v42 = vadd.f32 %v2564_v22, %v1926_v52  ;;  %v8142_v40 = vpop.f32.mrb[3].mxu0  ;;  %v5077_v52 = vand.u32 4294901760, %v5076_v51  ;;  %v13127_v32 = vsub.f32 %v12960_v47, %v4998_v8  ;;  %v5098_v47 = vand.u32 4294901760, %v5097_v26 }
 0x354   : > { %10074 = vmatpush3.bf16.msra.mxu0 %v13018_v2  ;;  %v5124_v40 = vand.u32 4294901760, %v13107_v10  ;;  %v5104_v8 = vsub.f32 %v13070_v63, %v5103_v60  ;;  %v5138_v30 = vand.u32 4294901760, %v13132_v9  ;;  %v13183_v26 = vsub.f32 %v13028_v23, %v5013_v49 }
 0x355   : > { %6584 = vst [vmem:[%s12546_s6 + $0x10] sm:$0xff] %v10347_v42  ;;  %10075 = vmatprep.subr.bf16.mxu0 %v13500_v1  ;;  %v10085_v22 = vpack.c.bf16 %v5084_v4, %v5077_v52  ;;  %v5117_v42 = vand.u32 4294901760, %v13102_v55  ;;  %v5131_v24 = vand.u32 4294901760, %v13127_v32  ;;  %v10088_v15 = vpack.c.bf16 %v5098_v47, %v5091_v13 }
 0x356   : > { %10221 = vmatpush3.bf16.msra.mxu1 %v13059_v19  ;;  %v5125_v51 = vsub.f32 %v13107_v10, %v5124_v40  ;;  %v5105_v25 = vand.u32 4294901760, %v5104_v8  ;;  %v13172_v52 = vsub.f32 %v13026_v37, %v5010_v54  ;;  %v5139_v28 = vsub.f32 %v13132_v9, %v5138_v30 }
 0x357   : > { %10222 = vmatprep.subr.bf16.mxu1 %v13500_v1  ;;  %v5118_v43 = vsub.f32 %v13102_v55, %v5117_v42  ;;  %v5132_v41 = vsub.f32 %v13127_v32, %v5131_v24  ;;  %v5145_v54 = vand.u32 4294901760, %v13150_v31  ;;  %v5166_v8 = vand.u32 4294901760, %v13183_v26 }
 0x358   : > { %10077 = vmatpush3.bf16.msra.mxu0 %v13059_v19  ;;  %v5126_v12 = vand.u32 4294901760, %v5125_v51  ;;  %v5140_v13 = vand.u32 4294901760, %v5139_v28  ;;  %v5159_v47 = vand.u32 4294901760, %v13172_v52  ;;  %v10106_v28 = vpack.c.bf16 %v12975_v16, %v12967_v14 }
 0x359   : > { %10078 = vmatprep.subr.bf16.mxu0 %v13500_v1  ;;  %v5119_v4 = vand.u32 4294901760, %v5118_v43  ;;  %v5146_v23 = vsub.f32 %v13150_v31, %v5145_v54  ;;  %v10160_v14 = vpack.c.bf16 %v5096_v38, %v5089_v34  ;;  %v10163_v16 = vpack.c.bf16 %v5110_v11, %v5103_v60 }
 0x35a   : > { %10224 = vmatpush3.bf16.msra.mxu1 %v13091_v56 }
 0x35b   : > { %10225 = vmatprep.subr.bf16.mxu1 %v13500_v1  ;;  %v5147_v43 = vand.u32 4294901760, %v5146_v23  ;;  %v10121_v23 = vpack.c.bf16 %v13132_v9, %v13127_v32 }
 0x35c   : > { %10080 = vmatpush3.bf16.msra.mxu0 %v13091_v56 }
 0x35d   : > { %9016 = vmatmul.mubr.f32.vlgmr.msra.gmra.mrb[6].mxu1 %v5812_v3  ;;  %10081 = vmatprep.subr.bf16.mxu0 %v13500_v1  ;;  %v5152_v3 = vand.u32 4294901760, %v13165_v7 }
 0x35e   : > { %10227 = vmatpush3.bf16.msra.mxu1 %v10082_v48  ;;  %9050 = vmatprep.mubr.msk.f32.mxu1 %vm10742_vm0, %v10743_v17 }
 0x35f   : > { %10228 = vmatprep.subr.bf16.mxu1 %v13500_v1  ;;  %8806 = vmatmul.mubr.f32.vlgmr.msra.gmra.mrb[6].mxu0 %v5052_v58  ;;  %v10094_v58 = vpack.c.bf16 %v5126_v12, %v5119_v4  ;;  %v5153_v49 = vsub.f32 %v13165_v7, %v5152_v3 }
 0x360   : > { %10083 = vmatpush3.bf16.msra.mxu0 %v10082_v48  ;;  %8840 = vmatprep.mubr.msk.f32.mxu0 %vm10742_vm0, %v10743_v17  ;;  %v5112_v48 = vand.u32 4294901760, %v5111_v18 }
 0x361   : > { %10084 = vmatprep.subr.bf16.mxu0 %v13500_v1  ;;  %v5154_v51 = vand.u32 4294901760, %v5153_v49  ;;  %v10124_v49 = vpack.c.bf16 %v13165_v7, %v13150_v31 }
 0x362   : > { %10230 = vmatpush3.bf16.msra.mxu1 %v10085_v22  ;;  %v10091_v37 = vpack.c.bf16 %v5112_v48, %v5105_v25  ;;  %v5167_v25 = vsub.f32 %v13183_v26, %v5166_v8 }
 0x363   : > { %10231 = vmatprep.subr.bf16.mxu1 %v13500_v1  ;;  %v10100_v48 = vpack.c.bf16 %v5154_v51, %v5147_v43  ;;  %v10154_v43 = vpack.c.bf16 %v5068_v6, %v5061_v46  ;;  %v10157_v51 = vpack.c.bf16 %v5082_v61, %v5075_v50  ;;  %v10166_v46 = vpack.c.bf16 %v5124_v40, %v5117_v42 }
 0x364   : > { %10086 = vmatpush3.bf16.msra.mxu0 %v10085_v22  ;;  %v5133_v22 = vand.u32 4294901760, %v5132_v41  ;;  %v5168_v12 = vand.u32 4294901760, %v5167_v25  ;;  %v10175_v6 = vpack.c.bf16 %v5166_v8, %v5159_v47 }
 0x365   : > { %10087 = vmatprep.subr.bf16.mxu0 %v13500_v1 }
 0x366   : > { %10233 = vmatpush3.bf16.msra.mxu1 %v10088_v15  ;;  %v10097_v18 = vpack.c.bf16 %v5140_v13, %v5133_v22  ;;  %v10115_v22 = vpack.c.bf16 %v13082_v57, %v13070_v63  ;;  %v10118_v13 = vpack.c.bf16 %v13107_v10, %v13102_v55 }
 0x367   : > { %10234 = vmatprep.subr.bf16.mxu1 %v13500_v1 }
 0x368   : > { %10089 = vmatpush3.bf16.msra.mxu0 %v10088_v15  ;;  %v5160_v15 = vsub.f32 %v13172_v52, %v5159_v47 }
 0x369   : > { %10090 = vmatprep.subr.bf16.mxu0 %v13500_v1 }
 0x36a   : > { %10236 = vmatpush3.bf16.msra.mxu1 %v10091_v37  ;;  %v5161_v4 = vand.u32 4294901760, %v5160_v15 }
 0x36b   : > { %10237 = vmatprep.subr.bf16.mxu1 %v13500_v1 }
 0x36c   : > { %10092 = vmatpush3.bf16.msra.mxu0 %v10091_v37  ;;  %v10103_v41 = vpack.c.bf16 %v5168_v12, %v5161_v4  ;;  %v10109_v37 = vpack.c.bf16 %v13007_v21, %v13002_v35  ;;  %v10169_v35 = vpack.c.bf16 %v5138_v30, %v5131_v24  ;;  %v10172_v21 = vpack.c.bf16 %v5152_v3, %v5145_v54 }
 0x36d   : > { %10093 = vmatprep.subr.bf16.mxu0 %v13500_v1 }
 0x36e   : > { %10239 = vmatpush3.bf16.msra.mxu1 %v10094_v58 }
 0x36f   : > { %10240 = vmatprep.subr.bf16.mxu1 %v13500_v1 }
 0x370   : > { %10095 = vmatpush3.bf16.msra.mxu0 %v10094_v58  ;;  %v10112_v58 = vpack.c.bf16 %v13051_v33, %v13033_v29 }
 0x371   : > { %10096 = vmatprep.subr.bf16.mxu0 %v13500_v1 }
 0x372   : > { %10242 = vmatpush3.bf16.msra.mxu1 %v10097_v18 }
 0x373   : > { %10243 = vmatprep.subr.bf16.mxu1 %v13500_v1 }
 0x374   : > { %10098 = vmatpush3.bf16.msra.mxu0 %v10097_v18  ;;  %v10127_v18 = vpack.c.bf16 %v13183_v26, %v13172_v52 }
 0x375   : > { %10099 = vmatprep.subr.bf16.mxu0 %v13500_v1 }
 0x376   : > { %10245 = vmatpush3.bf16.msra.mxu1 %v10100_v48 }
 0x377   : > { %10246 = vmatprep.subr.bf16.mxu1 %v13500_v1 }
 0x378   : > { %10101 = vmatpush3.bf16.msra.mxu0 %v10100_v48 }
 0x379   : > { %10102 = vmatprep.subr.bf16.mxu0 %v13500_v1 }
 0x37a   : > { %10248 = vmatpush3.bf16.msra.mxu1 %v10103_v41 }
 0x37b   : > { %10249 = vmatprep.subr.bf16.mxu1 %v13500_v1 }
 0x37c   : > { %10104 = vmatpush3.bf16.msra.mxu0 %v10103_v41 }
 0x37d   : > { %9051 = vmatmul.mubr.f32.vlgmr.msra.gmra.mrb[6].mxu1 %v12989_v36  ;;  %10105 = vmatprep.subr.bf16.mxu0 %v13500_v1 }
 0x37e   : > { %10251 = vmatpush3.bf16.msra.mxu1 %v10106_v28  ;;  %9085 = vmatprep.mubr.msk.f32.mxu1 %vm10742_vm0, %v10743_v17 }
 0x37f   : > { %10252 = vmatprep.subr.bf16.mxu1 %v13500_v1  ;;  %8841 = vmatmul.mubr.f32.vlgmr.msra.gmra.mrb[6].mxu0 %v12996_v62 }
 0x380   : > { %10107 = vmatpush3.bf16.msra.mxu0 %v10106_v28  ;;  %8875 = vmatprep.mubr.msk.f32.mxu0 %vm10742_vm0, %v10743_v17 }
 0x381   : > { %10108 = vmatprep.subr.bf16.mxu0 %v13500_v1 }
 0x382   : > { %10254 = vmatpush3.bf16.msra.mxu1 %v10109_v37 }
 0x383   : > { %10255 = vmatprep.subr.bf16.mxu1 %v13500_v1 }
 0x384   : > { %10110 = vmatpush3.bf16.msra.mxu0 %v10109_v37 }
 0x385   : > { %10111 = vmatprep.subr.bf16.mxu0 %v13500_v1 }
 0x386   : > { %10257 = vmatpush3.bf16.msra.mxu1 %v10112_v58 }
 0x387   : > { %10258 = vmatprep.subr.bf16.mxu1 %v13500_v1 }
 0x388   : > { %10113 = vmatpush3.bf16.msra.mxu0 %v10112_v58 }
 0x389   : > { %10114 = vmatprep.subr.bf16.mxu0 %v13500_v1 }
 0x38a   : > { %10260 = vmatpush3.bf16.msra.mxu1 %v10115_v22 }
 0x38b   : > { %10261 = vmatprep.subr.bf16.mxu1 %v13500_v1 }
 0x38c   : > { %10116 = vmatpush3.bf16.msra.mxu0 %v10115_v22 }
 0x38d   : > { %10117 = vmatprep.subr.bf16.mxu0 %v13500_v1 }
 0x38e   : > { %10263 = vmatpush3.bf16.msra.mxu1 %v10118_v13 }
 0x38f   : > { %10264 = vmatprep.subr.bf16.mxu1 %v13500_v1 }
 0x390   : > { %10119 = vmatpush3.bf16.msra.mxu0 %v10118_v13 }
 0x391   : > { %10120 = vmatprep.subr.bf16.mxu0 %v13500_v1 }
 0x392   : > { %10266 = vmatpush3.bf16.msra.mxu1 %v10121_v23 }
 0x393   : > { %10267 = vmatprep.subr.bf16.mxu1 %v13500_v1 }
 0x394   : > { %10122 = vmatpush3.bf16.msra.mxu0 %v10121_v23 }
 0x395   : > { %10123 = vmatprep.subr.bf16.mxu0 %v13500_v1 }
 0x396   : > { %10269 = vmatpush3.bf16.msra.mxu1 %v10124_v49 }
 0x397   : > { %10270 = vmatprep.subr.bf16.mxu1 %v13500_v1 }
 0x398   : > { %10125 = vmatpush3.bf16.msra.mxu0 %v10124_v49 }
 0x399   : > { %10126 = vmatprep.subr.bf16.mxu0 %v13500_v1 }
 0x39a   : > { %10272 = vmatpush3.bf16.msra.mxu1 %v10127_v18 }
 0x39b   : > { %10273 = vmatprep.subr.bf16.mxu1 %v13500_v1 }
 0x39c   : > { %10128 = vmatpush3.bf16.msra.mxu0 %v10127_v18 }
 0x39d   : > { %9086 = vmatmul.mubr.f32.vlgmr.msra.gmra.mrb[6].mxu1 %v13023_v59  ;;  %10129 = vmatprep.subr.bf16.mxu0 %v13500_v1  ;;  %v4966_v59 = vstv %s6667_s11 }
 0x39e   : > { %10275 = vmatpush3.bf16.msra.mxu1 %v12892_v45  ;;  %9120 = vmatprep.mubr.msk.f32.mxu1 %vm10742_vm0, %v10743_v17 }
 0x39f   : > { %10276 = vmatprep.subr.bf16.mxu1 %v13500_v1  ;;  %8876 = vmatmul.mubr.f32.vlgmr.msra.gmra.mrb[6].mxu0 %v13036_v44 }
 0x3a0   : > { %10131 = vmatpush3.bf16.msra.mxu0 %v12892_v45  ;;  %8910 = vmatprep.mubr.msk.f32.mxu0 %vm10742_vm0, %v10743_v17 }
 0x3a1   : > { %10132 = vmatprep.subr.bf16.mxu0 %v13500_v1 }
 0x3a2   : > { %10278 = vmatpush3.bf16.msra.mxu1 %v12912_v39 }
 0x3a3   : > { %10279 = vmatprep.subr.bf16.mxu1 %v13500_v1 }
 0x3a4   : > { %10134 = vmatpush3.bf16.msra.mxu0 %v12912_v39 }
 0x3a5   : > { %10135 = vmatprep.subr.bf16.mxu0 %v13500_v1 }
 0x3a6   : > { %10281 = vmatpush3.bf16.msra.mxu1 %v12934_v27 }
 0x3a7   : > { %10282 = vmatprep.subr.bf16.mxu1 %v13500_v1 }
 0x3a8   : > { %10137 = vmatpush3.bf16.msra.mxu0 %v12934_v27 }
 0x3a9   : > { %10138 = vmatprep.subr.bf16.mxu0 %v13500_v1 }
 0x3aa   : > { %10284 = vmatpush3.bf16.msra.mxu1 %v12953_v53 }
 0x3ab   : > { %10285 = vmatprep.subr.bf16.mxu1 %v13500_v1 }
 0x3ac   : > { %10140 = vmatpush3.bf16.msra.mxu0 %v12953_v53 }
 0x3ad   : > { %10141 = vmatprep.subr.bf16.mxu0 %v13500_v1 }
 0x3ae   : > { %10287 = vmatpush3.bf16.msra.mxu1 %v12985_v20 }
 0x3af   : > { %10288 = vmatprep.subr.bf16.mxu1 %v13500_v1 }
 0x3b0   : > { %10143 = vmatpush3.bf16.msra.mxu0 %v12985_v20 }
 0x3b1   : > { %10144 = vmatprep.subr.bf16.mxu0 %v13500_v1 }
 0x3b2   : > { %10290 = vmatpush3.bf16.msra.mxu1 %v13018_v2 }
 0x3b3   : > { %10291 = vmatprep.subr.bf16.mxu1 %v13500_v1 }
 0x3b4   : > { %10146 = vmatpush3.bf16.msra.mxu0 %v13018_v2 }
 0x3b5   : > { %10147 = vmatprep.subr.bf16.mxu0 %v13500_v1 }
 0x3b6   : > { %10293 = vmatpush3.bf16.msra.mxu1 %v13059_v19 }
 0x3b7   : > { %10294 = vmatprep.subr.bf16.mxu1 %v13500_v1 }
 0x3b8   : > { %10149 = vmatpush3.bf16.msra.mxu0 %v13059_v19 }
 0x3b9   : > { %10150 = vmatprep.subr.bf16.mxu0 %v13500_v1 }
 0x3ba   : > { %10296 = vmatpush3.bf16.msra.mxu1 %v13091_v56 }
 0x3bb   : > { %10297 = vmatprep.subr.bf16.mxu1 %v13500_v1 }
 0x3bc   : > { %10152 = vmatpush3.bf16.msra.mxu0 %v13091_v56 }
 0x3bd   : > { %9121 = vmatmul.mubr.f32.vlgmr.msra.gmra.mrb[6].mxu1 %v5810_v5  ;;  %10153 = vmatprep.subr.bf16.mxu0 %v13500_v1 }
 0x3be   : > { %10299 = vmatpush3.bf16.msra.mxu1 %v10154_v43  ;;  %9155 = vmatprep.mubr.msk.f32.mxu1 %vm10742_vm0, %v10743_v17 }
 0x3bf   : > { %10300 = vmatprep.subr.bf16.mxu1 %v13500_v1  ;;  %8911 = vmatmul.mubr.f32.vlgmr.msra.gmra.mrb[6].mxu0 %v5050_v0 }
 0x3c0   : > { %10155 = vmatpush3.bf16.msra.mxu0 %v10154_v43  ;;  %8945 = vmatprep.mubr.msk.f32.mxu0 %vm10742_vm0, %v10743_v17 }
 0x3c1   : > { %10156 = vmatprep.subr.bf16.mxu0 %v13500_v1 }
 0x3c2   : > { %10302 = vmatpush3.bf16.msra.mxu1 %v10157_v51 }
 0x3c3   : > { %10303 = vmatprep.subr.bf16.mxu1 %v13500_v1 }
 0x3c4   : > { %10158 = vmatpush3.bf16.msra.mxu0 %v10157_v51 }
 0x3c5   : > { %10159 = vmatprep.subr.bf16.mxu0 %v13500_v1 }
 0x3c6   : > { %10305 = vmatpush3.bf16.msra.mxu1 %v10160_v14 }
 0x3c7   : > { %10306 = vmatprep.subr.bf16.mxu1 %v13500_v1 }
 0x3c8   : > { %10161 = vmatpush3.bf16.msra.mxu0 %v10160_v14 }
 0x3c9   : > { %10162 = vmatprep.subr.bf16.mxu0 %v13500_v1 }
 0x3ca   : > { %10308 = vmatpush3.bf16.msra.mxu1 %v10163_v16 }
 0x3cb   : > { %10309 = vmatprep.subr.bf16.mxu1 %v13500_v1 }
 0x3cc   : > { %10164 = vmatpush3.bf16.msra.mxu0 %v10163_v16 }
 0x3cd   : > { %10165 = vmatprep.subr.bf16.mxu0 %v13500_v1 }
 0x3ce   : > { %10311 = vmatpush3.bf16.msra.mxu1 %v10166_v46 }
 0x3cf   : > { %10312 = vmatprep.subr.bf16.mxu1 %v13500_v1 }
 0x3d0   : > { %10167 = vmatpush3.bf16.msra.mxu0 %v10166_v46 }
 0x3d1   : > { %10168 = vmatprep.subr.bf16.mxu0 %v13500_v1 }
 0x3d2   : > { %10314 = vmatpush3.bf16.msra.mxu1 %v10169_v35 }
 0x3d3   : > { %10315 = vmatprep.subr.bf16.mxu1 %v13500_v1 }
 0x3d4   : > { %10170 = vmatpush3.bf16.msra.mxu0 %v10169_v35 }
 0x3d5   : > { %10171 = vmatprep.subr.bf16.mxu0 %v13500_v1 }
 0x3d6   : > { %10317 = vmatpush3.bf16.msra.mxu1 %v10172_v21 }
 0x3d7   : > { %10318 = vmatprep.subr.bf16.mxu1 %v13500_v1 }
 0x3d8   : > { %10173 = vmatpush3.bf16.msra.mxu0 %v10172_v21 }
 0x3d9   : > { %10174 = vmatprep.subr.bf16.mxu0 %v13500_v1 }
 0x3da   : > { %10320 = vmatpush3.bf16.msra.mxu1 %v10175_v6 }
 0x3db   : > { %10321 = vmatprep.subr.bf16.mxu1 %v13500_v1 }
 0x3dc   : > { %10176 = vmatpush3.bf16.msra.mxu0 %v10175_v6 }
 0x3dd   : > { %9156 = vmatmul.mubr.f32.vlgmr.msra.gmra.mrb[6].mxu1 %v12989_v36  ;;  %10177 = vmatprep.subr.bf16.mxu0 %v13500_v1 }
 0x3de   : > { %10323 = vmatpush3.bf16.msra.mxu1 %v12892_v45  ;;  %9190 = vmatprep.mubr.msk.f32.mxu1 %vm10742_vm0, %v10743_v17 }
 0x3df   : > { %10324 = vmatprep.subr.bf16.mxu1 %v13500_v1  ;;  %8946 = vmatmul.mubr.f32.vlgmr.msra.gmra.mrb[6].mxu0 %v12996_v62 }
 0x3e0   : > { %10179 = vmatpush3.bf16.msra.mxu0 %v12892_v45  ;;  %8980 = vmatprep.mubr.msk.f32.mxu0 %vm10742_vm0, %v10743_v17  ;;  %v4206_v17 = vstv %s6646_s3 }
 0x3e1   : > { %10180 = vmatprep.subr.bf16.mxu0 %v13500_v1 }
 0x3e2   : > { %10326 = vmatpush3.bf16.msra.mxu1 %v12912_v39 }
 0x3e3   : > { %10327 = vmatprep.subr.bf16.mxu1 %v13500_v1 }
 0x3e4   : > { %10182 = vmatpush3.bf16.msra.mxu0 %v12912_v39  ;;  %v3446_v39 = vstv %s6625_s30 }
 0x3e5   : > { %10183 = vmatprep.subr.bf16.mxu0 %v13500_v1 }
 0x3e6   : > { %10329 = vmatpush3.bf16.msra.mxu1 %v12934_v27 }
 0x3e7   : > { %10330 = vmatprep.subr.bf16.mxu1 %v13500_v1 }
 0x3e8   : > { %10185 = vmatpush3.bf16.msra.mxu0 %v12934_v27 }
 0x3e9   : > { %10186 = vmatprep.subr.bf16.mxu0 %v13500_v1 }
 0x3ea   : > { %10332 = vmatpush3.bf16.msra.mxu1 %v12953_v53 }
 0x3eb   : > { %10333 = vmatprep.subr.bf16.mxu1 %v13500_v1 }
 0x3ec   : > { %10188 = vmatpush3.bf16.msra.mxu0 %v12953_v53 }
 0x3ed   : > { %10189 = vmatprep.subr.bf16.mxu0 %v13500_v1 }
 0x3ee   : > { %10335 = vmatpush3.bf16.msra.mxu1 %v12985_v20 }
 0x3ef   : > { %10336 = vmatprep.subr.bf16.mxu1 %v13500_v1 }
 0x3f0   : > { %10191 = vmatpush3.bf16.msra.mxu0 %v12985_v20 }
 0x3f1   : > { %10192 = vmatprep.subr.bf16.mxu0 %v13500_v1 }
 0x3f2   : > { %10338 = vmatpush3.bf16.msra.mxu1 %v13018_v2 }
 0x3f3   : > { %10339 = vmatprep.subr.bf16.mxu1 %v13500_v1 }
 0x3f4   : > { %10194 = vmatpush3.bf16.msra.mxu0 %v13018_v2 }
 0x3f5   : > { %10195 = vmatprep.subr.bf16.mxu0 %v13500_v1 }
 0x3f6   : > { %10341 = vmatpush3.bf16.msra.mxu1 %v13059_v19 }
 0x3f7   : > { %10342 = vmatprep.subr.bf16.mxu1 %v13500_v1 }
 0x3f8   : > { %10197 = vmatpush3.bf16.msra.mxu0 %v13059_v19 }
 0x3f9   : > { %10198 = vmatprep.subr.bf16.mxu0 %v13500_v1 }
 0x3fa   : > { %10344 = vmatpush3.bf16.msra.mxu1 %v13091_v56 }
 0x3fc   : > { %10200 = vmatpush3.bf16.msra.mxu0 %v13091_v56 }
 0x3fd   : > { %9191 = vmatmul.mubr.f32.vlgmr.msra.gmra.mrb[6].mxu1 %v12989_v36  ;;  %v5726_v36 = vstv %s6688_s9 }
 0x3ff   : > { %8981 = vmatmul.mubr.f32.vlgmr.msra.gmra.mrb[6].mxu0 %v12996_v62 }
 0x410   : > { %v4844_v45 = vpop.f32.mrb[4].mxu1 }
 0x411   : > { %v10350_v27 = vadd.f32 %v4844_v45, %v4206_v17  ;;  %v8772_v53 = vpop.f32.mrb[5].mxu1 }
 0x412   : > { %v4084_v1 = vpop.f32.mrb[4].mxu0 }
 0x413   : > { %6647 = vst [vmem:[%s12546_s6 + $0x28] sm:$0xff] %v10350_v27  ;;  %v10349_v20 = vadd.f32 %v4084_v1, %v3446_v39  ;;  %v8562_v2 = vpop.f32.mrb[5].mxu0 }
 0x415   : > { %6626 = vst [vmem:[%s12546_s6 + $0x20] sm:$0xff] %v10349_v20 }
 0x4d0   : > { %v6364_v62 = vpop.f32.mrb[6].mxu1 }
 0x4d1   : > { %v10352_v29 = vadd.f32 %v6364_v62, %v5726_v36  ;;  %v9192_v44 = vpop.f32.mrb[7].mxu1 }
 0x4d2   : > { %v5604_v50 = vpop.f32.mrb[6].mxu0 }
 0x4d3   : > { %6689 = vst [vmem:[%s12546_s6 + $0x38] sm:$0xff] %v10352_v29  ;;  %v10351_v61 = vadd.f32 %v5604_v50, %v4966_v59  ;;  %v8982_v33 = vpop.f32.mrb[7].mxu0 }
 0x4d5   : > { %6668 = vst [vmem:[%s12546_s6 + $0x30] sm:$0xff] %v10351_v61 }
 0x4d6   : > { %10649 = shalt.err (!%p10646_p10)
}
 0x4d7   : > { %s10650_s6 = scalar_lea.hbm %s13392_s5, 1024  ;;  %s10654_s28 = scalar_lea.hbm %s13448_s4, 2048 }
 0x4d8   : > { %p10651_p0 = scmp.ne.s32.totalorder %s13392_s5, %s10650_s6  ;;  %p10655_p7 = scmp.lt.u32.totalorder %s13392_s5, %s13448_s4 }
 0x4d9   : > { %p10656_p12 = scmp.lt.u32.totalorder %s10654_s28, %s10650_s6  ;;  %p10658_p1 = scmp.lt.u32.totalorder %s10650_s6, %s13392_s5 }
 0x4da   : > { %p10652_p13 = pnand %p10651_p0, %p10894_p2 }
 0x4db   : > { %p10657_p11 = por %p10656_p12, %p10655_p7 }
 0x4dc   : > { %p10653_p9 = pneg %p10652_p13 }
 0x4dd   : > { %p10659_p6 = por %p10658_p1, %p10657_p11 }
 0x4df   : > { %p10660_p4 = pnand %p10659_p6, %p10653_p9 }
 0x4e1   : > { %10663 = shalt.err (!%p10660_p4)
}
 0x4e2   : > { %s10745_s3 = smov 128   ;;  %s10746_s30 = smov 8  }
 0x4e3   : > { %10447 = dma.vmem_to_hbm [thread:$0]  (%p10894_p2), %s13394_s23, 1024, %s13392_s5, %s6371_s18, %s10745_s3, %s10745_s3, %s10746_s30  }
 0x4e4 PF: > { %s6402_s9 = sand.u32 1, %s10710_s15   ;;  %p13517_p8 = scmp.ne.s32.totalorder %s13484_s26, 0 }
 0x4e5   : > { %p13518_p3 = scmp.ge.s32.totalorder %s10730_s20, 2  ;;  %s6403_s11 = scalar_lea.sflag [#allocation4], %s6402_s9 }
 0x4e7   : > { %p10464_p5 = pnand %p13518_p3, %p13517_p8 }
 0x4e9   : > { %10705 = dma.done.wait (!%p10464_p5), %s6403_s11, 1024  }
 0x4ea   : > { %10707 = vsyncadd (!%p10464_p5), %s6403_s11, 4294966272  ;;  %s23_s20 = sadd.s32 1, %s10730_s20   ;;  %s13519_s15 = smov %s10714_s16 }
 0x4eb   : > { %p20_p10 = scmp.ge.s32.totalorder %s23_s20, 4   ;;  %s13520_s16 = smov %s10718_s17 }
 0x4ec   : > { %s13521_s17 = smov %s10906_s29  ;;  %s13522_s18 = smov %s10726_s19 }
 0x4ed   : > { %s13523_s19 = smov %s13525_s21  ;;  %22 = sbr.rel (!%p20_p10) target bundleno = 14 (0xe), region = 104 }
 0x4f4   :  { %6408 = vsyncpa [#allocation3], 1 }
 0x4f5   :  { %6410 = vsyncpa [#allocation3 + $0x1], 1 }
 0x4f6   :  { %6411 = vsyncpa [#allocation10], 1 }
 0x4f7   :  { %6412 = vsyncpa [#allocation4], 1 }
 0x4f8   :  { %6414 = vsyncpa [#allocation4 + $0x1], 1 }
 0x4f9   :  { %6415 = vsyncpa [#allocation5], 1 }
 0x4fa   :  { %6417 = vsyncpa [#allocation5 + $0x1], 1 }
 0x4fb   :  { %6418 = vsyncpa [#allocation8], 1 }

</bundles_post_ra>
